<compile_context>
chip_gen: v7x
topology: tpu7x:2x2x1
jax: 0.10.0
libtpu: 0.0.40
codegen_flags: <defaults>
</compile_context>

<pallas_src>
import functools

import jax
import jax.numpy as jnp
from jax.experimental import pallas as pl
from jax.experimental.pallas import tpu as pltpu


def _bottleneck_kernel(x_core_ref, x_rows_hbm, w1_ref, b1_ref, w2_ref, b2_ref,
                       w3_ref, b3_ref, o_ref, h1_buf, halo_buf, halo_sem,
                       *, nr):
    """One (batch, row-block) tile per grid step.

    x_core_ref : (1, TH, W, Cin)  f32 core rows (pipelined; also the residual)
    x_rows_hbm : (N*H, W, Cin)    f32, raw HBM rows (halo DMA source)
    w1         : (Cin, P)   bf16, BN1 scale folded in
    w2         : (9, P, P)  bf16, tap k = kh*3 + kw, BN2 folded in
    w3         : (P, Cout)  bf16, BN3 scale folded in
    b*         : (1, C)     f32 BN biases
    o_ref      : (1, TH, W, Cout)
    h1_buf     : ((TH+2)*W, P) bf16 scratch: [top halo | core rows | bottom halo]
    halo_buf   : (2, W, Cin) f32 scratch for the DMA'd halo rows
    """
    _, TH, W, Cin = x_core_ref.shape
    P = w1_ref.shape[1]
    Cout = w3_ref.shape[1]
    H = nr * TH
    n_rows = TH * W

    nb = pl.program_id(0)
    r = pl.program_id(1)
    row0 = r * TH

    # --- kick off halo-row DMAs (row above / below this block, clamped) ------
    if nr > 1:
        top_i = nb * H + jnp.maximum(row0 - 1, 0)
        bot_i = nb * H + jnp.minimum(row0 + TH, H - 1)
        cp_top = pltpu.make_async_copy(x_rows_hbm.at[top_i], halo_buf.at[0],
                                       halo_sem.at[0])
        cp_bot = pltpu.make_async_copy(x_rows_hbm.at[bot_i], halo_buf.at[1],
                                       halo_sem.at[1])
        cp_top.start()
        cp_bot.start()

    # --- conv1 (1x1, BN1 folded) + bias + ReLU on the core rows --------------
    xc = x_core_ref[0].reshape(n_rows, Cin)                      # f32 residual
    h1 = jnp.dot(xc.astype(jnp.bfloat16), w1_ref[...],
                 preferred_element_type=jnp.float32)
    h1 = jnp.maximum(h1 + b1_ref[...], 0.0)
    h1_buf[pl.ds(W, n_rows), :] = h1.astype(jnp.bfloat16)

    # --- halo rows: conv1 on the DMA'd row, or zeros outside the image -------
    zero_row = jnp.zeros((W, P), jnp.bfloat16)
    if nr == 1:
        # Whole image in one block: both halos are zero padding.
        h1_buf[pl.ds(0, W), :] = zero_row
        h1_buf[pl.ds((TH + 1) * W, W), :] = zero_row
    else:
        cp_top.wait()
        cp_bot.wait()

        def _halo_conv(row_f32):
            v = jnp.dot(row_f32.astype(jnp.bfloat16), w1_ref[...],
                        preferred_element_type=jnp.float32)
            return jnp.maximum(v + b1_ref[...], 0.0).astype(jnp.bfloat16)

        @pl.when(r == 0)
        def _():
            h1_buf[pl.ds(0, W), :] = zero_row

        @pl.when(r > 0)
        def _():
            h1_buf[pl.ds(0, W), :] = _halo_conv(halo_buf[0])

        @pl.when(r == nr - 1)
        def _():
            h1_buf[pl.ds((TH + 1) * W, W), :] = zero_row

        @pl.when(r < nr - 1)
        def _():
            h1_buf[pl.ds((TH + 1) * W, W), :] = _halo_conv(halo_buf[1])

    # --- conv2 (3x3, stride 1, pad 1): 9 accumulating matmuls ----------------
    # Horizontal (+-1 column) shifts are applied to the f32 partial products
    # (roll after the matmul == roll before it, since the shift is whole rows).
    col = jax.lax.broadcasted_iota(jnp.int32, (n_rows, 1), 0) % W
    left_edge = col == 0
    right_edge = col == W - 1
    acc = jnp.zeros((n_rows, P), jnp.float32)
    for kh in range(3):
        rows = h1_buf[pl.ds(kh * W, n_rows), :]                  # bf16 taps
        # kw = 1 (center column)
        acc = acc + jnp.dot(rows, w2_ref[kh * 3 + 1],
                            preferred_element_type=jnp.float32)
        # kw = 0 (input column w-1): shift product down one row, mask column 0
        p_l = jnp.dot(rows, w2_ref[kh * 3 + 0],
                      preferred_element_type=jnp.float32)
        acc = acc + jnp.where(left_edge, 0.0, pltpu.roll(p_l, shift=1, axis=0))
        # kw = 2 (input column w+1): shift product up one row, mask column W-1
        p_r = jnp.dot(rows, w2_ref[kh * 3 + 2],
                      preferred_element_type=jnp.float32)
        acc = acc + jnp.where(right_edge, 0.0,
                              pltpu.roll(p_r, shift=n_rows - 1, axis=0))
    h2 = jnp.maximum(acc + b2_ref[...], 0.0).astype(jnp.bfloat16)

    # --- conv3 (1x1, BN3 folded) + bias + identity residual + ReLU -----------
    h3 = jnp.dot(h2, w3_ref[...], preferred_element_type=jnp.float32)
    out = jnp.maximum(h3 + b3_ref[...] + xc, 0.0)
    o_ref[0] = out.reshape(TH, W, Cout).astype(o_ref.dtype)


def bottleneck_nhwc(x_nhwc, params, *, th=None, out_dtype=jnp.float32):
    """Run the fused bottleneck kernel on an NHWC tensor."""
    w1, b1, w2, b2, w3, b3 = params
    N, H, W, Cin = x_nhwc.shape
    P = w1.shape[1]
    Cout = w3.shape[1]
    assert Cin == Cout, "identity residual requires inplanes == planes * 4"
    if th is None:
        # Largest multiple-of-8 divisor of H up to 64 rows (small images: whole
        # image in one block -> no halo recompute, minimal per-step overhead).
        cands = [t for t in range(8, min(H, 64) + 1, 8) if H % t == 0]
        th = cands[-1] if cands else H
    assert H % th == 0 and th % 8 == 0, "row-block must divide H and be 8-aligned"
    assert W % 8 == 0, "W must be sublane-aligned"
    # Cin/Cout multiples of 128 keep loads/stores lane-dense (not required for
    # correctness, only for performance).
    nr = H // th

    # Flat (N*H, W, Cin) row view of the input: single-dynamic-index halo DMAs.
    x_rows = x_nhwc.reshape(N * H, W, Cin)

    # Explicit scoped-VMEM budget: blocks (double-buffered) + weights + scratch,
    # with headroom for in-kernel f32 temporaries; capped below v7x's 64 MiB.
    est = (2 * th * W * Cin * 4                      # x core block (x2 buffers)
           + 2 * th * W * Cout * 4                   # output block (x2 buffers)
           + 2 * ((Cin * P + 9 * P * P + P * Cout) * 2 + (2 * P + Cout) * 4)
           + (th + 2) * W * P * 2                    # h1 scratch (bf16)
           + 2 * W * Cin * 4)                        # halo rows
    vmem_limit = int(min(60 * 2**20, max(16 * 2**20, 6 * est)))

    kernel = pl.pallas_call(
        functools.partial(_bottleneck_kernel, nr=nr),
        out_shape=jax.ShapeDtypeStruct((N, H, W, Cout), out_dtype),
        grid_spec=pltpu.PrefetchScalarGridSpec(
            num_scalar_prefetch=0,
            grid=(N, nr),
            in_specs=[
                # pipelined core rows (also the residual)
                pl.BlockSpec((1, th, W, Cin), lambda n, r: (n, r, 0, 0)),
                # raw HBM rows for the 1-row halo DMAs
                pl.BlockSpec(memory_space=pl.ANY),
                # weights/biases: constant index maps (fetched once, kept resident)
                pl.BlockSpec((Cin, P), lambda n, r: (0, 0)),
                pl.BlockSpec((1, P), lambda n, r: (0, 0)),
                pl.BlockSpec((9, P, P), lambda n, r: (0, 0, 0)),
                pl.BlockSpec((1, P), lambda n, r: (0, 0)),
                pl.BlockSpec((P, Cout), lambda n, r: (0, 0)),
                pl.BlockSpec((1, Cout), lambda n, r: (0, 0)),
            ],
            out_specs=pl.BlockSpec((1, th, W, Cout), lambda n, r: (n, r, 0, 0)),
            scratch_shapes=[
                pltpu.VMEM(((th + 2) * W, P), jnp.bfloat16),   # extended h1
                pltpu.VMEM((2, W, Cin), jnp.float32),           # halo rows
                pltpu.SemaphoreType.DMA((2,)),
            ],
        ),
        compiler_params=pltpu.CompilerParams(
            dimension_semantics=("parallel", "parallel"),
            vmem_limit_bytes=vmem_limit),
    )
    return kernel(x_nhwc, x_rows, w1, b1, w2, b2, w3, b3)


def bottleneck_forward(x_tuple, params, *, th=None):
    """Mirrors Bottleneck.forward for fs=0 (stride=1, no downsample).

    Accepts a 1- or 3-tuple of NCHW tensors.  The 3-tuple path is batched into
    a single kernel launch (weights shared), with one transpose pair total."""
    if len(x_tuple) not in (1, 3):
        raise NotImplementedError(
            '%d is not supported length of the tuple' % len(x_tuple))
    x_all = x_tuple[0] if len(x_tuple) == 1 else jnp.concatenate(x_tuple, axis=0)
    x_nhwc = jnp.transpose(x_all, (0, 2, 3, 1))
    o_nhwc = bottleneck_nhwc(x_nhwc, params, th=th)
    o_nchw = jnp.transpose(o_nhwc, (0, 3, 1, 2))
    if len(x_tuple) == 1:
        return [o_nchw]
    n = x_tuple[0].shape[0]
    return [o_nchw[i * n:(i + 1) * n] for i in range(len(x_tuple))]


def make_params(key, inplanes, planes, eps=1e-5):
    """Deterministic synthetic parameters; BN scale folded into conv weights,
    weights stored as bf16 for the MXU, biases kept f32."""
    exp = 4
    ks = jax.random.split(key, 6)
    # PyTorch conv weight layout: (Cout, Cin, kh, kw)
    w1_t = 0.1 * jax.random.normal(ks[0], (planes, inplanes, 1, 1), jnp.float32)
    w2_t = 0.1 * jax.random.normal(ks[1], (planes, planes, 3, 3), jnp.float32)
    w3_t = 0.1 * jax.random.normal(ks[2], (planes * exp, planes, 1, 1), jnp.float32)

    def bn(k, c):
        k1, k2, k3, k4 = jax.random.split(k, 4)
        gamma = 1.0 + 0.1 * jax.random.normal(k1, (c,), jnp.float32)
        beta = 0.1 * jax.random.normal(k2, (c,), jnp.float32)
        mean = 0.1 * jax.random.normal(k3, (c,), jnp.float32)
        var = 1.0 + 0.1 * jax.random.uniform(k4, (c,), jnp.float32)
        scale = gamma / jnp.sqrt(var + eps)
        bias = beta - mean * scale
        return scale, bias

    s1, b1 = bn(ks[3], planes)
    s2, b2 = bn(ks[4], planes)
    s3, b3 = bn(ks[5], planes * exp)

    # Fold BN scale into conv weights (per output channel); channels-last layout.
    w1 = (w1_t[:, :, 0, 0] * s1[:, None]).T.astype(jnp.bfloat16)        # (Cin, P)
    w2_fold = w2_t * s2[:, None, None, None]                             # (P, P, 3, 3)
    # (kh, kw, Cin, Cout) -> (9, P, P); tap index k = kh*3 + kw
    w2 = jnp.transpose(w2_fold, (2, 3, 1, 0)).reshape(
        9, planes, planes).astype(jnp.bfloat16)
    w3 = (w3_t[:, :, 0, 0] * s3[:, None]).T.astype(jnp.bfloat16)        # (P, Cout)

    kernel_params = (w1, b1.reshape(1, -1), w2, b2.reshape(1, -1),
                     w3, b3.reshape(1, -1))
    torch_layout = (w1_t, w2_t, w3_t, s1, b1, s2, b2, s3, b3)
    return kernel_params, torch_layout


def reference_nchw(x, torch_layout):
    """Plain-JAX NCHW reference (unfused BN, f32) for correctness checking."""
    w1_t, w2_t, w3_t, s1, b1, s2, b2, s3, b3 = torch_layout

    def conv(a, w, pad):
        return jax.lax.conv_general_dilated(
            a, w, window_strides=(1, 1), padding=pad,
            dimension_numbers=('NCHW', 'OIHW', 'NCHW'))

    def bn(a, s, b):
        return a * s.reshape(1, -1, 1, 1) + b.reshape(1, -1, 1, 1)

    out = jax.nn.relu(bn(conv(x, w1_t, 'VALID'), s1, b1))
    out = jax.nn.relu(bn(conv(out, w2_t, [(1, 1), (1, 1)]), s2, b2))
    out = bn(conv(out, w3_t, 'VALID'), s3, b3)
    return jax.nn.relu(out + x)


if __name__ == "__main__":
    planes = 32
    inplanes = planes * 4          # 128 -> lane-dense input/residual/output
    N, H, W = 2, 16, 16

    key = jax.random.PRNGKey(0)
    kx, kw_, kxw, kxsw = jax.random.split(key, 4)
    params, torch_layout = make_params(kw_, inplanes, planes)

    x = jax.random.normal(kx, (N, inplanes, H, W), jnp.float32)
    x_w = jax.random.normal(kxw, (N, inplanes, H, W), jnp.float32)
    x_sw = jax.random.normal(kxsw, (N, inplanes, H, W), jnp.float32)

    ref = reference_nchw(x, torch_layout)
    ref_sw = reference_nchw(x_sw, torch_layout)

    # len(x_tuple) == 1 path: whole image per row block (nr == 1, no halo DMA)
    (out,) = bottleneck_forward([x], params)
    out = jax.block_until_ready(out)
    assert out.shape == (N, inplanes, H, W)
    assert jnp.allclose(out, ref, rtol=4e-2, atol=4e-2), "mismatch vs reference"

    # multi row-block path (nr == 2): exercises the manual halo DMAs
    (out_rb,) = bottleneck_forward([x], params, th=8)
    out_rb = jax.block_until_ready(out_rb)
    assert jnp.allclose(out_rb, ref, rtol=4e-2, atol=4e-2), "row-block mismatch"

    # len(x_tuple) == 3 path (fs=0): a single batched launch with shared weights
    out3 = bottleneck_forward([x, x_w, x_sw], params)
    out3 = [jax.block_until_ready(o) for o in out3]
    assert jnp.allclose(out3[0], ref, rtol=4e-2, atol=4e-2)
    assert jnp.allclose(out3[2], ref_sw, rtol=4e-2, atol=4e-2)

    print("KERNEL_OK")
</pallas_src>

<mosaic_0001>
module attributes {stable_mosaic.version = 11 : i64} {
  func.func @_bottleneck_kernel(%arg0: i32, %arg1: i32, %arg2: memref<1x16x16x128xf32, #tpu.memory_space<vmem>>, %arg3: memref<32x16x128xf32, #tpu.memory_space<any>>, %arg4: memref<128x32xbf16, #tpu.memory_space<vmem>>, %arg5: memref<1x32xf32, #tpu.memory_space<vmem>>, %arg6: memref<9x32x32xbf16, #tpu.memory_space<vmem>>, %arg7: memref<1x32xf32, #tpu.memory_space<vmem>>, %arg8: memref<32x128xbf16, #tpu.memory_space<vmem>>, %arg9: memref<1x128xf32, #tpu.memory_space<vmem>>, %arg10: memref<1x16x16x128xf32, #tpu.memory_space<vmem>>, %arg11: memref<288x32xbf16, #tpu.memory_space<vmem>>, %arg12: memref<2x16x128xf32, #tpu.memory_space<vmem>>, %arg13: memref<2x!tpu.dma_semaphore, #tpu.memory_space<semaphore_mem>>) attributes {dimension_semantics = [#tpu.dimension_semantics<parallel>, #tpu.dimension_semantics<parallel>], iteration_bounds = array<i64: 2, 1>, scalar_prefetch = 0 : i64, scratch_operands = 3 : i64, tpu.core_type = #tpu.core_type<tc>, window_params = [{transform_indices = @transform_0, window_bounds = array<i64: 1, 16, 16, 128>}, {}, {pipeline_mode = #tpu.pipeline_mode<synchronous>, transform_indices = @transform_2, window_bounds = array<i64: 128, 32>}, {pipeline_mode = #tpu.pipeline_mode<synchronous>, transform_indices = @transform_3, window_bounds = array<i64: 1, 32>}, {pipeline_mode = #tpu.pipeline_mode<synchronous>, transform_indices = @transform_4, window_bounds = array<i64: 9, 32, 32>}, {pipeline_mode = #tpu.pipeline_mode<synchronous>, transform_indices = @transform_5, window_bounds = array<i64: 1, 32>}, {pipeline_mode = #tpu.pipeline_mode<synchronous>, transform_indices = @transform_6, window_bounds = array<i64: 32, 128>}, {pipeline_mode = #tpu.pipeline_mode<synchronous>, transform_indices = @transform_7, window_bounds = array<i64: 1, 128>}, {transform_indices = @transform_8, window_bounds = array<i64: 1, 16, 16, 128>}]} {
    %c0 = arith.constant 0 : index
    %c0_0 = arith.constant 0 : index
    %c0_1 = arith.constant 0 : index
    %c0_2 = arith.constant 0 : index
    %0 = vector.load %arg2[%c0, %c0_0, %c0_1, %c0_2] : memref<1x16x16x128xf32, #tpu.memory_space<vmem>>, vector<1x16x16x128xf32>
    %1 = vector.shape_cast %0 : vector<1x16x16x128xf32> to vector<16x16x128xf32>
    %2 = vector.shape_cast %1 : vector<16x16x128xf32> to vector<256x128xf32>
    %3 = arith.truncf %2 : vector<256x128xf32> to vector<256x128xbf16>
    %c0_3 = arith.constant 0 : index
    %c0_4 = arith.constant 0 : index
    %4 = vector.load %arg4[%c0_3, %c0_4] : memref<128x32xbf16, #tpu.memory_space<vmem>>, vector<128x32xbf16>
    %cst = arith.constant dense<0.000000e+00> : vector<256x32xf32>
    %5 = tpu.matmul %3, %4, %cst {dimension_numbers = #tpu.dot_dimension_numbers<[1], [0], [0], [1], [0, 0, 1, 1], [], []>} : vector<256x128xbf16>, vector<128x32xbf16>, vector<256x32xf32> -> vector<256x32xf32>
    %c0_5 = arith.constant 0 : index
    %c0_6 = arith.constant 0 : index
    %6 = vector.load %arg5[%c0_5, %c0_6] : memref<1x32xf32, #tpu.memory_space<vmem>>, vector<1x32xf32>
    %7 = vector.broadcast %6 : vector<1x32xf32> to vector<256x32xf32>
    %8 = arith.addf %5, %7 : vector<256x32xf32>
    %cst_7 = arith.constant 0.000000e+00 : f32
    %9 = vector.broadcast %cst_7 : f32 to vector<256x32xf32>
    %10 = arith.maximumf %8, %9 : vector<256x32xf32>
    %11 = arith.truncf %10 : vector<256x32xf32> to vector<256x32xbf16>
    %c16 = arith.constant 16 : index
    %c0_8 = arith.constant 0 : index
    %12 = vector.load %arg11[%c16, %c0_8] : memref<288x32xbf16, #tpu.memory_space<vmem>>, vector<256x32xbf16>
    tpu.vector_store %arg11[%c16, %c0_8], %11 {strides = array<i32>} : memref<288x32xbf16, #tpu.memory_space<vmem>>, vector<256x32xbf16>,
    %cst_9 = arith.constant 0.000000e+00 : bf16
    %13 = vector.broadcast %cst_9 : bf16 to vector<16x32xbf16>
    %c0_10 = arith.constant 0 : index
    %c0_11 = arith.constant 0 : index
    %14 = vector.load %arg11[%c0_10, %c0_11] : memref<288x32xbf16, #tpu.memory_space<vmem>>, vector<16x32xbf16>
    tpu.vector_store %arg11[%c0_10, %c0_11], %13 {strides = array<i32>} : memref<288x32xbf16, #tpu.memory_space<vmem>>, vector<16x32xbf16>,
    %c272 = arith.constant 272 : index
    %c0_12 = arith.constant 0 : index
    %15 = vector.load %arg11[%c272, %c0_12] : memref<288x32xbf16, #tpu.memory_space<vmem>>, vector<16x32xbf16>
    tpu.vector_store %arg11[%c272, %c0_12], %13 {strides = array<i32>} : memref<288x32xbf16, #tpu.memory_space<vmem>>, vector<16x32xbf16>,
    %16 = tpu.iota {dimensions = array<i32: 0>} : vector<256x1xi32>
    %c16_i32 = arith.constant 16 : i32
    %c0_i32 = arith.constant 0 : i32
    %17 = arith.cmpi eq, %c16_i32, %c0_i32 : i32
    %c1_i32 = arith.constant 1 : i32
    %18 = arith.select %17, %c1_i32, %c16_i32 : i32
    %19 = vector.broadcast %18 : i32 to vector<256x1xi32>
    %20 = arith.remsi %16, %19 : vector<256x1xi32>
    %c0_i32_13 = arith.constant 0 : i32
    %21 = vector.broadcast %c0_i32_13 : i32 to vector<256x1xi32>
    %22 = arith.cmpi ne, %20, %21 : vector<256x1xi32>
    %c0_i32_14 = arith.constant 0 : i32
    %23 = vector.broadcast %c0_i32_14 : i32 to vector<256x1xi32>
    %24 = arith.cmpi slt, %20, %23 : vector<256x1xi32>
    %c0_i32_15 = arith.constant 0 : i32
    %25 = arith.cmpi slt, %18, %c0_i32_15 : i32
    %26 = vector.broadcast %25 : i1 to vector<256x1xi1>
    %27 = vector.broadcast %26 : vector<256x1xi1> to vector<256x1xi1>
    %28 = arith.xori %24, %27 : vector<256x1xi1>
    %29 = arith.andi %28, %22 : vector<256x1xi1>
    %30 = vector.broadcast %18 : i32 to vector<256x1xi32>
    %31 = arith.addi %20, %30 : vector<256x1xi32>
    %32 = arith.select %29, %31, %20 : vector<256x1xi1>, vector<256x1xi32>
    %c0_i32_16 = arith.constant 0 : i32
    %33 = vector.broadcast %c0_i32_16 : i32 to vector<256x1xi32>
    %34 = arith.cmpi eq, %32, %33 : vector<256x1xi32>
    %c15_i32 = arith.constant 15 : i32
    %35 = vector.broadcast %c15_i32 : i32 to vector<256x1xi32>
    %36 = arith.cmpi eq, %32, %35 : vector<256x1xi32>
    %cst_17 = arith.constant 0.000000e+00 : f32
    %37 = vector.broadcast %cst_17 : f32 to vector<256x32xf32>
    %c0_18 = arith.constant 0 : index
    %c0_19 = arith.constant 0 : index
    %38 = vector.load %arg11[%c0_18, %c0_19] : memref<288x32xbf16, #tpu.memory_space<vmem>>, vector<256x32xbf16>
    %c1 = arith.constant 1 : index
    %c0_20 = arith.constant 0 : index
    %c0_21 = arith.constant 0 : index
    %39 = vector.load %arg6[%c1, %c0_20, %c0_21] : memref<9x32x32xbf16, #tpu.memory_space<vmem>>, vector<1x32x32xbf16>
    %40 = vector.shape_cast %39 : vector<1x32x32xbf16> to vector<32x32xbf16>
    %cst_22 = arith.constant dense<0.000000e+00> : vector<256x32xf32>
    %41 = tpu.matmul %38, %40, %cst_22 {dimension_numbers = #tpu.dot_dimension_numbers<[1], [0], [0], [1], [0, 0, 1, 1], [], []>} : vector<256x32xbf16>, vector<32x32xbf16>, vector<256x32xf32> -> vector<256x32xf32>
    %42 = arith.addf %37, %41 : vector<256x32xf32>
    %c0_23 = arith.constant 0 : index
    %c0_24 = arith.constant 0 : index
    %c0_25 = arith.constant 0 : index
    %43 = vector.load %arg6[%c0_23, %c0_24, %c0_25] : memref<9x32x32xbf16, #tpu.memory_space<vmem>>, vector<1x32x32xbf16>
    %44 = vector.shape_cast %43 : vector<1x32x32xbf16> to vector<32x32xbf16>
    %cst_26 = arith.constant dense<0.000000e+00> : vector<256x32xf32>
    %45 = tpu.matmul %38, %44, %cst_26 {dimension_numbers = #tpu.dot_dimension_numbers<[1], [0], [0], [1], [0, 0, 1, 1], [], []>} : vector<256x32xbf16>, vector<32x32xbf16>, vector<256x32xf32> -> vector<256x32xf32>
    %c1_i32_27 = arith.constant 1 : i32
    %46 = tpu.dynamic_rotate %45 by %c1_i32_27 dim 0 : vector<256x32xf32>, i32 -> vector<256x32xf32>
    %cst_28 = arith.constant 0.000000e+00 : f32
    %47 = vector.shape_cast %34 : vector<256x1xi1> to vector<256x1xi1>
    %48 = vector.broadcast %47 : vector<256x1xi1> to vector<256x32xi1>
    %49 = vector.broadcast %cst_28 : f32 to vector<256x32xf32>
    %50 = arith.select %48, %49, %46 : vector<256x32xi1>, vector<256x32xf32>
    %51 = arith.addf %42, %50 : vector<256x32xf32>
    %c2 = arith.constant 2 : index
    %c0_29 = arith.constant 0 : index
    %c0_30 = arith.constant 0 : index
    %52 = vector.load %arg6[%c2, %c0_29, %c0_30] : memref<9x32x32xbf16, #tpu.memory_space<vmem>>, vector<1x32x32xbf16>
    %53 = vector.shape_cast %52 : vector<1x32x32xbf16> to vector<32x32xbf16>
    %cst_31 = arith.constant dense<0.000000e+00> : vector<256x32xf32>
    %54 = tpu.matmul %38, %53, %cst_31 {dimension_numbers = #tpu.dot_dimension_numbers<[1], [0], [0], [1], [0, 0, 1, 1], [], []>} : vector<256x32xbf16>, vector<32x32xbf16>, vector<256x32xf32> -> vector<256x32xf32>
    %c255_i32 = arith.constant 255 : i32
    %55 = tpu.dynamic_rotate %54 by %c255_i32 dim 0 : vector<256x32xf32>, i32 -> vector<256x32xf32>
    %cst_32 = arith.constant 0.000000e+00 : f32
    %56 = vector.shape_cast %36 : vector<256x1xi1> to vector<256x1xi1>
    %57 = vector.broadcast %56 : vector<256x1xi1> to vector<256x32xi1>
    %58 = vector.broadcast %cst_32 : f32 to vector<256x32xf32>
    %59 = arith.select %57, %58, %55 : vector<256x32xi1>, vector<256x32xf32>
    %60 = arith.addf %51, %59 : vector<256x32xf32>
    %c16_33 = arith.constant 16 : index
    %c0_34 = arith.constant 0 : index
    %61 = vector.load %arg11[%c16_33, %c0_34] : memref<288x32xbf16, #tpu.memory_space<vmem>>, vector<256x32xbf16>
    %c4 = arith.constant 4 : index
    %c0_35 = arith.constant 0 : index
    %c0_36 = arith.constant 0 : index
    %62 = vector.load %arg6[%c4, %c0_35, %c0_36] : memref<9x32x32xbf16, #tpu.memory_space<vmem>>, vector<1x32x32xbf16>
    %63 = vector.shape_cast %62 : vector<1x32x32xbf16> to vector<32x32xbf16>
    %cst_37 = arith.constant dense<0.000000e+00> : vector<256x32xf32>
    %64 = tpu.matmul %61, %63, %cst_37 {dimension_numbers = #tpu.dot_dimension_numbers<[1], [0], [0], [1], [0, 0, 1, 1], [], []>} : vector<256x32xbf16>, vector<32x32xbf16>, vector<256x32xf32> -> vector<256x32xf32>
    %65 = arith.addf %60, %64 : vector<256x32xf32>
    %c3 = arith.constant 3 : index
    %c0_38 = arith.constant 0 : index
    %c0_39 = arith.constant 0 : index
    %66 = vector.load %arg6[%c3, %c0_38, %c0_39] : memref<9x32x32xbf16, #tpu.memory_space<vmem>>, vector<1x32x32xbf16>
    %67 = vector.shape_cast %66 : vector<1x32x32xbf16> to vector<32x32xbf16>
    %cst_40 = arith.constant dense<0.000000e+00> : vector<256x32xf32>
    %68 = tpu.matmul %61, %67, %cst_40 {dimension_numbers = #tpu.dot_dimension_numbers<[1], [0], [0], [1], [0, 0, 1, 1], [], []>} : vector<256x32xbf16>, vector<32x32xbf16>, vector<256x32xf32> -> vector<256x32xf32>
    %c1_i32_41 = arith.constant 1 : i32
    %69 = tpu.dynamic_rotate %68 by %c1_i32_41 dim 0 : vector<256x32xf32>, i32 -> vector<256x32xf32>
    %cst_42 = arith.constant 0.000000e+00 : f32
    %70 = vector.shape_cast %34 : vector<256x1xi1> to vector<256x1xi1>
    %71 = vector.broadcast %70 : vector<256x1xi1> to vector<256x32xi1>
    %72 = vector.broadcast %cst_42 : f32 to vector<256x32xf32>
    %73 = arith.select %71, %72, %69 : vector<256x32xi1>, vector<256x32xf32>
    %74 = arith.addf %65, %73 : vector<256x32xf32>
    %c5 = arith.constant 5 : index
    %c0_43 = arith.constant 0 : index
    %c0_44 = arith.constant 0 : index
    %75 = vector.load %arg6[%c5, %c0_43, %c0_44] : memref<9x32x32xbf16, #tpu.memory_space<vmem>>, vector<1x32x32xbf16>
    %76 = vector.shape_cast %75 : vector<1x32x32xbf16> to vector<32x32xbf16>
    %cst_45 = arith.constant dense<0.000000e+00> : vector<256x32xf32>
    %77 = tpu.matmul %61, %76, %cst_45 {dimension_numbers = #tpu.dot_dimension_numbers<[1], [0], [0], [1], [0, 0, 1, 1], [], []>} : vector<256x32xbf16>, vector<32x32xbf16>, vector<256x32xf32> -> vector<256x32xf32>
    %c255_i32_46 = arith.constant 255 : i32
    %78 = tpu.dynamic_rotate %77 by %c255_i32_46 dim 0 : vector<256x32xf32>, i32 -> vector<256x32xf32>
    %cst_47 = arith.constant 0.000000e+00 : f32
    %79 = vector.shape_cast %36 : vector<256x1xi1> to vector<256x1xi1>
    %80 = vector.broadcast %79 : vector<256x1xi1> to vector<256x32xi1>
    %81 = vector.broadcast %cst_47 : f32 to vector<256x32xf32>
    %82 = arith.select %80, %81, %78 : vector<256x32xi1>, vector<256x32xf32>
    %83 = arith.addf %74, %82 : vector<256x32xf32>
    %c32 = arith.constant 32 : index
    %c0_48 = arith.constant 0 : index
    %84 = vector.load %arg11[%c32, %c0_48] : memref<288x32xbf16, #tpu.memory_space<vmem>>, vector<256x32xbf16>
    %c7 = arith.constant 7 : index
    %c0_49 = arith.constant 0 : index
    %c0_50 = arith.constant 0 : index
    %85 = vector.load %arg6[%c7, %c0_49, %c0_50] : memref<9x32x32xbf16, #tpu.memory_space<vmem>>, vector<1x32x32xbf16>
    %86 = vector.shape_cast %85 : vector<1x32x32xbf16> to vector<32x32xbf16>
    %cst_51 = arith.constant dense<0.000000e+00> : vector<256x32xf32>
    %87 = tpu.matmul %84, %86, %cst_51 {dimension_numbers = #tpu.dot_dimension_numbers<[1], [0], [0], [1], [0, 0, 1, 1], [], []>} : vector<256x32xbf16>, vector<32x32xbf16>, vector<256x32xf32> -> vector<256x32xf32>
    %88 = arith.addf %83, %87 : vector<256x32xf32>
    %c6 = arith.constant 6 : index
    %c0_52 = arith.constant 0 : index
    %c0_53 = arith.constant 0 : index
    %89 = vector.load %arg6[%c6, %c0_52, %c0_53] : memref<9x32x32xbf16, #tpu.memory_space<vmem>>, vector<1x32x32xbf16>
    %90 = vector.shape_cast %89 : vector<1x32x32xbf16> to vector<32x32xbf16>
    %cst_54 = arith.constant dense<0.000000e+00> : vector<256x32xf32>
    %91 = tpu.matmul %84, %90, %cst_54 {dimension_numbers = #tpu.dot_dimension_numbers<[1], [0], [0], [1], [0, 0, 1, 1], [], []>} : vector<256x32xbf16>, vector<32x32xbf16>, vector<256x32xf32> -> vector<256x32xf32>
    %c1_i32_55 = arith.constant 1 : i32
    %92 = tpu.dynamic_rotate %91 by %c1_i32_55 dim 0 : vector<256x32xf32>, i32 -> vector<256x32xf32>
    %cst_56 = arith.constant 0.000000e+00 : f32
    %93 = vector.shape_cast %34 : vector<256x1xi1> to vector<256x1xi1>
    %94 = vector.broadcast %93 : vector<256x1xi1> to vector<256x32xi1>
    %95 = vector.broadcast %cst_56 : f32 to vector<256x32xf32>
    %96 = arith.select %94, %95, %92 : vector<256x32xi1>, vector<256x32xf32>
    %97 = arith.addf %88, %96 : vector<256x32xf32>
    %c8 = arith.constant 8 : index
    %c0_57 = arith.constant 0 : index
    %c0_58 = arith.constant 0 : index
    %98 = vector.load %arg6[%c8, %c0_57, %c0_58] : memref<9x32x32xbf16, #tpu.memory_space<vmem>>, vector<1x32x32xbf16>
    %99 = vector.shape_cast %98 : vector<1x32x32xbf16> to vector<32x32xbf16>
    %cst_59 = arith.constant dense<0.000000e+00> : vector<256x32xf32>
    %100 = tpu.matmul %84, %99, %cst_59 {dimension_numbers = #tpu.dot_dimension_numbers<[1], [0], [0], [1], [0, 0, 1, 1], [], []>} : vector<256x32xbf16>, vector<32x32xbf16>, vector<256x32xf32> -> vector<256x32xf32>
    %c255_i32_60 = arith.constant 255 : i32
    %101 = tpu.dynamic_rotate %100 by %c255_i32_60 dim 0 : vector<256x32xf32>, i32 -> vector<256x32xf32>
    %cst_61 = arith.constant 0.000000e+00 : f32
    %102 = vector.shape_cast %36 : vector<256x1xi1> to vector<256x1xi1>
    %103 = vector.broadcast %102 : vector<256x1xi1> to vector<256x32xi1>
    %104 = vector.broadcast %cst_61 : f32 to vector<256x32xf32>
    %105 = arith.select %103, %104, %101 : vector<256x32xi1>, vector<256x32xf32>
    %106 = arith.addf %97, %105 : vector<256x32xf32>
    %c0_62 = arith.constant 0 : index
    %c0_63 = arith.constant 0 : index
    %107 = vector.load %arg7[%c0_62, %c0_63] : memref<1x32xf32, #tpu.memory_space<vmem>>, vector<1x32xf32>
    %108 = vector.broadcast %107 : vector<1x32xf32> to vector<256x32xf32>
    %109 = arith.addf %106, %108 : vector<256x32xf32>
    %cst_64 = arith.constant 0.000000e+00 : f32
    %110 = vector.broadcast %cst_64 : f32 to vector<256x32xf32>
    %111 = arith.maximumf %109, %110 : vector<256x32xf32>
    %112 = arith.truncf %111 : vector<256x32xf32> to vector<256x32xbf16>
    %c0_65 = arith.constant 0 : index
    %c0_66 = arith.constant 0 : index
    %113 = vector.load %arg8[%c0_65, %c0_66] : memref<32x128xbf16, #tpu.memory_space<vmem>>, vector<32x128xbf16>
    %cst_67 = arith.constant dense<0.000000e+00> : vector<256x128xf32>
    %114 = tpu.matmul %112, %113, %cst_67 {dimension_numbers = #tpu.dot_dimension_numbers<[1], [0], [0], [1], [0, 0, 1, 1], [], []>} : vector<256x32xbf16>, vector<32x128xbf16>, vector<256x128xf32> -> vector<256x128xf32>
    %c0_68 = arith.constant 0 : index
    %c0_69 = arith.constant 0 : index
    %115 = vector.load %arg9[%c0_68, %c0_69] : memref<1x128xf32, #tpu.memory_space<vmem>>, vector<1x128xf32>
    %116 = vector.broadcast %115 : vector<1x128xf32> to vector<256x128xf32>
    %117 = arith.addf %114, %116 : vector<256x128xf32>
    %118 = arith.addf %117, %2 : vector<256x128xf32>
    %cst_70 = arith.constant 0.000000e+00 : f32
    %119 = vector.broadcast %cst_70 : f32 to vector<256x128xf32>
    %120 = arith.maximumf %118, %119 : vector<256x128xf32>
    %121 = vector.shape_cast %120 : vector<256x128xf32> to vector<16x16x128xf32>
    %c0_71 = arith.constant 0 : index
    %c0_72 = arith.constant 0 : index
    %c0_73 = arith.constant 0 : index
    %c0_74 = arith.constant 0 : index
    %122 = vector.load %arg10[%c0_71, %c0_72, %c0_73, %c0_74] : memref<1x16x16x128xf32, #tpu.memory_space<vmem>>, vector<1x16x16x128xf32>
    %123 = vector.shape_cast %122 : vector<1x16x16x128xf32> to vector<16x16x128xf32>
    %124 = vector.shape_cast %121 : vector<16x16x128xf32> to vector<1x16x16x128xf32>
    tpu.vector_store %arg10[%c0_71, %c0_72, %c0_73, %c0_74], %124 {strides = array<i32>} : memref<1x16x16x128xf32, #tpu.memory_space<vmem>>, vector<1x16x16x128xf32>,
    return
  }
  func.func @transform_0(%arg0: i32, %arg1: i32) -> (i32, i32, i32, i32) {
    %c0_i32 = arith.constant 0 : i32
    %c0_i32_0 = arith.constant 0 : i32
    %c0_i32_1 = arith.constant 0 : i32
    return %arg0, %arg1, %c0_i32, %c0_i32_0 : i32, i32, i32, i32
  }
  func.func @transform_2(%arg0: i32, %arg1: i32) -> (i32, i32) {
    %c0_i32 = arith.constant 0 : i32
    %c0_i32_0 = arith.constant 0 : i32
    %c0_i32_1 = arith.constant 0 : i32
    return %c0_i32, %c0_i32_0 : i32, i32
  }
  func.func @transform_3(%arg0: i32, %arg1: i32) -> (i32, i32) {
    %c0_i32 = arith.constant 0 : i32
    %c0_i32_0 = arith.constant 0 : i32
    %c0_i32_1 = arith.constant 0 : i32
    return %c0_i32, %c0_i32_0 : i32, i32
  }
  func.func @transform_4(%arg0: i32, %arg1: i32) -> (i32, i32, i32) {
    %c0_i32 = arith.constant 0 : i32
    %c0_i32_0 = arith.constant 0 : i32
    %c0_i32_1 = arith.constant 0 : i32
    %c0_i32_2 = arith.constant 0 : i32
    return %c0_i32, %c0_i32_0, %c0_i32_1 : i32, i32, i32
  }
  func.func @transform_5(%arg0: i32, %arg1: i32) -> (i32, i32) {
    %c0_i32 = arith.constant 0 : i32
    %c0_i32_0 = arith.constant 0 : i32
    %c0_i32_1 = arith.constant 0 : i32
    return %c0_i32, %c0_i32_0 : i32, i32
  }
  func.func @transform_6(%arg0: i32, %arg1: i32) -> (i32, i32) {
    %c0_i32 = arith.constant 0 : i32
    %c0_i32_0 = arith.constant 0 : i32
    %c0_i32_1 = arith.constant 0 : i32
    return %c0_i32, %c0_i32_0 : i32, i32
  }
  func.func @transform_7(%arg0: i32, %arg1: i32) -> (i32, i32) {
    %c0_i32 = arith.constant 0 : i32
    %c0_i32_0 = arith.constant 0 : i32
    %c0_i32_1 = arith.constant 0 : i32
    return %c0_i32, %c0_i32_0 : i32, i32
  }
  func.func @transform_8(%arg0: i32, %arg1: i32) -> (i32, i32, i32, i32) {
    %c0_i32 = arith.constant 0 : i32
    %c0_i32_0 = arith.constant 0 : i32
    %c0_i32_1 = arith.constant 0 : i32
    return %arg0, %arg1, %c0_i32, %c0_i32_0 : i32, i32, i32, i32
  }
}

</mosaic_0001>

<bundles_post_ra>
// kernel: tpu_custom_call.1
= control target key start
LH: loop header
LB: loop body
LE: loop exit
PB: predicated region body
PF: predicated region fallthrough
CT: control target
= control target key end

     0   :  { %s8053_s0 = inlined_call_operand.hbm [shape: f32[2,16,16,128], index: 0, kind: input, shape index: {}]   ;;  %s8054_s1 = inlined_call_operand.hbm [shape: f32[32,16,128], index: 1, kind: input, shape index: {}]   ;;  %s8055_s2 = inlined_call_operand.vmem [shape: bf16[128,32], index: 2, kind: input, shape index: {}]   ;;  %s8056_s3 = inlined_call_operand.vmem [shape: f32[1,32], index: 3, kind: input, shape index: {}]   ;;  %s8057_s4 = inlined_call_operand.hbm [shape: bf16[9,32,32], index: 4, kind: input, shape index: {}]   ;;  %s8058_s5 = inlined_call_operand.vmem [shape: f32[1,32], index: 5, kind: input, shape index: {}]   ;;  %s8059_s6 = inlined_call_operand.vmem [shape: bf16[32,128], index: 6, kind: input, shape index: {}]   ;;  %s8060_s7 = inlined_call_operand.vmem [shape: f32[1,128], index: 7, kind: input, shape index: {}]   ;;  %s8061_s8 = inlined_call_operand.hbm [shape: f32[2,16,16,128], index: 8, kind: output, shape index: {}]  }
   0x1   :  { %8168 = sst [smem:[#allocation94_spill]] %s8057_s4 }
   0x2   :  { %13 = vsyncpa [#allocation6], 0 }
   0x3   :  { %15 = vsyncpa [#allocation6 + $0x1], 0 }
   0x4   :  { %16 = vsyncpa [#allocation9], 0 }
   0x5   :  { %17 = vsyncpa [#allocation7], 0 }
   0x6   :  { %19 = vsyncpa [#allocation7 + $0x1], 0  ;;  %s5792_s26 = smov 0   ;;  %s5794_s27 = smov 0  }
   0x7   :  { %s5796_s28 = smov 0   ;;  %s5798_s29 = smov 0  }
   0x8   :  { %s5800_s30 = smov 0   ;;  %s5802_s9 = smov 0  }
   0x9 LB: > { %s4428_s10 = sadd.s32 4294967295, %s5735_s9   ;;  %s4429_s11 = sadd.s32 4294967294, %s5735_s9   ;;  %s5735_s9 = sphi %s5802_s9, %s25_s9   ;;  %s5731_s30 = sphi %s5800_s30, %s8666_s30   ;;  %s5727_s29 = sphi %s5798_s29, %s8665_s29   ;;  %s5723_s28 = sphi %s5796_s28, %s8664_s28   ;;  %s5719_s27 = sphi %s5794_s27, %s8663_s27   ;;  %s5715_s26 = sphi %s5792_s26, %s8662_s26  }
   0xa   : > { %p59_p0 = scmp.ne.s32.totalorder %s5719_s27, %s5715_s26  ;;  %p5826_p1 = scmp.eq.s32.totalorder %s4428_s10, 0 }
   0xb   : > { %p5830_p2 = scmp.eq.s32.totalorder %s4428_s10, 1  ;;  %p217_p3 = scmp.eq.s32.totalorder %s4429_s11, 1 }
   0xc   : > { %s8169_s12 = scalar_select %p5826_p1, 1, 0 }
   0xd   : > { %s8170_s13 = scalar_select %p5830_p2, 1, 0 }
   0xe   : > { %p5836_p4 = por %p5826_p1, %p59_p0  ;;  %p4430_p5 = scmp.ge.s32.totalorder %s5735_s9, 1 }
   0xf   : > { %p5841_p6 = por %p217_p3, %p59_p0  ;;  %p224_p7 = scmp.lt.s32.totalorder %s5735_s9, 3 }
  0x10   : > { %s8171_s14 = scalar_select %p5836_p4, 1, 0 }
  0x11   : > { %s8172_s15 = scalar_select %p5841_p6, 1, 0 }
  0x12   : > { %p5846_p8 = pnand %p4430_p5, %p224_p7  ;;  %s5737_s17 = smov [#allocation8]  }
  0x13   : > { %s242_s18 = sshll.u32 %s5737_s17, 4  ;;  %s37_s20 = sadd.s32 1, %s5731_s30  ;;  %s243_s18 = int_to_ptr.vmem [resolvable:$true] %s242_s18 }
  0x14   : > { %s8173_s16 = scalar_select %p5846_p8, 1, 0 }
  0x15   : > { %p5456_p9 = pneg %p5846_p8  ;;  %s8175_s4 = sld [smem:[#allocation94_spill]] }
  0x17   : > { %p5855_p11 = pnand %p5456_p9, %p5826_p1 }
  0x19   : > { %p5593_p13 = pneg %p5855_p11 }
  0x1b   : > { %s5591_s23 = scalar_lea.hbm %s8175_s4, 2304 }
  0x1c   : > { %p5592_p12 = scmp.ne.s32.totalorder %s8175_s4, %s5591_s23  ;;  %p5598_p5 = scmp.lt.u32.totalorder %s5591_s23, %s8175_s4 }
  0x1e   : > { %p5594_p0 = pnand %p5593_p13, %p5592_p12 }
  0x20   : > { %p5595_p3 = pneg %p5594_p0 }
  0x22   : > { %p5600_p7 = pnand %p5598_p5, %p5595_p3 }
  0x24   : > { %5603 = shalt.err (!%p5600_p7)
}
  0x25   : > { %s5604_s11 = scalar_lea.vmem %s243_s18, 2304  ;;  %p5612_p1 = scmp.lt.s32.totalorder %s243_s18, %s243_s18 }
  0x26   : > { %p5605_p9 = scmp.ne.s32.totalorder %s243_s18, %s5604_s11  ;;  %p5613_p4 = scmp.lt.s32.totalorder %s5604_s11, %s5604_s11 }
  0x28   : > { %p5607_p10 = pnand %p5605_p9, %p5593_p13  ;;  %p5614_p8 = por %p5613_p4, %p5612_p1 }
  0x2a   : > { %p5608_p6 = pneg %p5607_p10 }
  0x2c   : > { %p5615_p2 = pnand %p5614_p8, %p5608_p6 }
  0x2e   : > { %5618 = shalt.err (!%p5615_p2)
}
  0x2f   : > { %s5738_s17 = smov 64   ;;  %s5739_s21 = smov 4  }
  0x30   : > { %5459 = dma.hbm_to_vmem [thread:$0]  (!%p5855_p11), %s8175_s4, 2304, %s243_s18, [#allocation9], %s5738_s17, %s5738_s17, %s5739_s21  }
  0x31   : > { %p39_p1 = scmp.ge.s32.totalorder %s37_s20, 2  ;;  %s46_s24 = sadd.s32 1, %s5723_s28 }
  0x32   : > { %p53_p2 = scmp.ne.s32.totalorder %s5723_s28, %s5719_s27  ;;  %p54_p4 = scmp.eq.s32.totalorder %s5735_s9, 0 }
  0x33   : > { %s8668_s20 = smov (%p39_p1, %s37_s20), 0  ;;  %p8177_p8 = scmp.ne.s32.totalorder %s8170_s13, 0 }
  0x34   : > { %p5882_p6 = por %p54_p4, %p53_p2  ;;  %s41_s19 = ssub.s32 %s5731_s30, %s8668_s20 }
  0x35   : > { %p5888_p10 = por %p8177_p8, %p53_p2  ;;  %p5469_p12 = scmp.lt.s32.totalorder %s5735_s9, 2 }
  0x36   : > { %p44_p11 = scmp.eq.s32.totalorder %s41_s19, 0  ;;  %s265_s18 = sand.u32 1, %s5723_s28  }
  0x37   : > { %s4433_s10 = sshll.u32 %s265_s18, 8  ;;  %s4638_s17 = sshll.u32 %s5731_s30, 12 }
  0x38   : > { %s5897_s11 = scalar_select %p44_p11, %s5723_s28, %s46_s24  }
  0x39   : > { %s5903_s23 = scalar_lea.hbm %s8053_s0, %s4638_s17  ;;  %s269_s13 = scalar_lea.vmem [#allocation5], %s4433_s10 }
  0x3a   : > { %s279_s4 = sshll.u32 %s269_s13, 4  ;;  %p5909_p13 = pnand %p5469_p12, %p5882_p6  ;;  %s5905_s4 = int_to_ptr.vmem [resolvable:$true] %s279_s4 }
  0x3b   : > { %s5913_s24 = scalar_lea.sflag [#allocation6], %s265_s18  ;;  %s5619_s21 = scalar_lea.hbm %s5903_s23, 4096 }
  0x3c   : > { %p5620_p0 = scmp.ne.s32.totalorder %s5903_s23, %s5619_s21  ;;  %p5621_p3 = pneg %p5909_p13 }
  0x3d   : > { %s5624_s25 = scalar_lea.hbm %s8053_s0, 8192  ;;  %p5625_p9 = scmp.lt.u32.totalorder %s5903_s23, %s8053_s0 }
  0x3e   : > { %p5622_p5 = pnand %p5621_p3, %p5620_p0  ;;  %p5626_p1 = scmp.lt.u32.totalorder %s5624_s25, %s5619_s21 }
  0x3f   : > { %p5628_p4 = scmp.lt.u32.totalorder %s5619_s21, %s5903_s23 }
  0x40   : > { %p5623_p7 = pneg %p5622_p5  ;;  %p5627_p2 = por %p5626_p1, %p5625_p9 }
  0x42   : > { %p5629_p6 = por %p5628_p4, %p5627_p2 }
  0x44   : > { %p5630_p8 = pnand %p5629_p6, %p5623_p7 }
  0x46   : > { %5633 = shalt.err (!%p5630_p8)
}
  0x47   : > { %s5634_s18 = scalar_lea.vmem %s5905_s4, 4096  ;;  %s5740_s10 = smov [#allocation5]  }
  0x48   : > { %p5635_p12 = scmp.ne.s32.totalorder %s5905_s4, %s5634_s18  ;;  %s5639_s17 = sshll.u32 %s5740_s10, 4  ;;  %s5640_s17 = int_to_ptr.vmem [resolvable:$false] %s5639_s17 }
  0x49   : > { %s5641_s22 = scalar_lea.vmem %s5640_s17, 8192  ;;  %p5642_p5 = scmp.lt.s32.totalorder %s5905_s4, %s5640_s17 }
  0x4a   : > { %p5637_p11 = pnand %p5635_p12, %p5621_p3  ;;  %p5643_p9 = scmp.lt.s32.totalorder %s5641_s22, %s5634_s18 }
  0x4c   : > { %p5638_p0 = pneg %p5637_p11  ;;  %p5644_p1 = por %p5643_p9, %p5642_p5 }
  0x4e   : > { %p5645_p2 = pnand %p5644_p1, %p5638_p0 }
  0x50   : > { %5648 = shalt.err (!%p5645_p2)
}
  0x51   : > { %s5741_s21 = smov 128   ;;  %s5742_s25 = smov 8  }
  0x52   : > { %5463 = dma.hbm_to_vmem [thread:$0]  (!%p5909_p13), %s5903_s23, 4096, %s5905_s4, %s5913_s24, %s5741_s21, %s5741_s21, %s5742_s25  }
  0x53   : > { %p8180_p3 = scmp.ne.s32.totalorder %s8173_s16, 0 }
  0x55   : > { %291 = sbr.rel (%p8180_p3) target bundleno = 1152 (0x480), region = 48 }
  0x5c   : > { %s5944_s13 = sand.u32 1, %s5719_s27   ;;  %p8181_p7 = scmp.ne.s32.totalorder %s8171_s14, 0 }
  0x5d   : > { %s4437_s18 = sshll.u32 %s5944_s13, 8  ;;  %s294_s10 = scalar_lea.sflag [#allocation6], %s5944_s13 }
  0x5e   : > { %s5950_s17 = scalar_lea.vmem [#allocation5], %s4437_s18 }
  0x5f   : > { %5702 = dma.done.wait (%p8181_p7), %s294_s10, 4096  }
  0x60   : > { %5704 = vsyncadd (%p8181_p7), %s294_s10, 4294963200  ;;  %p8182_p13 = scmp.ne.s32.totalorder %s8169_s12, 0 }
  0x62   : > { %5706 = dma.done.wait (%p8182_p13), [#allocation9], 2304  }
  0x63   : > { %5708 = vsyncadd (%p8182_p13), [#allocation9], 4294964992  ;;  %v5528_v0 = vld [vmem:[%s8055_s2] sm:$0xff]   ;;  %v5529_v1 = vld [vmem:[%s8055_s2 + $0x8] sm:$0xff]   ;;  %vm8081_vm0 = vcmask 261120   ;;  %v5743_v57 = vmov 0  }
  0x64   : > { %4844 = vmatprep.subr.bf16.mxu0 %v5528_v0  ;;  %v5530_v2 = vld [vmem:[%s8055_s2 + $0x10] sm:$0xff]   ;;  %v5531_v3 = vld [vmem:[%s8055_s2 + $0x18] sm:$0xff]   ;;  %v5532_v7 = vld [vmem:[%s8055_s2 + $0x20] sm:$0xff]   ;;  %680 = vst.msk [vmem:[#allocation2] sm:$0xff] %vm8081_vm0, %v5743_v57  ;;  %s7907_s14 = scalar_lea.vmem [#allocation10], %s4437_s18  ;;  %s4639_s18 = sshll.u32 %s5727_s29, 12 }
  0x65   : > { %4845 = vmatpush3.bf16.msra.mxu0 %v5528_v0  ;;  %v335_v4 = vld [vmem:[%s5950_s17] sm:$0xff]  ;;  %v336_v5 = vld [vmem:[%s5950_s17 + $0x8] sm:$0xff]  ;;  %v5533_v8 = vld [vmem:[%s8055_s2 + $0x28] sm:$0xff]   ;;  %681 = vst.msk [vmem:[#allocation2 + $0x88] sm:$0xff] %vm8081_vm0, %v5743_v57  ;;  %s4318_s24 = sshll.u32 %s7907_s14, 4  ;;  %s7999_s21 = scalar_lea.hbm %s8061_s8, %s4639_s18  ;;  %s8001_s24 = int_to_ptr.vmem [resolvable:$true] %s4318_s24 }
  0x66   : > { %4846 = vmatprep.subr.bf16.mxu0 %v5529_v1  ;;  %v367_v6 = vpack.c.bf16 %v336_v5, %v335_v4  ;;  %v5534_v9 = vld [vmem:[%s8055_s2 + $0x30] sm:$0xff]   ;;  %v5535_v11 = vld [vmem:[%s8055_s2 + $0x38] sm:$0xff]   ;;  %v337_v12 = vld [vmem:[%s5950_s17 + $0x10] sm:$0xff]  ;;  %s4302_s29 = scalar_lea.sflag [#allocation7], %s5944_s13  ;;  %s5649_s25 = scalar_lea.vmem %s8001_s24, 4096 }
  0x67   : > { %v5536_v10 = vld [vmem:[#allocation8] sm:$0xff]   ;;  %v338_v13 = vld [vmem:[%s5950_s17 + $0x18] sm:$0xff]  ;;  %v340_v15 = vld [vmem:[%s5950_s17 + $0x28] sm:$0xff]  ;;  %p5650_p4 = scmp.ne.s32.totalorder %s8001_s24, %s5649_s25 }
  0x68   : > { %4860 = vmatprep.mubr.bf16.mxu0 %v367_v6  ;;  %5252 = vmatprep.subr.bf16.mxu1 %v5536_v10  ;;  %v339_v14 = vld [vmem:[%s5950_s17 + $0x20] sm:$0xff]  ;;  %v368_v16 = vpack.c.bf16 %v338_v13, %v337_v12  ;;  %v341_v18 = vld [vmem:[%s5950_s17 + $0x30] sm:$0xff]  ;;  %v342_v19 = vld [vmem:[%s5950_s17 + $0x38] sm:$0xff] }
  0x69   : > { %4847 = vmatpush3.bf16.msra.mxu0 %v5529_v1  ;;  %5254 = vmatpush3.bf16.msra.mxu1 %v5536_v10  ;;  %v369_v17 = vpack.c.bf16 %v340_v15, %v339_v14  ;;  %v343_v20 = vld [vmem:[%s5950_s17 + $0x40] sm:$0xff]  ;;  %v344_v21 = vld [vmem:[%s5950_s17 + $0x48] sm:$0xff]  ;;  %v370_v22 = vpack.c.bf16 %v342_v19, %v341_v18  ;;  %v345_v24 = vld [vmem:[%s5950_s17 + $0x50] sm:$0xff]  ;;  %p5651_p6 = pnand %p5650_p4, %p5888_p10 }
  0x6a   : > { %4848 = vmatprep.subr.bf16.mxu0 %v5530_v2  ;;  %v371_v23 = vpack.c.bf16 %v344_v21, %v343_v20  ;;  %v346_v25 = vld [vmem:[%s5950_s17 + $0x58] sm:$0xff]  ;;  %v347_v26 = vld [vmem:[%s5950_s17 + $0x60] sm:$0xff]  ;;  %v348_v27 = vld [vmem:[%s5950_s17 + $0x68] sm:$0xff] }
  0x6b   : > { %v372_v28 = vpack.c.bf16 %v346_v25, %v345_v24  ;;  %v373_v29 = vpack.c.bf16 %v348_v27, %v347_v26  ;;  %v349_v30 = vld [vmem:[%s5950_s17 + $0x70] sm:$0xff]  ;;  %v350_v31 = vld [vmem:[%s5950_s17 + $0x78] sm:$0xff]  ;;  %v351_v32 = vld [vmem:[%s5950_s17 + $0x80] sm:$0xff]  ;;  %p5652_p8 = pneg %p5651_p6 }
  0x6c   : > { %v352_v33 = vld [vmem:[%s5950_s17 + $0x88] sm:$0xff]  ;;  %v374_v34 = vpack.c.bf16 %v350_v31, %v349_v30  ;;  %v353_v36 = vld [vmem:[%s5950_s17 + $0x90] sm:$0xff]  ;;  %v354_v37 = vld [vmem:[%s5950_s17 + $0x98] sm:$0xff] }
  0x6d   : > { %4849 = vmatpush3.bf16.msra.mxu0 %v5530_v2  ;;  %v375_v35 = vpack.c.bf16 %v352_v33, %v351_v32  ;;  %v355_v38 = vld [vmem:[%s5950_s17 + $0xa0] sm:$0xff]  ;;  %v356_v39 = vld [vmem:[%s5950_s17 + $0xa8] sm:$0xff]  ;;  %v376_v40 = vpack.c.bf16 %v354_v37, %v353_v36  ;;  %v357_v42 = vld [vmem:[%s5950_s17 + $0xb0] sm:$0xff] }
  0x6e   : > { %4850 = vmatprep.subr.bf16.mxu0 %v5531_v3  ;;  %v377_v41 = vpack.c.bf16 %v356_v39, %v355_v38  ;;  %v358_v43 = vld [vmem:[%s5950_s17 + $0xb8] sm:$0xff]  ;;  %v359_v44 = vld [vmem:[%s5950_s17 + $0xc0] sm:$0xff]  ;;  %v360_v45 = vld [vmem:[%s5950_s17 + $0xc8] sm:$0xff] }
  0x6f   : > { %v378_v46 = vpack.c.bf16 %v358_v43, %v357_v42  ;;  %v379_v47 = vpack.c.bf16 %v360_v45, %v359_v44  ;;  %v361_v48 = vld [vmem:[%s5950_s17 + $0xd0] sm:$0xff]  ;;  %v362_v49 = vld [vmem:[%s5950_s17 + $0xd8] sm:$0xff]  ;;  %v363_v50 = vld [vmem:[%s5950_s17 + $0xe0] sm:$0xff] }
  0x70   : > { %v364_v51 = vld [vmem:[%s5950_s17 + $0xe8] sm:$0xff]  ;;  %v380_v52 = vpack.c.bf16 %v362_v49, %v361_v48  ;;  %v365_v54 = vld [vmem:[%s5950_s17 + $0xf0] sm:$0xff]  ;;  %v366_v55 = vld [vmem:[%s5950_s17 + $0xf8] sm:$0xff] }
  0x71   : > { %4851 = vmatpush3.bf16.msra.mxu0 %v5531_v3  ;;  %v381_v53 = vpack.c.bf16 %v364_v51, %v363_v50  ;;  %v382_v56 = vpack.c.bf16 %v366_v55, %v365_v54  ;;  %v5537_v58 = vld [vmem:[#allocation8 + $0x8] sm:$0xff]   ;;  %v6018_v59 = vld [vmem:[#allocation2] sm:$0xff]  ;;  %v5538_v60 = vld [vmem:[#allocation8 + $0x20] sm:$0xff]  }
  0x72   : > { %4852 = vmatprep.subr.bf16.mxu0 %v5532_v7  ;;  %5253 = vmatprep.subr.bf16.mxu1 %v5537_v58  ;;  %v6022_v61 = vld [vmem:[#allocation8 + $0x10] sm:$0xff]  }
  0x73   : > { %5255 = vmatpush3.bf16.msra.mxu1 %v5537_v58  ;;  %v6028_v62 = vld [vmem:[%s8056_s3] ss:$0 sm:$0xff] }
  0x74   : > { %4928 = vmatprep.subr.bf16.mxu1 %v6022_v61  ;;  %v5542_v38 = vld [vmem:[#allocation8 + $0x30] sm:$0xff]  }
  0x75   : > { %4853 = vmatpush3.bf16.msra.mxu0 %v5532_v7 }
  0x76   : > { %4854 = vmatprep.subr.bf16.mxu0 %v5533_v8 }
  0x79   : > { %4855 = vmatpush3.bf16.msra.mxu0 %v5533_v8 }
  0x7a   : > { %4856 = vmatprep.subr.bf16.mxu0 %v5534_v9 }
  0x7d   : > { %4857 = vmatpush3.bf16.msra.mxu0 %v5534_v9 }
  0x7e   : > { %4858 = vmatprep.subr.bf16.mxu0 %v5535_v11 }
  0x81   : > { %4859 = vmatpush3.bf16.msra.mxu0 %v5535_v11 }
  0x82   : > { %4892 = vmatprep.subr.bf16.mxu0 %v5536_v10 }
  0x84   : > { %4861 = vmatmul.mubr.bf16.vlgmr.msra.gmra.mrb[0].mxu0 %v368_v16 }
  0x85   : > { %4864 = vmatprep.mubr.bf16.mxu0 %v369_v17  ;;  %4893 = vmatpush3.bf16.msra.mxu0 %v5536_v10 }
  0x86   : > { %4894 = vmatprep.subr.bf16.mxu0 %v5537_v58 }
  0x89   : > { %4895 = vmatpush3.bf16.msra.mxu0 %v5537_v58 }
  0x8a   : > { %4964 = vmatprep.subr.bf16.mxu0 %v5538_v60 }
  0x8c   : > { %4865 = vmatmul.mubr.bf16.gmra.mrb[4].mxu0 %v370_v22 }
  0x8d   : > { %4868 = vmatprep.mubr.bf16.mxu0 %v371_v23 }
  0x94   : > { %4869 = vmatmul.mubr.bf16.gmra.mrb[8].mxu0 %v372_v28  ;;  %v5539_v28 = vld [vmem:[#allocation8 + $0x28] sm:$0xff]  }
  0x95   : > { %4872 = vmatprep.mubr.bf16.mxu0 %v373_v29 }
  0x9c   : > { %4873 = vmatmul.mubr.bf16.gmra.mrb[12].mxu0 %v374_v34 }
  0x9d   : > { %4876 = vmatprep.mubr.bf16.mxu0 %v375_v35 }
  0xa4   : > { %4877 = vmatmul.mubr.bf16.gmra.mrb[16].mxu0 %v376_v40 }
  0xa5   : > { %4880 = vmatprep.mubr.bf16.mxu0 %v377_v41 }
  0xac   : > { %4881 = vmatmul.mubr.bf16.gmra.mrb[20].mxu0 %v378_v46 }
  0xad   : > { %4884 = vmatprep.mubr.bf16.mxu0 %v379_v47 }
  0xb4   : > { %4885 = vmatmul.mubr.bf16.gmra.mrb[24].mxu0 %v380_v52 }
  0xb5   : > { %4888 = vmatprep.mubr.bf16.mxu0 %v381_v53 }
  0xbc   : > { %4889 = vmatmul.mubr.bf16.gmra.mrb[28].mxu0 %v382_v56 }
  0xbd   : > { %4896 = vmatprep.mubr.msk.bf16.mxu0 %vm8081_vm0, %v6018_v59 }
 0x157   : > { %v4862_v63 = vpop.f32.mrb[0].mxu0 }
 0x158   : > { %v497_v0 = vadd.f32 %v4862_v63, %v6028_v62  ;;  %v488_v1 = vpop.f32.mrb[1].mxu0 }
 0x159   : > { %v489_v2 = vadd.f32 %v6028_v62, %v488_v1  ;;  %v4863_v3 = vpop.f32.mrb[2].mxu0  ;;  %v5541_v1 = vld [vmem:[#allocation8 + $0x18] sm:$0xff]  }
 0x15a   : > { %v500_v4 = vadd.f32 %v4863_v3, %v6028_v62  ;;  %v491_v5 = vpop.f32.mrb[3].mxu0  ;;  %v617_v7 = vmax.f32 %v497_v0, 0.0 }
 0x15b   : > { %v492_v6 = vadd.f32 %v6028_v62, %v491_v5  ;;  %v615_v9 = vmax.f32 %v489_v2, 0.0 }
 0x15c   : > { %v618_v8 = vmax.f32 %v500_v4, 0.0 }
 0x15d   : > { %v616_v10 = vmax.f32 %v492_v6, 0.0 }
 0x15e   : > { %v648_v11 = vpack.c.bf16 %v618_v8, %v617_v7  ;;  %v5544_v8 = vld [vmem:[#allocation8 + $0x38] sm:$0xff]  }
 0x15f   : > { %v647_v12 = vpack.c.bf16 %v616_v10, %v615_v9  ;;  %v4866_v13 = vpop.f32.mrb[4].mxu0 }
 0x160   : > { %665 = vst.msk [vmem:[#allocation2 + $0x10] sm:$0xff] %vm8081_vm0, %v648_v11  ;;  %v513_v14 = vadd.f32 %v4866_v13, %v6028_v62  ;;  %v504_v15 = vpop.f32.mrb[5].mxu0 }
 0x161   : > { %664 = vst.msk [vmem:[#allocation2 + $0x8] sm:$0xff] %vm8081_vm0, %v647_v12  ;;  %v505_v16 = vadd.f32 %v6028_v62, %v504_v15  ;;  %v4867_v17 = vpop.f32.mrb[6].mxu0  ;;  %v6089_v12 = vld [vmem:[#allocation8 + $0x40] sm:$0xff]  }
 0x162   : > { %v516_v18 = vadd.f32 %v4867_v17, %v6028_v62  ;;  %v507_v19 = vpop.f32.mrb[7].mxu0  ;;  %v621_v21 = vmax.f32 %v513_v14, 0.0 }
 0x163   : > { %v508_v20 = vadd.f32 %v6028_v62, %v507_v19  ;;  %v619_v23 = vmax.f32 %v505_v16, 0.0  ;;  %v6092_v19 = vld [vmem:[#allocation8 + $0x60] sm:$0xff]  }
 0x164   : > { %v622_v22 = vmax.f32 %v516_v18, 0.0 }
 0x165   : > { %v620_v24 = vmax.f32 %v508_v20, 0.0 }
 0x166   : > { %v650_v25 = vpack.c.bf16 %v622_v22, %v621_v21 }
 0x167   : > { %v649_v26 = vpack.c.bf16 %v620_v24, %v619_v23  ;;  %v4870_v27 = vpop.f32.mrb[8].mxu0  ;;  %v6048_v34 = vld [vmem:[#allocation2 + $0x10] sm:$0xff] }
 0x168   : > { %667 = vst.msk [vmem:[#allocation2 + $0x20] sm:$0xff] %vm8081_vm0, %v650_v25  ;;  %v529_v29 = vadd.f32 %v4870_v27, %v6028_v62  ;;  %v520_v30 = vpop.f32.mrb[9].mxu0  ;;  %v6042_v31 = vld [vmem:[#allocation2 + $0x8] sm:$0xff] }
 0x169   : > { %666 = vst.msk [vmem:[#allocation2 + $0x18] sm:$0xff] %vm8081_vm0, %v649_v26  ;;  %v521_v32 = vadd.f32 %v6028_v62, %v520_v30  ;;  %v4871_v33 = vpop.f32.mrb[10].mxu0  ;;  %4897 = vmatmul.mubr.msk.bf16.vlgmr.msra.gmra.mrb[32].mxu0 %vm8081_vm0, %v6042_v31 }
 0x16a   : > { %v532_v35 = vadd.f32 %v4871_v33, %v6028_v62  ;;  %v523_v36 = vpop.f32.mrb[11].mxu0  ;;  %4900 = vmatprep.mubr.msk.bf16.mxu0 %vm8081_vm0, %v6048_v34  ;;  %4965 = vmatpush3.bf16.msra.mxu0 %v5538_v60  ;;  %v625_v39 = vmax.f32 %v529_v29, 0.0 }
 0x16b   : > { %v524_v37 = vadd.f32 %v6028_v62, %v523_v36  ;;  %4966 = vmatprep.subr.bf16.mxu0 %v5539_v28  ;;  %v623_v41 = vmax.f32 %v521_v32, 0.0 }
 0x16c   : > { %v626_v40 = vmax.f32 %v532_v35, 0.0 }
 0x16d   : > { %v624_v42 = vmax.f32 %v524_v37, 0.0 }
 0x16e   : > { %v652_v43 = vpack.c.bf16 %v626_v40, %v625_v39  ;;  %4967 = vmatpush3.bf16.msra.mxu0 %v5539_v28 }
 0x16f   : > { %v651_v44 = vpack.c.bf16 %v624_v42, %v623_v41  ;;  %v4874_v45 = vpop.f32.mrb[12].mxu0  ;;  %v6054_v46 = vld [vmem:[#allocation2 + $0x20] sm:$0xff]  ;;  %5036 = vmatprep.subr.bf16.mxu0 %v5542_v38 }
 0x170   : > { %669 = vst.msk [vmem:[#allocation2 + $0x30] sm:$0xff] %vm8081_vm0, %v652_v43  ;;  %v545_v47 = vadd.f32 %v4874_v45, %v6028_v62  ;;  %v536_v48 = vpop.f32.mrb[13].mxu0  ;;  %4904 = vmatprep.mubr.msk.bf16.mxu1 %vm8081_vm0, %v6054_v46  ;;  %v6060_v49 = vld [vmem:[#allocation2 + $0x18] sm:$0xff] }
 0x171   : > { %668 = vst.msk [vmem:[#allocation2 + $0x28] sm:$0xff] %vm8081_vm0, %v651_v44  ;;  %v537_v50 = vadd.f32 %v6028_v62, %v536_v48  ;;  %v4875_v51 = vpop.f32.mrb[14].mxu0  ;;  %4901 = vmatmul.mubr.msk.bf16.gmra.mrb[36].mxu0 %vm8081_vm0, %v6060_v49 }
 0x172   : > { %v548_v52 = vadd.f32 %v4875_v51, %v6028_v62  ;;  %v539_v53 = vpop.f32.mrb[15].mxu0  ;;  %4968 = vmatprep.mubr.msk.bf16.mxu0 %vm8081_vm0, %v6018_v59  ;;  %v629_v55 = vmax.f32 %v545_v47, 0.0 }
 0x173   : > { %v540_v54 = vadd.f32 %v6028_v62, %v539_v53  ;;  %v627_v57 = vmax.f32 %v537_v50, 0.0 }
 0x174   : > { %v630_v56 = vmax.f32 %v548_v52, 0.0 }
 0x175   : > { %v628_v58 = vmax.f32 %v540_v54, 0.0 }
 0x176   : > { %v654_v60 = vpack.c.bf16 %v630_v56, %v629_v55 }
 0x177   : > { %v653_v63 = vpack.c.bf16 %v628_v58, %v627_v57  ;;  %v4878_v0 = vpop.f32.mrb[16].mxu0  ;;  %v6080_v7 = vld [vmem:[#allocation2 + $0x30] sm:$0xff] }
 0x178   : > { %671 = vst.msk [vmem:[#allocation2 + $0x40] sm:$0xff] %vm8081_vm0, %v654_v60  ;;  %v561_v2 = vadd.f32 %v4878_v0, %v6028_v62  ;;  %v552_v3 = vpop.f32.mrb[17].mxu0  ;;  %v6072_v4 = vld [vmem:[#allocation2 + $0x28] sm:$0xff] }
 0x179   : > { %670 = vst.msk [vmem:[#allocation2 + $0x38] sm:$0xff] %vm8081_vm0, %v653_v63  ;;  %v553_v5 = vadd.f32 %v6028_v62, %v552_v3  ;;  %v4879_v6 = vpop.f32.mrb[18].mxu0  ;;  %4905 = vmatmul.mubr.msk.bf16.vlgmr.msra.gmra.mrb[0].mxu1 %vm8081_vm0, %v6072_v4  ;;  %4969 = vmatmul.mubr.msk.bf16.vlgmr.msra.gmra.mrb[40].mxu0 %vm8081_vm0, %v6042_v31 }
 0x17a   : > { %v564_v9 = vadd.f32 %v4879_v6, %v6028_v62  ;;  %4929 = vmatpush3.bf16.msra.mxu1 %v6022_v61  ;;  %v555_v10 = vpop.f32.mrb[19].mxu0  ;;  %4908 = vmatprep.mubr.msk.bf16.mxu1 %vm8081_vm0, %v6080_v7  ;;  %v633_v13 = vmax.f32 %v561_v2, 0.0 }
 0x17b   : > { %v556_v11 = vadd.f32 %v6028_v62, %v555_v10  ;;  %4972 = vmatprep.mubr.msk.bf16.mxu0 %vm8081_vm0, %v6048_v34  ;;  %4930 = vmatprep.subr.bf16.mxu1 %v5541_v1  ;;  %v631_v15 = vmax.f32 %v553_v5, 0.0 }
 0x17c   : > { %v634_v14 = vmax.f32 %v564_v9, 0.0  ;;  %5037 = vmatpush3.bf16.msra.mxu0 %v5542_v38 }
 0x17d   : > { %v632_v16 = vmax.f32 %v556_v11, 0.0  ;;  %5038 = vmatprep.subr.bf16.mxu0 %v5544_v8 }
 0x17e   : > { %v656_v17 = vpack.c.bf16 %v634_v14, %v633_v13  ;;  %4931 = vmatpush3.bf16.msra.mxu1 %v5541_v1 }
 0x17f   : > { %v655_v61 = vpack.c.bf16 %v632_v16, %v631_v15  ;;  %v4882_v18 = vpop.f32.mrb[20].mxu0  ;;  %5000 = vmatprep.subr.bf16.mxu1 %v6089_v12  ;;  %v6104_v25 = vld [vmem:[#allocation2 + $0x40] sm:$0xff]  ;;  %v5545_v15 = vld [vmem:[#allocation8 + $0x48] sm:$0xff]  }
 0x180   : > { %673 = vst.msk [vmem:[#allocation2 + $0x50] sm:$0xff] %vm8081_vm0, %v656_v17  ;;  %v577_v20 = vadd.f32 %v4882_v18, %v6028_v62  ;;  %v568_v21 = vpop.f32.mrb[21].mxu0  ;;  %v6096_v22 = vld [vmem:[#allocation2 + $0x38] sm:$0xff]  ;;  %5039 = vmatpush3.bf16.msra.mxu0 %v5544_v8  ;;  %v5547_v16 = vld [vmem:[#allocation8 + $0x50] sm:$0xff]   ;;  %v5549_v17 = vld [vmem:[#allocation8 + $0x58] sm:$0xff]  }
 0x181   : > { %672 = vst.msk [vmem:[#allocation2 + $0x48] sm:$0xff] %vm8081_vm0, %v655_v61  ;;  %v569_v23 = vadd.f32 %v6028_v62, %v568_v21  ;;  %v4883_v24 = vpop.f32.mrb[22].mxu0  ;;  %4909 = vmatmul.mubr.msk.bf16.gmra.mrb[4].mxu1 %vm8081_vm0, %v6096_v22  ;;  %4973 = vmatmul.mubr.msk.bf16.gmra.mrb[44].mxu0 %vm8081_vm0, %v6060_v49  ;;  %v5551_v61 = vld [vmem:[#allocation8 + $0x70] sm:$0xff]   ;;  %v6313_v21 = vld [vmem:[#allocation2 + $0x88] sm:$0xff] }
 0x182   : > { %v580_v26 = vadd.f32 %v4883_v24, %v6028_v62  ;;  %v571_v27 = vpop.f32.mrb[23].mxu0  ;;  %4912 = vmatprep.mubr.msk.bf16.mxu1 %vm8081_vm0, %v6104_v25  ;;  %4976 = vmatprep.mubr.msk.bf16.mxu0 %vm8081_vm0, %v6054_v46  ;;  %v637_v29 = vmax.f32 %v577_v20, 0.0  ;;  %v5553_v20 = vld [vmem:[#allocation8 + $0x78] sm:$0xff]  }
 0x183   : > { %v572_v28 = vadd.f32 %v6028_v62, %v571_v27  ;;  %5144 = vmatprep.subr.bf16.mxu0 %v6092_v19  ;;  %v635_v32 = vmax.f32 %v569_v23, 0.0 }
 0x184   : > { %v638_v30 = vmax.f32 %v580_v26, 0.0 }
 0x185   : > { %v636_v33 = vmax.f32 %v572_v28, 0.0 }
 0x186   : > { %v658_v35 = vpack.c.bf16 %v638_v30, %v637_v29 }
 0x187   : > { %v657_v36 = vpack.c.bf16 %v636_v33, %v635_v32  ;;  %v4886_v37 = vpop.f32.mrb[24].mxu0  ;;  %v6123_v43 = vld [vmem:[#allocation2 + $0x50] sm:$0xff] }
 0x188   : > { %675 = vst.msk [vmem:[#allocation2 + $0x60] sm:$0xff] %vm8081_vm0, %v658_v35  ;;  %v593_v38 = vadd.f32 %v4886_v37, %v6028_v62  ;;  %v584_v39 = vpop.f32.mrb[25].mxu0  ;;  %v6115_v40 = vld [vmem:[#allocation2 + $0x48] sm:$0xff] }
 0x189   : > { %674 = vst.msk [vmem:[#allocation2 + $0x58] sm:$0xff] %vm8081_vm0, %v657_v36  ;;  %v585_v41 = vadd.f32 %v6028_v62, %v584_v39  ;;  %v4887_v42 = vpop.f32.mrb[26].mxu0  ;;  %4913 = vmatmul.mubr.msk.bf16.gmra.mrb[8].mxu1 %vm8081_vm0, %v6115_v40  ;;  %4977 = vmatmul.mubr.msk.bf16.gmra.mrb[48].mxu0 %vm8081_vm0, %v6072_v4 }
 0x18a   : > { %v596_v44 = vadd.f32 %v4887_v42, %v6028_v62  ;;  %v587_v45 = vpop.f32.mrb[27].mxu0  ;;  %4916 = vmatprep.mubr.msk.bf16.mxu1 %vm8081_vm0, %v6123_v43  ;;  %4980 = vmatprep.mubr.msk.bf16.mxu0 %vm8081_vm0, %v6080_v7  ;;  %v641_v48 = vmax.f32 %v593_v38, 0.0 }
 0x18b   : > { %v588_v47 = vadd.f32 %v6028_v62, %v587_v45  ;;  %v639_v51 = vmax.f32 %v585_v41, 0.0 }
 0x18c   : > { %v642_v50 = vmax.f32 %v596_v44, 0.0 }
 0x18d   : > { %v640_v52 = vmax.f32 %v588_v47, 0.0 }
 0x18e   : > { %v660_v53 = vpack.c.bf16 %v642_v50, %v641_v48 }
 0x18f   : > { %v659_v54 = vpack.c.bf16 %v640_v52, %v639_v51  ;;  %v4890_v55 = vpop.f32.mrb[28].mxu0  ;;  %v6141_v0 = vld [vmem:[#allocation2 + $0x60] sm:$0xff] }
 0x190   : > { %677 = vst.msk [vmem:[#allocation2 + $0x70] sm:$0xff] %vm8081_vm0, %v660_v53  ;;  %v609_v56 = vadd.f32 %v4890_v55, %v6028_v62  ;;  %v600_v57 = vpop.f32.mrb[29].mxu0  ;;  %v6133_v58 = vld [vmem:[#allocation2 + $0x58] sm:$0xff] }
 0x191   : > { %676 = vst.msk [vmem:[#allocation2 + $0x68] sm:$0xff] %vm8081_vm0, %v659_v54  ;;  %v601_v60 = vadd.f32 %v6028_v62, %v600_v57  ;;  %v4891_v63 = vpop.f32.mrb[30].mxu0  ;;  %4917 = vmatmul.mubr.msk.bf16.gmra.mrb[12].mxu1 %vm8081_vm0, %v6133_v58  ;;  %4981 = vmatmul.mubr.msk.bf16.gmra.mrb[52].mxu0 %vm8081_vm0, %v6096_v22 }
 0x192   : > { %v612_v1 = vadd.f32 %v4891_v63, %v6028_v62  ;;  %v603_v2 = vpop.f32.mrb[31].mxu0  ;;  %4920 = vmatprep.mubr.msk.bf16.mxu1 %vm8081_vm0, %v6141_v0  ;;  %4984 = vmatprep.mubr.msk.bf16.mxu0 %vm8081_vm0, %v6104_v25  ;;  %v645_v5 = vmax.f32 %v609_v56, 0.0 }
 0x193   : > { %v604_v3 = vadd.f32 %v6028_v62, %v603_v2  ;;  %v643_v8 = vmax.f32 %v601_v60, 0.0 }
 0x194   : > { %v646_v6 = vmax.f32 %v612_v1, 0.0 }
 0x195   : > { %v644_v9 = vmax.f32 %v604_v3, 0.0 }
 0x196   : > { %v662_v10 = vpack.c.bf16 %v646_v6, %v645_v5 }
 0x197   : > { %v661_v11 = vpack.c.bf16 %v644_v9, %v643_v8  ;;  %v6157_v14 = vld [vmem:[#allocation2 + $0x70] sm:$0xff] }
 0x198   : > { %679 = vst.msk [vmem:[#allocation2 + $0x80] sm:$0xff] %vm8081_vm0, %v662_v10  ;;  %v6150_v13 = vld [vmem:[#allocation2 + $0x68] sm:$0xff]  ;;  %v8183_v10 = vmov 0 }
 0x199   : > { %678 = vst.msk [vmem:[#allocation2 + $0x78] sm:$0xff] %vm8081_vm0, %v661_v11  ;;  %4921 = vmatmul.mubr.msk.bf16.gmra.mrb[16].mxu1 %vm8081_vm0, %v6150_v13  ;;  %4985 = vmatmul.mubr.msk.bf16.gmra.mrb[56].mxu0 %vm8081_vm0, %v6115_v40  ;;  %v8186_v11 = vmov 0 }
 0x19a   : > { %4924 = vmatprep.mubr.msk.bf16.mxu1 %vm8081_vm0, %v6157_v14  ;;  %4988 = vmatprep.mubr.msk.bf16.mxu0 %vm8081_vm0, %v6123_v43 }
 0x19f   : > { %v6247_v18 = vld [vmem:[#allocation2 + $0x80] sm:$0xff] }
 0x1a0   : > { %v6163_v62 = vld [vmem:[#allocation2 + $0x78] sm:$0xff] }
 0x1a1   : > { %4925 = vmatmul.mubr.msk.bf16.gmra.mrb[20].mxu1 %vm8081_vm0, %v6163_v62  ;;  %4989 = vmatmul.mubr.msk.bf16.gmra.mrb[60].mxu0 %vm8081_vm0, %v6133_v58 }
 0x1a2   : > { %4992 = vmatprep.mubr.msk.bf16.mxu0 %vm8081_vm0, %v6141_v0  ;;  %4932 = vmatprep.mubr.msk.bf16.mxu1 %vm8081_vm0, %v6018_v59  ;;  %v5548_v59 = vld [vmem:[#allocation8 + $0x68] sm:$0xff]  }
 0x1a9   : > { %4933 = vmatmul.mubr.msk.bf16.vlgmr.msra.gmra.mrb[24].mxu1 %vm8081_vm0, %v6042_v31  ;;  %4993 = vmatmul.mubr.msk.bf16.gmra.mrb[64].mxu0 %vm8081_vm0, %v6150_v13 }
 0x1aa   : > { %5001 = vmatpush3.bf16.msra.mxu1 %v6089_v12  ;;  %4936 = vmatprep.mubr.msk.bf16.mxu1 %vm8081_vm0, %v6048_v34  ;;  %v5550_v12 = vld [vmem:[#allocation8 + $0x80] sm:$0xff]  }
 0x1ab   : > { %4996 = vmatprep.mubr.msk.bf16.mxu0 %vm8081_vm0, %v6157_v14  ;;  %5002 = vmatprep.subr.bf16.mxu1 %v5545_v15 }
 0x1ae   : > { %5003 = vmatpush3.bf16.msra.mxu1 %v5545_v15 }
 0x1af   : > { %5072 = vmatprep.subr.bf16.mxu1 %v5547_v16 }
 0x1b1   : > { %4937 = vmatmul.mubr.msk.bf16.gmra.mrb[28].mxu1 %vm8081_vm0, %v6060_v49  ;;  %4997 = vmatmul.mubr.msk.bf16.gmra.mrb[68].mxu0 %vm8081_vm0, %v6163_v62 }
 0x1b2   : > { %4940 = vmatprep.mubr.msk.bf16.mxu1 %vm8081_vm0, %v6054_v46  ;;  %5040 = vmatprep.mubr.msk.bf16.mxu0 %vm8081_vm0, %v6042_v31 }
 0x1b9   : > { %4941 = vmatmul.mubr.msk.bf16.gmra.mrb[32].mxu1 %vm8081_vm0, %v6072_v4  ;;  %5041 = vmatmul.mubr.msk.bf16.vlgmr.msra.gmra.mrb[72].mxu0 %vm8081_vm0, %v6048_v34 }
 0x1ba   : > { %4944 = vmatprep.mubr.msk.bf16.mxu1 %vm8081_vm0, %v6080_v7  ;;  %5044 = vmatprep.mubr.msk.bf16.mxu0 %vm8081_vm0, %v6060_v49 }
 0x1bb   : > { %5145 = vmatpush3.bf16.msra.mxu0 %v6092_v19  ;;  %v5552_v19 = vld [vmem:[#allocation8 + $0x88] sm:$0xff]  }
 0x1bc   : > { %5146 = vmatprep.subr.bf16.mxu0 %v5548_v59 }
 0x1bf   : > { %5147 = vmatpush3.bf16.msra.mxu0 %v5548_v59  ;;  %v8189_v59 = vmov 0 }
 0x1c0   : > { %5180 = vmatprep.subr.bf16.mxu0 %v5550_v12 }
 0x1c1   : > { %4945 = vmatmul.mubr.msk.bf16.gmra.mrb[36].mxu1 %vm8081_vm0, %v6096_v22  ;;  %5045 = vmatmul.mubr.msk.bf16.gmra.mrb[76].mxu0 %vm8081_vm0, %v6054_v46 }
 0x1c2   : > { %4948 = vmatprep.mubr.msk.bf16.mxu1 %vm8081_vm0, %v6104_v25  ;;  %5048 = vmatprep.mubr.msk.bf16.mxu0 %vm8081_vm0, %v6072_v4 }
 0x1c9   : > { %4949 = vmatmul.mubr.msk.bf16.gmra.mrb[40].mxu1 %vm8081_vm0, %v6115_v40  ;;  %5049 = vmatmul.mubr.msk.bf16.gmra.mrb[80].mxu0 %vm8081_vm0, %v6080_v7 }
 0x1ca   : > { %4952 = vmatprep.mubr.msk.bf16.mxu1 %vm8081_vm0, %v6123_v43  ;;  %5052 = vmatprep.mubr.msk.bf16.mxu0 %vm8081_vm0, %v6096_v22 }
 0x1d1   : > { %4953 = vmatmul.mubr.msk.bf16.gmra.mrb[44].mxu1 %vm8081_vm0, %v6133_v58  ;;  %5053 = vmatmul.mubr.msk.bf16.gmra.mrb[84].mxu0 %vm8081_vm0, %v6104_v25 }
 0x1d2   : > { %4956 = vmatprep.mubr.msk.bf16.mxu1 %vm8081_vm0, %v6141_v0  ;;  %5056 = vmatprep.mubr.msk.bf16.mxu0 %vm8081_vm0, %v6115_v40 }
 0x1d9   : > { %4957 = vmatmul.mubr.msk.bf16.gmra.mrb[48].mxu1 %vm8081_vm0, %v6150_v13  ;;  %5057 = vmatmul.mubr.msk.bf16.gmra.mrb[88].mxu0 %vm8081_vm0, %v6123_v43 }
 0x1da   : > { %4960 = vmatprep.mubr.msk.bf16.mxu1 %vm8081_vm0, %v6157_v14  ;;  %5060 = vmatprep.mubr.msk.bf16.mxu0 %vm8081_vm0, %v6133_v58 }
 0x1e1   : > { %4961 = vmatmul.mubr.msk.bf16.gmra.mrb[52].mxu1 %vm8081_vm0, %v6163_v62  ;;  %5061 = vmatmul.mubr.msk.bf16.gmra.mrb[92].mxu0 %vm8081_vm0, %v6141_v0 }
 0x1e2   : > { %5004 = vmatprep.mubr.msk.bf16.mxu1 %vm8081_vm0, %v6042_v31  ;;  %5064 = vmatprep.mubr.msk.bf16.mxu0 %vm8081_vm0, %v6150_v13 }
 0x1e9   : > { %5005 = vmatmul.mubr.msk.bf16.vlgmr.msra.gmra.mrb[24].mxu1 %vm8081_vm0, %v6048_v34  ;;  %5065 = vmatmul.mubr.msk.bf16.gmra.mrb[96].mxu0 %vm8081_vm0, %v6157_v14 }
 0x1ea   : > { %5073 = vmatpush3.bf16.msra.mxu1 %v5547_v16  ;;  %5008 = vmatprep.mubr.msk.bf16.mxu1 %vm8081_vm0, %v6060_v49 }
 0x1eb   : > { %5068 = vmatprep.mubr.msk.bf16.mxu0 %vm8081_vm0, %v6163_v62  ;;  %5074 = vmatprep.subr.bf16.mxu1 %v5549_v17 }
 0x1ee   : > { %5075 = vmatpush3.bf16.msra.mxu1 %v5549_v17 }
 0x1ef   : > { %5108 = vmatprep.subr.bf16.mxu1 %v5551_v61 }
 0x1f1   : > { %5009 = vmatmul.mubr.msk.bf16.gmra.mrb[28].mxu1 %vm8081_vm0, %v6054_v46  ;;  %5069 = vmatmul.mubr.msk.bf16.gmra.mrb[100].mxu0 %vm8081_vm0, %v6247_v18 }
 0x1f2   : > { %5012 = vmatprep.mubr.msk.bf16.mxu1 %vm8081_vm0, %v6072_v4  ;;  %5148 = vmatprep.mubr.msk.bf16.mxu0 %vm8081_vm0, %v6048_v34 }
 0x1f9   : > { %5013 = vmatmul.mubr.msk.bf16.gmra.mrb[32].mxu1 %vm8081_vm0, %v6080_v7  ;;  %5149 = vmatmul.mubr.msk.bf16.vlgmr.msra.gmra.mrb[104].mxu0 %vm8081_vm0, %v6060_v49 }
 0x1fa   : > { %5016 = vmatprep.mubr.msk.bf16.mxu1 %vm8081_vm0, %v6096_v22  ;;  %5152 = vmatprep.mubr.msk.bf16.mxu0 %vm8081_vm0, %v6054_v46 }
 0x1fb   : > { %5181 = vmatpush3.bf16.msra.mxu0 %v5550_v12 }
 0x1fc   : > { %5182 = vmatprep.subr.bf16.mxu0 %v5552_v19 }
 0x1ff   : > { %5183 = vmatpush3.bf16.msra.mxu0 %v5552_v19 }
 0x201   : > { %5017 = vmatmul.mubr.msk.bf16.gmra.mrb[36].mxu1 %vm8081_vm0, %v6104_v25  ;;  %5153 = vmatmul.mubr.msk.bf16.gmra.mrb[108].mxu0 %vm8081_vm0, %v6072_v4 }
 0x202   : > { %5020 = vmatprep.mubr.msk.bf16.mxu1 %vm8081_vm0, %v6115_v40  ;;  %5156 = vmatprep.mubr.msk.bf16.mxu0 %vm8081_vm0, %v6080_v7 }
 0x209   : > { %5021 = vmatmul.mubr.msk.bf16.gmra.mrb[40].mxu1 %vm8081_vm0, %v6123_v43  ;;  %5157 = vmatmul.mubr.msk.bf16.gmra.mrb[112].mxu0 %vm8081_vm0, %v6096_v22 }
 0x20a   : > { %5024 = vmatprep.mubr.msk.bf16.mxu1 %vm8081_vm0, %v6133_v58  ;;  %5160 = vmatprep.mubr.msk.bf16.mxu0 %vm8081_vm0, %v6104_v25 }
 0x211   : > { %5025 = vmatmul.mubr.msk.bf16.gmra.mrb[44].mxu1 %vm8081_vm0, %v6141_v0  ;;  %5161 = vmatmul.mubr.msk.bf16.gmra.mrb[116].mxu0 %vm8081_vm0, %v6115_v40 }
 0x212   : > { %5028 = vmatprep.mubr.msk.bf16.mxu1 %vm8081_vm0, %v6150_v13  ;;  %5164 = vmatprep.mubr.msk.bf16.mxu0 %vm8081_vm0, %v6123_v43 }
 0x219   : > { %5029 = vmatmul.mubr.msk.bf16.gmra.mrb[48].mxu1 %vm8081_vm0, %v6157_v14  ;;  %5165 = vmatmul.mubr.msk.bf16.gmra.mrb[120].mxu0 %vm8081_vm0, %v6133_v58 }
 0x21a   : > { %5032 = vmatprep.mubr.msk.bf16.mxu1 %vm8081_vm0, %v6163_v62  ;;  %5168 = vmatprep.mubr.msk.bf16.mxu0 %vm8081_vm0, %v6141_v0 }
 0x221   : > { %5033 = vmatmul.mubr.msk.bf16.gmra.mrb[52].mxu1 %vm8081_vm0, %v6247_v18  ;;  %5169 = vmatmul.mubr.msk.bf16.gmra.mrb[124].mxu0 %vm8081_vm0, %v6150_v13 }
 0x222   : > { %5076 = vmatprep.mubr.msk.bf16.mxu1 %vm8081_vm0, %v6042_v31  ;;  %5172 = vmatprep.mubr.msk.bf16.mxu0 %vm8081_vm0, %v6157_v14  ;;  %v682_v31 = vlaneseq }
 0x224   : > { %v6331_v24 = vshrl.u32 %v682_v31, 7 }
 0x226   : > { %vm8080_vm1 = vcmp.lt.s32.totalorder %v6331_v24, 1  ;;  %v685_v38 = vadd.s32 16, %v6331_v24  ;;  %v687_v39 = vadd.s32 32, %v6331_v24  ;;  %v684_v42 = vadd.s32 8, %v6331_v24 }
 0x227   : > { %v689_v50 = vadd.s32 48, %v6331_v24  ;;  %v691_v55 = vadd.s32 64, %v6331_v24  ;;  %v6369_v63 = vadd.s32 80, %v6331_v24  ;;  %v686_v2 = vadd.s32 24, %v6331_v24 }
 0x228   : > { %v733_v48 = vand.u32 15, %v685_v38  ;;  %v747_v54 = vand.u32 15, %v687_v39  ;;  %v726_v60 = vand.u32 15, %v684_v42  ;;  %v688_v3 = vadd.s32 40, %v6331_v24 }
 0x229   : > { %5077 = vmatmul.mubr.msk.bf16.vlgmr.msra.gmra.mrb[56].mxu1 %vm8081_vm0, %v6048_v34  ;;  %5173 = vmatmul.mubr.msk.bf16.gmra.mrb[128].mxu0 %vm8081_vm0, %v6163_v62  ;;  %v761_v8 = vand.u32 15, %v689_v50  ;;  %v6394_v9 = vadd.s32 56, %v6331_v24  ;;  %vm8082_vm4 = vcmp.lt.s32.totalorder %v6331_v24, 7  ;;  %v789_v12 = vand.u32 15, %v6369_v63 }
 0x22a   : > { %5109 = vmatpush3.bf16.msra.mxu1 %v5551_v61  ;;  %5080 = vmatprep.mubr.msk.bf16.mxu1 %vm8081_vm0, %v6060_v49  ;;  %vm6396_vm2 = vcmp.eq.s32.totalorder %v733_v48, 0  ;;  %vm6400_vm3 = vcmp.eq.s32.totalorder %v747_v54, 0  ;;  %vm6405_vm5 = vcmp.eq.s32.totalorder %v726_v60, 15  ;;  %v775_v17 = vand.u32 15, %v691_v55 }
 0x22b   : > { %5176 = vmatprep.mubr.msk.bf16.mxu0 %vm8081_vm0, %v6247_v18  ;;  %5110 = vmatprep.subr.bf16.mxu1 %v5553_v20  ;;  %v8184_v10 = vsel %vm6396_vm2, 4294967295, %v8183_v10  ;;  %v8187_v11 = vsel %vm6400_vm3, 4294967295, %v8186_v11  ;;  %v8190_v59 = vsel %vm6405_vm5, 4294967295, %v8189_v59  ;;  %v754_v31 = vand.u32 15, %v688_v3 }
 0x22c   : > { %8185 = vst [vmem:[#allocation14_spill] sm:$0xff] %v8184_v10  ;;  %8188 = vst [vmem:[#allocation15_spill] sm:$0xff] %v8187_v11  ;;  %vm6418_vm6 = vcmp.eq.s32.totalorder %v761_v8, 0  ;;  %v768_v38 = vand.u32 15, %v6394_v9  ;;  %v6424_v39 = vadd.s32 72, %v6331_v24  ;;  %v6448_v63 = vadd.s32 88, %v6331_v24 }
 0x22d   : > { %8191 = vst [vmem:[#allocation16_spill] sm:$0xff] %v8190_v59  ;;  %vm6478_vm8 = vcmp.eq.s32.totalorder %v775_v17, 0  ;;  %vm6486_vm9 = vcmp.eq.s32.totalorder %v754_v31, 15  ;;  %vm6507_vm11 = vcmp.eq.s32.totalorder %v789_v12, 0 }
 0x22e   : > { %5111 = vmatpush3.bf16.msra.mxu1 %v5553_v20  ;;  %v740_v20 = vand.u32 15, %v686_v2  ;;  %vm6503_vm10 = vcmp.eq.s32.totalorder %v768_v38, 15 }
 0x230   : > { %vm6472_vm7 = vcmp.eq.s32.totalorder %v740_v20, 15 }
 0x231   : > { %5081 = vmatmul.mubr.msk.bf16.gmra.mrb[60].mxu1 %vm8081_vm0, %v6054_v46  ;;  %5177 = vmatmul.mubr.msk.bf16.gmra.mrb[132].mxu0 %vm8081_vm0, %v6313_v21 }
 0x232   : > { %5084 = vmatprep.mubr.msk.bf16.mxu1 %vm8081_vm0, %v6072_v4  ;;  %5184 = vmatprep.mubr.msk.bf16.mxu0 %vm8081_vm0, %v6048_v34 }
 0x239   : > { %5085 = vmatmul.mubr.msk.bf16.gmra.mrb[64].mxu1 %vm8081_vm0, %v6080_v7  ;;  %5185 = vmatmul.mubr.msk.bf16.vlgmr.msra.gmra.mrb[136].mxu0 %vm8081_vm0, %v6060_v49 }
 0x23a   : > { %5088 = vmatprep.mubr.msk.bf16.mxu1 %vm8081_vm0, %v6096_v22  ;;  %5188 = vmatprep.mubr.msk.bf16.mxu0 %vm8081_vm0, %v6054_v46 }
 0x23c   : > { %v4898_v23 = vpop.f32.mrb[32].mxu0 }
 0x23d   : > { %v6333_v26 = vpop.f32.mrb[33].mxu0  ;;  %v1411_v28 = vrot.slane %v4898_v23, 7  ;;  %v6413_v23 = vadd.s32 112, %v6331_v24 }
 0x23e   : > { %v4899_v27 = vpop.f32.mrb[34].mxu0  ;;  %v8067_v32 = vrot.slane %v6333_v26, 7 }
 0x23f   : > { %v1412_v29 = vrot.slane %v4899_v27, 7  ;;  %v1285_v30 = vpop.f32.mrb[35].mxu0  ;;  %v6416_v27 = vadd.s32 96, %v6331_v24  ;;  %v817_v20 = vand.u32 15, %v6413_v23 }
 0x240   : > { %v1410_v33 = vrot.slane %v1285_v30, 7 }
 0x241   : > { %v6339_v35 = vsel %vm8080_vm1, %v1411_v28, %v1412_v29  ;;  %5089 = vmatmul.mubr.msk.bf16.gmra.mrb[68].mxu1 %vm8081_vm0, %v6104_v25  ;;  %5189 = vmatmul.mubr.msk.bf16.gmra.mrb[140].mxu0 %vm8081_vm0, %v6072_v4  ;;  %vm6590_vm15 = vcmp.eq.s32.totalorder %v817_v20, 0 }
 0x242   : > { %v6347_v36 = vsel %vm8080_vm1, %v1410_v33, %v1411_v28  ;;  %v6353_v37 = vsel %vm8080_vm1, %v8067_v32, %v1410_v33  ;;  %5092 = vmatprep.mubr.msk.bf16.mxu1 %vm8081_vm0, %v6115_v40  ;;  %5192 = vmatprep.mubr.msk.bf16.mxu0 %vm8081_vm0, %v6080_v7  ;;  %v8192_v33 = vmov 0 }
 0x243   : > { %v8193_v33 = vsel %vm6418_vm6, 4294967295, %v8192_v33 }
 0x244   : > { %v4902_v41 = vpop.f32.mrb[36].mxu0  ;;  %8194 = vst [vmem:[#allocation17_spill] sm:$0xff] %v8193_v33 }
 0x245   : > { %v1298_v44 = vpop.f32.mrb[37].mxu0  ;;  %v1415_v51 = vrot.slane %v4902_v41, 7  ;;  %v6427_v41 = vadd.s32 128, %v6331_v24 }
 0x246   : > { %v1413_v45 = vrot.slane %v1298_v44, 7  ;;  %v4903_v47 = vpop.f32.mrb[38].mxu0 }
 0x247   : > { %v1416_v52 = vrot.slane %v4903_v47, 7  ;;  %v1301_v53 = vpop.f32.mrb[39].mxu0 }
 0x248   : > { %v6366_v56 = vsel %vm8080_vm1, %v1412_v29, %v1413_v45  ;;  %v1414_v57 = vrot.slane %v1301_v53, 7 }
 0x249   : > { %v6373_v1 = vsel %vm8080_vm1, %v1415_v51, %v1416_v52  ;;  %5093 = vmatmul.mubr.msk.bf16.gmra.mrb[72].mxu1 %vm8081_vm0, %v6123_v43  ;;  %5193 = vmatmul.mubr.msk.bf16.gmra.mrb[144].mxu0 %vm8081_vm0, %v6096_v22  ;;  %v1542_v23 = vsel %vm6400_vm3, 0.0, %v6366_v56 }
 0x24a   : > { %v6383_v5 = vsel %vm8080_vm1, %v1414_v57, %v1415_v51  ;;  %v6387_v6 = vsel %vm8080_vm1, %v1413_v45, %v1414_v57  ;;  %5096 = vmatprep.mubr.msk.bf16.mxu1 %vm8081_vm0, %v6133_v58  ;;  %5196 = vmatprep.mubr.msk.bf16.mxu0 %vm8081_vm0, %v6104_v25 }
 0x24c   : > { %v4906_v15 = vpop.f32.mrb[0].mxu1  ;;  %v4970_v16 = vpop.f32.mrb[40].mxu0 }
 0x24d   : > { %v1314_v61 = vpop.f32.mrb[1].mxu1  ;;  %v6410_v19 = vpop.f32.mrb[41].mxu0  ;;  %v1419_v42 = vrot.slane %v4906_v15, 7  ;;  %v1923_v44 = vrot.slane %v4970_v16, 1  ;;  %v8196_v15 = vmov 0 }
 0x24e   : > { %v1417_v28 = vrot.slane %v1314_v61, 7  ;;  %v4907_v29 = vpop.f32.mrb[2].mxu1  ;;  %v4971_v30 = vpop.f32.mrb[42].mxu0  ;;  %v8066_v53 = vrot.slane %v6410_v19, 1  ;;  %v8197_v15 = vsel %vm6472_vm7, 4294967295, %v8196_v15  ;;  %v8199_v61 = vmov 0 }
 0x24f   : > { %v1420_v45 = vrot.slane %v4907_v29, 7  ;;  %v1924_v47 = vrot.slane %v4971_v30, 1  ;;  %v1317_v48 = vpop.f32.mrb[3].mxu1  ;;  %v1797_v50 = vpop.f32.mrb[43].mxu0  ;;  %8198 = vst [vmem:[#allocation19_spill] sm:$0xff] %v8197_v15  ;;  %v8200_v61 = vsel %vm6478_vm8, 4294967295, %v8199_v61 }
 0x250   : > { %v6431_v51 = vsel %vm8080_vm1, %v1416_v52, %v1417_v28  ;;  %v1418_v54 = vrot.slane %v1317_v48, 7  ;;  %v1922_v55 = vrot.slane %v1797_v50, 1  ;;  %v1540_v52 = vsel %vm6396_vm2, 0.0, %v6347_v36  ;;  %8201 = vst [vmem:[#allocation20_spill] sm:$0xff] %v8200_v61 }
 0x251   : > { %v6436_v57 = vsel %vm8080_vm1, %v1419_v42, %v1420_v45  ;;  %v1982_v60 = vsel %vm8082_vm4, %v1923_v44, %v1924_v47  ;;  %5097 = vmatmul.mubr.msk.bf16.gmra.mrb[76].mxu1 %vm8081_vm0, %v6141_v0  ;;  %5197 = vmatmul.mubr.msk.bf16.gmra.mrb[148].mxu0 %vm8081_vm0, %v6115_v40  ;;  %v6492_v48 = vadd.s32 144, %v6331_v24  ;;  %v8221_v15 = vmov 0 }
 0x252   : > { %v6452_v2 = vsel %vm8080_vm1, %v1418_v54, %v1419_v42  ;;  %v6456_v3 = vsel %vm8080_vm1, %v1417_v28, %v1418_v54  ;;  %v1983_v8 = vsel %vm8082_vm4, %v1922_v55, %v1923_v44  ;;  %v6464_v9 = vsel %vm8082_vm4, %v8066_v53, %v1922_v55  ;;  %5100 = vmatprep.mubr.msk.bf16.mxu1 %vm8081_vm0, %v6150_v13 }
 0x253   : > { %5200 = vmatprep.mubr.msk.bf16.mxu0 %vm8081_vm0, %v6123_v43  ;;  %v6470_v36 = vadd.f32 %v1982_v60, %v1540_v52  ;;  %v2051_v16 = vsel %vm6405_vm5, 0.0, %v1983_v8  ;;  %v803_v28 = vand.u32 15, %v6416_v27  ;;  %v8203_v44 = vmov 0 }
 0x254   : > { %v4910_v29 = vpop.f32.mrb[4].mxu1  ;;  %v4974_v30 = vpop.f32.mrb[44].mxu0  ;;  %v6484_v42 = vadd.f32 %v2051_v16, %v6353_v37  ;;  %v8204_v44 = vsel %vm6486_vm9, 4294967295, %v8203_v44  ;;  %v796_v54 = vand.u32 15, %v6448_v63  ;;  %v782_v27 = vand.u32 15, %v6424_v39 }
 0x255   : > { %8195 = vst [vmem:[#allocation18_spill] sm:$0xff] %v6470_v36  ;;  %8205 = vst [vmem:[#allocation22_spill] sm:$0xff] %v8204_v44  ;;  %v1330_v17 = vpop.f32.mrb[5].mxu1  ;;  %v1810_v50 = vpop.f32.mrb[45].mxu0  ;;  %v6498_v37 = vadd.s32 160, %v6331_v24  ;;  %v8206_v16 = vmov 0 }
 0x256   : > { %8202 = vst [vmem:[#allocation21_spill] sm:$0xff] %v6484_v42  ;;  %v1421_v31 = vrot.slane %v1330_v17, 7  ;;  %v1925_v60 = vrot.slane %v1810_v50, 1  ;;  %v4911_v52 = vpop.f32.mrb[6].mxu1  ;;  %v4975_v8 = vpop.f32.mrb[46].mxu0  ;;  %v8207_v16 = vsel %vm6503_vm10, 4294967295, %v8206_v16 }
 0x257   : > { %8208 = vst [vmem:[#allocation23_spill] sm:$0xff] %v8207_v16  ;;  %v8209_v63 = vmov 0  ;;  %v6512_v39 = vadd.s32 104, %v6331_v24  ;;  %v1423_v53 = vrot.slane %v4910_v29, 7  ;;  %v1927_v17 = vrot.slane %v4974_v30, 1  ;;  %v1333_v55 = vpop.f32.mrb[7].mxu1 }
 0x258   : > { %v8210_v63 = vsel %vm6507_vm11, 4294967295, %v8209_v63  ;;  %v1424_v50 = vrot.slane %v4911_v52, 7  ;;  %v1928_v32 = vrot.slane %v4975_v8, 1  ;;  %v1813_v59 = vpop.f32.mrb[47].mxu0  ;;  %v6516_v56 = vsel %vm8080_vm1, %v1420_v45, %v1421_v31 }
 0x259   : > { %8211 = vst [vmem:[#allocation24_spill] sm:$0xff] %v8210_v63  ;;  %v1981_v38 = vsel %vm8082_vm4, %v1924_v47, %v1925_v60  ;;  %v1422_v12 = vrot.slane %v1333_v55, 7  ;;  %v1926_v11 = vrot.slane %v1813_v59, 1  ;;  %5101 = vmatmul.mubr.msk.bf16.gmra.mrb[80].mxu1 %vm8081_vm0, %v6157_v14  ;;  %5201 = vmatmul.mubr.msk.bf16.gmra.mrb[152].mxu0 %vm8081_vm0, %v6133_v58  ;;  %v1544_v59 = vsel %vm6418_vm6, 0.0, %v6383_v5 }
 0x25a   : > { %v6522_v36 = vsel %vm8080_vm1, %v1423_v53, %v1424_v50  ;;  %v1978_v29 = vsel %vm8082_vm4, %v1927_v17, %v1928_v32  ;;  %v2053_v45 = vsel %vm6472_vm7, 0.0, %v1981_v38  ;;  %5104 = vmatprep.mubr.msk.bf16.mxu1 %vm8081_vm0, %v6163_v62  ;;  %5204 = vmatprep.mubr.msk.bf16.mxu0 %vm8081_vm0, %v6141_v0  ;;  %vm6560_vm12 = vcmp.eq.s32.totalorder %v803_v28, 0 }
 0x25b   : > { %v6537_v47 = vsel %vm8080_vm1, %v1422_v12, %v1423_v53  ;;  %v6541_v30 = vsel %vm8080_vm1, %v1421_v31, %v1422_v12  ;;  %v1979_v55 = vsel %vm8082_vm4, %v1926_v11, %v1927_v17  ;;  %v1980_v52 = vsel %vm8082_vm4, %v1925_v60, %v1926_v11 }
 0x25c   : > { %v6552_v5 = vadd.f32 %v2053_v45, %v6339_v35  ;;  %v6554_v53 = vadd.f32 %v1978_v29, %v1544_v59  ;;  %v6556_v8 = vadd.f32 %v1980_v52, %v1542_v23  ;;  %v2055_v31 = vsel %vm6486_vm9, 0.0, %v1979_v55  ;;  %v4914_v11 = vpop.f32.mrb[8].mxu1  ;;  %v4978_v60 = vpop.f32.mrb[48].mxu0 }
 0x25d   : > { %v8214_v17 = vmov 0  ;;  %v6565_v38 = vadd.f32 %v2055_v31, %v6387_v6  ;;  %vm6567_vm13 = vcmp.eq.s32.totalorder %v782_v27, 15  ;;  %v8218_v12 = vmov 0  ;;  %v1346_v29 = vpop.f32.mrb[9].mxu1  ;;  %v1826_v45 = vpop.f32.mrb[49].mxu0 }
 0x25e   : > { %8212 = vst [vmem:[#allocation25_spill] sm:$0xff] %v6554_v53  ;;  %8213 = vst [vmem:[#allocation26_spill] sm:$0xff] %v6556_v8  ;;  %v8215_v17 = vsel %vm6560_vm12, 4294967295, %v8214_v17  ;;  %v8219_v12 = vsel %vm6567_vm13, 4294967295, %v8218_v12  ;;  %v845_v35 = vand.u32 15, %v6492_v48  ;;  %v6573_v23 = vadd.s32 176, %v6331_v24 }
 0x25f   : > { %8216 = vst [vmem:[#allocation27_spill] sm:$0xff] %v8215_v17  ;;  %8217 = vst [vmem:[#allocation28_spill] sm:$0xff] %v6565_v38  ;;  %v6576_v28 = vadd.s32 120, %v6331_v24  ;;  %v810_v59 = vand.u32 15, %v6512_v39  ;;  %v6581_v6 = vadd.s32 192, %v6331_v24  ;;  %v1425_v27 = vrot.slane %v1346_v29, 7 }
 0x260   : > { %8220 = vst [vmem:[#allocation29_spill] sm:$0xff] %v8219_v12  ;;  %v1929_v52 = vrot.slane %v1826_v45, 1  ;;  %v4915_v31 = vpop.f32.mrb[10].mxu1  ;;  %v4979_v44 = vpop.f32.mrb[50].mxu0  ;;  %v1546_v48 = vsel %vm6478_vm8, 0.0, %v6431_v51  ;;  %vm6586_vm14 = vcmp.eq.s32.totalorder %v796_v54, 15 }
 0x261   : > { %v8222_v15 = vsel %vm6586_vm14, 4294967295, %v8221_v15  ;;  %v8224_v53 = vmov 0  ;;  %v6595_v39 = vadd.s32 136, %v6331_v24  ;;  %v1427_v55 = vrot.slane %v4914_v11, 7  ;;  %v1349_v33 = vpop.f32.mrb[11].mxu1  ;;  %v1829_v8 = vpop.f32.mrb[51].mxu0  ;;  %5105 = vmatmul.mubr.msk.bf16.gmra.mrb[84].mxu1 %vm8081_vm0, %v6247_v18  ;;  %5205 = vmatmul.mubr.msk.bf16.gmra.mrb[156].mxu0 %vm8081_vm0, %v6150_v13 }
 0x262   : > { %8223 = vst [vmem:[#allocation30_spill] sm:$0xff] %v8222_v15  ;;  %v8225_v53 = vsel %vm6590_vm15, 4294967295, %v8224_v53  ;;  %v1931_v29 = vrot.slane %v4978_v60, 1  ;;  %v1428_v45 = vrot.slane %v4915_v31, 7  ;;  %v1932_v38 = vrot.slane %v4979_v44, 1  ;;  %5112 = vmatprep.mubr.msk.bf16.mxu1 %vm8081_vm0, %v6048_v34  ;;  %5208 = vmatprep.mubr.msk.bf16.mxu0 %vm8081_vm0, %v6157_v14 }
 0x263   : > { %8226 = vst [vmem:[#allocation31_spill] sm:$0xff] %v8225_v53  ;;  %v6599_v51 = vsel %vm8080_vm1, %v1424_v50, %v1425_v27  ;;  %v1977_v54 = vsel %vm8082_vm4, %v1928_v32, %v1929_v52  ;;  %v1426_v20 = vrot.slane %v1349_v33, 7  ;;  %v1930_v61 = vrot.slane %v1829_v8, 1 }
 0x264   : > { %v6605_v42 = vsel %vm8080_vm1, %v1427_v55, %v1428_v45  ;;  %v1974_v11 = vsel %vm8082_vm4, %v1931_v29, %v1932_v38  ;;  %v2057_v44 = vsel %vm6503_vm10, 0.0, %v1977_v54  ;;  %v1548_v32 = vsel %vm6507_vm11, 0.0, %v6452_v2  ;;  %v4918_v34 = vpop.f32.mrb[12].mxu1 }
 0x265   : > { %v6620_v33 = vsel %vm8080_vm1, %v1426_v20, %v1427_v55  ;;  %v6624_v50 = vsel %vm8080_vm1, %v1425_v27, %v1426_v20  ;;  %v1975_v8 = vsel %vm8082_vm4, %v1930_v61, %v1931_v29  ;;  %v1976_v13 = vsel %vm8082_vm4, %v1929_v52, %v1930_v61  ;;  %v4982_v52 = vpop.f32.mrb[52].mxu0  ;;  %v1362_v54 = vpop.f32.mrb[13].mxu1 }
 0x266   : > { %v6635_v2 = vadd.f32 %v2057_v44, %v6373_v1  ;;  %v6637_v60 = vadd.f32 %v1974_v11, %v1548_v32  ;;  %v6639_v55 = vadd.f32 %v1976_v13, %v1546_v48  ;;  %v2059_v27 = vsel %vm6567_vm13, 0.0, %v1975_v8  ;;  %v1842_v20 = vpop.f32.mrb[53].mxu0 }
 0x267   : > { %v8228_v31 = vand.u32 15, %v6427_v41  ;;  %v8229_v61 = vmov 0  ;;  %v6650_v14 = vadd.f32 %v2059_v27, %v6456_v3  ;;  %v824_v1 = vand.u32 15, %v6576_v28  ;;  %v4983_v8 = vpop.f32.mrb[54].mxu0 }
 0x268   : > { %8227 = vst [vmem:[#allocation32_spill] sm:$0xff] %v6637_v60  ;;  %vm6653_vm0 = vcmp.eq.s32.totalorder %v810_v59, 15  ;;  %v8232_v29 = vmov 0  ;;  %v873_v48 = vand.u32 15, %v6573_v23  ;;  %v6659_v41 = vadd.s32 152, %v6331_v24  ;;  %v4919_v59 = vpop.f32.mrb[14].mxu1 }
 0x269   : > { %vm6645_vm1 = vcmp.eq.s32.totalorder %v8228_v31, 0  ;;  %v8233_v29 = vsel %vm6653_vm0, 4294967295, %v8232_v29  ;;  %v838_v11 = vand.u32 15, %v6595_v39  ;;  %v6663_v44 = vadd.s32 208, %v6331_v24  ;;  %v1365_v3 = vpop.f32.mrb[15].mxu1 }
 0x26a   : > { %v8230_v61 = vsel %vm6645_vm1, 4294967295, %v8229_v61  ;;  %8234 = vst [vmem:[#allocation34_spill] sm:$0xff] %v8233_v29  ;;  %v1429_v32 = vrot.slane %v1362_v54, 7  ;;  %v1933_v28 = vrot.slane %v1842_v20, 1  ;;  %v1550_v23 = vsel %vm6560_vm12, 0.0, %v6516_v56  ;;  %v1845_v54 = vpop.f32.mrb[55].mxu0 }
 0x26b   : > { %8231 = vst [vmem:[#allocation33_spill] sm:$0xff] %v8230_v61  ;;  %vm6669_vm4 = vcmp.eq.s32.totalorder %v845_v35, 0  ;;  %v8235_v13 = vmov 0  ;;  %v6674_v27 = vadd.s32 168, %v6331_v24  ;;  %v1431_v39 = vrot.slane %v4918_v34, 7 }
 0x26c   : > { %v8236_v13 = vsel %vm6669_vm4, 4294967295, %v8235_v13  ;;  %v1935_v31 = vrot.slane %v4982_v52, 1  ;;  %v1432_v12 = vrot.slane %v4919_v59, 7  ;;  %v1936_v16 = vrot.slane %v4983_v8, 1 }
 0x26d   : > { %8237 = vst [vmem:[#allocation35_spill] sm:$0xff] %v8236_v13  ;;  %vm8238_vm13 = vcmp.lt.s32.totalorder %v6331_v24, 1  ;;  %vm8239_vm10 = vcmp.lt.s32.totalorder %v6331_v24, 7  ;;  %v1430_v35 = vrot.slane %v1365_v3, 7  ;;  %v1934_v17 = vrot.slane %v1845_v54, 1 }
 0x26e   : > { %v6678_v20 = vsel %vm8238_vm13, %v1428_v45, %v1429_v32  ;;  %v1973_v56 = vsel %vm8239_vm10, %v1932_v38, %v1933_v28  ;;  %vm8240_vm9 = vmmov %vm8238_vm13  ;;  %vm8242_vm5 = vcmask 261120   ;;  %v1552_v38 = vsel %vm6590_vm15, 0.0, %v6537_v47 }
 0x26f   : > { %v6684_v60 = vsel %vm8240_vm9, %v1431_v39, %v1432_v12  ;;  %vm8241_vm7 = vmmov %vm8239_vm10  ;;  %5113 = vmatmul.mubr.msk.bf16.vlgmr.msra.gmra.mrb[24].mxu1 %vm8242_vm5, %v6060_v49  ;;  %v2061_v45 = vsel %vm6586_vm14, 0.0, %v1973_v56  ;;  %v6703_v3 = vsel %vm8240_vm9, %v1429_v32, %v1430_v35 }
 0x270   : > { %v1970_v34 = vsel %vm8241_vm7, %v1935_v31, %v1936_v16  ;;  %vm8243_vm12 = vmmov %vm8242_vm5  ;;  %v6714_v47 = vadd.f32 %v2061_v45, %v6436_v57  ;;  %v4986_v57 = vpop.f32.mrb[56].mxu0  ;;  %v866_v45 = vand.u32 15, %v6674_v27 }
 0x271   : > { %5209 = vmatmul.mubr.msk.bf16.gmra.mrb[160].mxu0 %vm8243_vm12, %v6163_v62  ;;  %vm8244_vm10 = vmmov %vm8240_vm9  ;;  %5116 = vmatprep.mubr.msk.bf16.mxu1 %vm8243_vm12, %v6054_v46  ;;  %v6716_v59 = vadd.f32 %v1970_v34, %v1552_v38  ;;  %v8253_v46 = vmov 0  ;;  %v1858_v56 = vpop.f32.mrb[57].mxu0  ;;  %v852_v34 = vand.u32 15, %v6659_v41  ;;  %v1939_v54 = vrot.slane %v4986_v57, 1 }
 0x272   : > { %v6699_v52 = vsel %vm8244_vm10, %v1430_v35, %v1431_v39  ;;  %vm8245_vm5 = vmmov %vm8241_vm7  ;;  %vm6722_vm10 = vcmp.eq.s32.totalorder %v873_v48, 0  ;;  %v8249_v39 = vmov 0  ;;  %v8260_v48 = vmov 0 }
 0x273   : > { %v1971_v49 = vsel %vm8245_vm5, %v1934_v17, %v1935_v31  ;;  %vm8246_vm7 = vmmov %vm8245_vm5  ;;  %8248 = vst [vmem:[#allocation36_spill] sm:$0xff] %v6716_v59  ;;  %v8250_v39 = vsel %vm6722_vm10, 4294967295, %v8249_v39  ;;  %vm6732_vm5 = vcmp.eq.s32.totalorder %v824_v1, 15  ;;  %v8256_v31 = vmov 0 }
 0x274   : > { %v1972_v62 = vsel %vm8246_vm7, %v1933_v28, %v1934_v17  ;;  %vm8247_vm13 = vmmov %vm8243_vm12  ;;  %v2063_v32 = vsel %vm6653_vm0, 0.0, %v1971_v49  ;;  %8251 = vst [vmem:[#allocation37_spill] sm:$0xff] %v8250_v39  ;;  %v8252_v17 = vand.u32 15, %v6498_v37  ;;  %v4922_v28 = vpop.f32.mrb[16].mxu1  ;;  %v8257_v31 = vsel %vm6732_vm5, 4294967295, %v8256_v31 }
 0x275   : > { %5212 = vmatprep.mubr.msk.bf16.mxu0 %vm8247_vm13, %v6247_v18  ;;  %v6718_v8 = vadd.f32 %v1972_v62, %v1550_v23  ;;  %8258 = vst [vmem:[#allocation39_spill] sm:$0xff] %v8257_v31  ;;  %v6737_v23 = vadd.f32 %v2063_v32, %v6541_v30  ;;  %vm6739_vm7 = vcmp.eq.s32.totalorder %v838_v11, 15  ;;  %v1378_v37 = vpop.f32.mrb[17].mxu1  ;;  %v719_v35 = vand.u32 15, %v6331_v24  ;;  %v4987_v11 = vpop.f32.mrb[58].mxu0 }
 0x276   : > { %vm6728_vm9 = vcmp.eq.s32.totalorder %v8252_v17, 0  ;;  %v8261_v48 = vsel %vm6739_vm7, 4294967295, %v8260_v48  ;;  %v6747_v1 = vadd.s32 184, %v6331_v24  ;;  %v1433_v38 = vrot.slane %v1378_v37, 7  ;;  %v4923_v49 = vpop.f32.mrb[18].mxu1  ;;  %v1861_v59 = vpop.f32.mrb[59].mxu0 }
 0x277   : > { %v8254_v46 = vsel %vm6728_vm9, 4294967295, %v8253_v46  ;;  %8259 = vst [vmem:[#allocation40_spill] sm:$0xff] %v6737_v23  ;;  %8262 = vst [vmem:[#allocation41_spill] sm:$0xff] %v8261_v48  ;;  %v1937_v30 = vrot.slane %v1858_v56, 1  ;;  %v1554_v62 = vsel %vm6645_vm1, 0.0, %v6599_v51  ;;  %v6754_v32 = vadd.s32 200, %v6331_v24 }
 0x278   : > { %8255 = vst [vmem:[#allocation38_spill] sm:$0xff] %v8254_v46  ;;  %v1435_v17 = vrot.slane %v4922_v28, 7  ;;  %v1436_v29 = vrot.slane %v4923_v49, 7  ;;  %v1940_v41 = vrot.slane %v4987_v11, 1  ;;  %v1381_v15 = vpop.f32.mrb[19].mxu1  ;;  %vm8263_vm12 = vcmp.lt.s32.totalorder %v6331_v24, 1 }
 0x279   : > { %v6758_v27 = vsel %vm8263_vm12, %v1432_v12, %v1433_v38  ;;  %vm8264_vm13 = vcmp.lt.s32.totalorder %v6331_v24, 7  ;;  %v1434_v56 = vrot.slane %v1381_v15, 7  ;;  %v1938_v23 = vrot.slane %v1861_v59, 1  ;;  %vm8265_vm0 = vmmov %vm8263_vm12 }
 0x27a   : > { %v1969_v37 = vsel %vm8264_vm13, %v1936_v16, %v1937_v30  ;;  %v6764_v51 = vsel %vm8265_vm0, %v1435_v17, %v1436_v29  ;;  %vm8266_vm14 = vmmov %vm8264_vm13  ;;  %vm8267_vm1 = vcmask 261120   ;;  %v1556_v15 = vsel %vm6669_vm4, 0.0, %v6620_v33 }
 0x27b   : > { %v1966_v28 = vsel %vm8266_vm14, %v1939_v54, %v1940_v41  ;;  %5117 = vmatmul.mubr.msk.bf16.gmra.mrb[28].mxu1 %vm8267_vm1, %v6072_v4  ;;  %vm8268_vm15 = vmmov %vm8267_vm1  ;;  %v2065_v12 = vsel %vm6732_vm5, 0.0, %v1969_v37  ;;  %v6783_v59 = vsel %vm8265_vm0, %v1433_v38, %v1434_v56  ;;  %v4990_v37 = vpop.f32.mrb[60].mxu0 }
 0x27c   : > { %5213 = vmatmul.mubr.msk.bf16.gmra.mrb[164].mxu0 %vm8268_vm15, %v6313_v21  ;;  %vm8269_vm12 = vmmov %vm8265_vm0  ;;  %5120 = vmatprep.mubr.msk.bf16.mxu1 %vm8268_vm15, %v6080_v7  ;;  %v6792_v49 = vadd.f32 %v2065_v12, %v6522_v36  ;;  %v6794_v33 = vadd.f32 %v1966_v28, %v1556_v15  ;;  %v6808_v7 = vadd.s32 240, %v6331_v24  ;;  %v6811_v36 = vadd.s32 224, %v6331_v24 }
 0x27d   : > { %v6779_v16 = vsel %vm8269_vm12, %v1434_v56, %v1435_v17  ;;  %vm8270_vm1 = vmmov %vm8264_vm13  ;;  %v4926_v17 = vpop.f32.mrb[20].mxu1  ;;  %vm6800_vm13 = vcmp.eq.s32.totalorder %v852_v34, 15  ;;  %vm6813_vm12 = vcmp.eq.s32.totalorder %v719_v35, 0  ;;  %v8277_v56 = vmov 0 }
 0x27e   : > { %v1967_v4 = vsel %vm8270_vm1, %v1938_v23, %v1939_v54  ;;  %vm8271_vm14 = vmmov %vm8270_vm1  ;;  %8272 = vst [vmem:[#allocation42_spill] sm:$0xff] %v6794_v33  ;;  %v8273_v54 = vmov 0  ;;  %v8278_v56 = vsel %vm6813_vm12, 4294967295, %v8277_v56  ;;  %v880_v34 = vand.u32 15, %v6747_v1 }
 0x27f   : > { %v1968_v57 = vsel %vm8271_vm14, %v1937_v30, %v1938_v23  ;;  %v2067_v38 = vsel %vm6739_vm7, 0.0, %v1967_v4  ;;  %v8274_v54 = vsel %vm6800_vm13, 4294967295, %v8273_v54  ;;  %v1394_v30 = vpop.f32.mrb[21].mxu1  ;;  %8279 = vst [vmem:[#allocation45_spill] sm:$0xff] %v8278_v56  ;;  %vm6818_vm0 = vcmp.eq.s32.totalorder %v866_v45, 15  ;;  %vm8287_vm5 = vmmov %vm8271_vm14 }
 0x280   : > { %v6796_v11 = vadd.f32 %v1968_v57, %v1554_v62  ;;  %8275 = vst [vmem:[#allocation43_spill] sm:$0xff] %v8274_v54  ;;  %v6805_v23 = vadd.f32 %v2067_v38, %v6624_v50  ;;  %v1874_v62 = vpop.f32.mrb[61].mxu0  ;;  %v8280_v28 = vmov 0  ;;  %v894_v50 = vand.u32 15, %v6754_v32  ;;  %v4927_v4 = vpop.f32.mrb[22].mxu1 }
 0x281   : > { %v8281_v28 = vsel %vm6818_vm0, 4294967295, %v8280_v28  ;;  %v1437_v12 = vrot.slane %v1394_v30, 7  ;;  %v1941_v15 = vrot.slane %v1874_v62, 1  ;;  %v4991_v57 = vpop.f32.mrb[62].mxu0  ;;  %v1560_v38 = vsel %vm6722_vm10, 0.0, %v6699_v52  ;;  %v1397_v33 = vpop.f32.mrb[23].mxu1  ;;  %vm8291_vm10 = vmmov %vm8287_vm5 }
 0x282   : > { %8276 = vst [vmem:[#allocation44_spill] sm:$0xff] %v6805_v23  ;;  %8282 = vst [vmem:[#allocation46_spill] sm:$0xff] %v8281_v28  ;;  %v1558_v35 = vsel %vm6728_vm9, 0.0, %v6678_v20  ;;  %v1439_v48 = vrot.slane %v4926_v17, 7  ;;  %v1943_v1 = vrot.slane %v4990_v37, 1  ;;  %v1440_v45 = vrot.slane %v4927_v4, 7 }
 0x283   : > { %v1944_v31 = vrot.slane %v4991_v57, 1  ;;  %v1877_v23 = vpop.f32.mrb[63].mxu0  ;;  %vm8283_vm1 = vcmp.lt.s32.totalorder %v6331_v24, 1  ;;  %v1965_v30 = vsel %vm8271_vm14, %v1940_v41, %v1941_v15  ;;  %v1438_v62 = vrot.slane %v1397_v33, 7 }
 0x284   : > { %v6831_v32 = vsel %vm8283_vm1, %v1436_v29, %v1437_v12  ;;  %v1942_v39 = vrot.slane %v1877_v23, 1  ;;  %vm8284_vm15 = vmmov %vm8283_vm1  ;;  %v8285_v20 = vrot.slane %v6333_v26, 7  ;;  %v2069_v29 = vsel %vm6800_vm13, 0.0, %v1965_v30 }
 0x285   : > { %v6837_v52 = vsel %vm8284_vm15, %v1439_v48, %v1440_v45  ;;  %vm8286_vm7 = vmmov %vm8283_vm1  ;;  %v1962_v37 = vsel %vm8287_vm5, %v1943_v1, %v1944_v31  ;;  %vm8288_vm1 = vcmask 261120   ;;  %v6866_v4 = vadd.f32 %v2069_v29, %v6605_v42 }
 0x286   : > { %v1473_v17 = vsel %vm8286_vm7, %v1440_v45, %v8285_v20  ;;  %5121 = vmatmul.mubr.msk.bf16.gmra.mrb[32].mxu1 %vm8288_vm1, %v6096_v22  ;;  %vm8289_vm14 = vmmov %vm8286_vm7  ;;  %v1963_v26 = vsel %vm8291_vm10, %v1942_v39, %v1943_v1  ;;  %v8294_v42 = vand.u32 15, %v6663_v44  ;;  %v8302_v20 = vmov 0 }
 0x287   : > { %v6851_v41 = vsel %vm8289_vm14, %v1438_v62, %v1439_v48  ;;  %vm8290_vm15 = vmmov %vm8286_vm7  ;;  %v1538_v22 = vsel %vm6813_vm12, 0.0, %v1473_v17  ;;  %v6868_v48 = vadd.f32 %v1962_v37, %v1560_v38  ;;  %v8295_v38 = vmov 0 }
 0x288   : > { %v6855_v33 = vsel %vm8290_vm15, %v1437_v12, %v1438_v62  ;;  %vm8292_vm7 = vmmov %vm8287_vm5  ;;  %v4994_v12 = vpop.f32.mrb[64].mxu0  ;;  %v6873_v45 = vadd.f32 %v6464_v9, %v1538_v22  ;;  %vm6883_vm10 = vcmp.eq.s32.totalorder %v8294_v42, 0  ;;  %v8299_v9 = vmov 0 }
 0x289   : > { %v1964_v23 = vsel %vm8292_vm7, %v1941_v15, %v1942_v39  ;;  %vm8293_vm5 = vmmov %vm8288_vm1  ;;  %v2071_v39 = vsel %vm6818_vm0, 0.0, %v1963_v26  ;;  %v710_v15 = vadd.s32 216, %v6331_v24  ;;  %v8296_v38 = vsel %vm6883_vm10, 4294967295, %v8295_v38 }
 0x28a   : > { %5124 = vmatprep.mubr.msk.bf16.mxu1 %vm8293_vm5, %v6104_v25  ;;  %v6870_v57 = vadd.f32 %v1964_v23, %v1558_v35  ;;  %v1890_v25 = vpop.f32.mrb[65].mxu0  ;;  %v6879_v1 = vadd.f32 %v2071_v39, %v6703_v3  ;;  %8297 = vst [vmem:[#allocation47_spill] sm:$0xff] %v8296_v38  ;;  %v8298_v35 = vand.u32 15, %v6581_v6  ;;  %vm6893_vm14 = vcmp.eq.s32.totalorder %v880_v34, 15  ;;  %vm8307_vm5 = vmmov %vm8292_vm7 }
 0x28b   : > { %v1945_v30 = vrot.slane %v1890_v25, 1  ;;  %v4995_v62 = vpop.f32.mrb[66].mxu0  ;;  %v8303_v20 = vsel %vm6893_vm14, 4294967295, %v8302_v20  ;;  %v929_v3 = vand.u32 15, %v6808_v7  ;;  %v915_v44 = vand.u32 15, %v6811_v36  ;;  %vm8310_vm13 = vmmov %vm8307_vm5 }
 0x28c   : > { %vm6889_vm1 = vcmp.eq.s32.totalorder %v8298_v35, 0  ;;  %8304 = vst [vmem:[#allocation49_spill] sm:$0xff] %v8303_v20  ;;  %v1947_v17 = vrot.slane %v4994_v12, 1  ;;  %v1948_v37 = vrot.slane %v4995_v62, 1  ;;  %v1893_v29 = vpop.f32.mrb[67].mxu0  ;;  %vm6899_vm15 = vcmp.eq.s32.totalorder %v894_v50, 15 }
 0x28d   : > { %v8300_v9 = vsel %vm6889_vm1, 4294967295, %v8299_v9  ;;  %v8305_v26 = vmov 0  ;;  %v712_v6 = vadd.s32 232, %v6331_v24  ;;  %v1961_v23 = vsel %vm8292_vm7, %v1944_v31, %v1945_v30  ;;  %vm8309_vm7 = vmmov %vm8307_vm5  ;;  %v4998_v35 = vpop.f32.mrb[68].mxu0 }
 0x28e   : > { %8301 = vst [vmem:[#allocation48_spill] sm:$0xff] %v8300_v9  ;;  %v8306_v26 = vsel %vm6899_vm15, 4294967295, %v8305_v26  ;;  %v1946_v34 = vrot.slane %v1893_v29, 1  ;;  %v908_v22 = vand.u32 15, %v710_v15  ;;  %v714_v39 = vadd.s32 248, %v6331_v24 }
 0x28f   : > { %v1958_v7 = vsel %vm8307_vm5, %v1947_v17, %v1948_v37  ;;  %vm8308_vm0 = vcmask 261120   ;;  %v2073_v36 = vsel %vm6893_vm14, 0.0, %v1961_v23  ;;  %v1564_v50 = vsel %vm6883_vm10, 0.0, %v6779_v16 }
 0x290   : > { %5125 = vmatmul.mubr.msk.bf16.gmra.mrb[36].mxu1 %vm8308_vm0, %v6115_v40  ;;  %v1562_v31 = vsel %vm6889_vm1, 0.0, %v6758_v27  ;;  %v1959_v12 = vsel %vm8309_vm7, %v1946_v34, %v1947_v17  ;;  %v1960_v15 = vsel %vm8310_vm13, %v1945_v30, %v1946_v34  ;;  %vm8311_vm5 = vmmov %vm8308_vm0  ;;  %v6926_v40 = vadd.f32 %v2073_v36, %v6684_v60  ;;  %v1906_v30 = vpop.f32.mrb[69].mxu0 }
 0x291   : > { %5128 = vmatprep.mubr.msk.bf16.mxu1 %vm8311_vm5, %v6123_v43  ;;  %v6928_v25 = vadd.f32 %v1958_v7, %v1564_v50  ;;  %v6930_v42 = vadd.f32 %v1960_v15, %v1562_v31  ;;  %v2075_v16 = vsel %vm6899_vm15, 0.0, %v1959_v12  ;;  %v922_v27 = vand.u32 15, %v712_v6  ;;  %v4999_v60 = vpop.f32.mrb[70].mxu0 }
 0x292   : > { %v6935_v62 = vadd.f32 %v2075_v16, %v6783_v59  ;;  %v936_v17 = vand.u32 15, %v714_v39  ;;  %vm6937_vm13 = vcmp.eq.s32.totalorder %v929_v3, 0  ;;  %v8312_v29 = vmov 0  ;;  %v1909_v59 = vpop.f32.mrb[71].mxu0 }
 0x293   : > { %v8313_v29 = vsel %vm6937_vm13, 4294967295, %v8312_v29  ;;  %v1949_v43 = vrot.slane %v1906_v30, 1  ;;  %vm6941_vm0 = vcmp.eq.s32.totalorder %v908_v22, 15  ;;  %vm6945_vm7 = vcmp.eq.s32.totalorder %v915_v44, 0 }
 0x294   : > { %8314 = vst [vmem:[#allocation50_spill] sm:$0xff] %v8313_v29  ;;  %v8317_v34 = vmov 0  ;;  %v1951_v6 = vrot.slane %v4998_v35, 1  ;;  %v1952_v7 = vrot.slane %v4999_v60, 1  ;;  %vm6949_vm5 = vcmp.eq.s32.totalorder %v922_v27, 15 }
 0x295   : > { %v8318_v34 = vsel %vm6945_vm7, 4294967295, %v8317_v34  ;;  %v8320_v39 = vmov 0  ;;  %vm8323_vm15 = vcmp.lt.s32.totalorder %v6331_v24, 7  ;;  %v1950_v36 = vrot.slane %v1909_v59, 1 }
 0x296   : > { %8319 = vst [vmem:[#allocation51_spill] sm:$0xff] %v8318_v34  ;;  %v8321_v39 = vsel %vm6949_vm5, 4294967295, %v8320_v39  ;;  %v1957_v3 = vsel %vm8323_vm15, %v1948_v37, %v1949_v43  ;;  %v1568_v22 = vsel %vm6937_vm13, 0.0, %v6851_v41  ;;  %vm6958_vm14 = vcmp.eq.s32.totalorder %v936_v17, 15  ;;  %vm8327_vm12 = vmmov %vm8323_vm15  ;;  %v5042_v17 = vpop.f32.mrb[72].mxu0 }
 0x297   : > { %8322 = vst [vmem:[#allocation52_spill] sm:$0xff] %v8321_v39  ;;  %v8324_v44 = vmov 0  ;;  %v1954_v50 = vsel %vm8327_vm12, %v1951_v6, %v1952_v7  ;;  %v8328_v31 = vrot.slane %v6410_v19, 1  ;;  %vm8329_vm10 = vmmov %vm8327_vm12  ;;  %vm8330_vm1 = vcmask 261120  }
 0x298   : > { %v8325_v44 = vsel %vm6958_vm14, 4294967295, %v8324_v44  ;;  %5129 = vmatmul.mubr.msk.bf16.gmra.mrb[40].mxu1 %vm8330_vm1, %v6133_v58  ;;  %v2077_v37 = vsel %vm6941_vm0, 0.0, %v1957_v3  ;;  %v1566_v41 = vsel %vm6945_vm7, 0.0, %v6831_v32  ;;  %vm8331_vm15 = vmmov %vm8329_vm10  ;;  %v6984_v58 = vadd.f32 %v1954_v50, %v1568_v22 }
 0x299   : > { %8326 = vst [vmem:[#allocation53_spill] sm:$0xff] %v8325_v44  ;;  %v1985_v12 = vsel %vm8329_vm10, %v1952_v7, %v8328_v31  ;;  %v1955_v15 = vsel %vm8331_vm15, %v1950_v36, %v1951_v6  ;;  %vm8332_vm12 = vmmov %vm8329_vm10  ;;  %v6982_v19 = vadd.f32 %v2077_v37, %v6764_v51  ;;  %v5554_v51 = vld [vmem:[%s8059_s6] sm:$0xff]   ;;  %v2568_v6 = vrot.slane %v5042_v17, 7  ;;  %v5557_v31 = vld [vmem:[#allocation2 + $0x70] sm:$0xff] }
 0x29a   : > { %v1956_v16 = vsel %vm8332_vm12, %v1949_v43, %v1950_v36  ;;  %vm8333_vm13 = vmmov %vm8330_vm1  ;;  %v2081_v35 = vsel %vm6958_vm14, 0.0, %v1985_v12  ;;  %v2079_v32 = vsel %vm6949_vm5, 0.0, %v1955_v15  ;;  %5216 = vmatprep.subr.bf16.mxu1 %v5554_v51  ;;  %vm8334_vm10 = vcmp.lt.s32.totalorder %v6331_v24, 1 }
 0x29b   : > { %5132 = vmatprep.mubr.msk.bf16.mxu1 %vm8333_vm13, %v6141_v0  ;;  %v6986_v27 = vadd.f32 %v1956_v16, %v1566_v41  ;;  %v6993_v30 = vadd.f32 %v2081_v35, %v6837_v52  ;;  %v6996_v43 = vadd.f32 %v2079_v32, %v6855_v33  ;;  %v6998_v0 = vpop.f32.mrb[73].mxu0  ;;  %5217 = vmatpush3.bf16.msra.mxu1 %v5554_v51  ;;  %v5556_v33 = vld [vmem:[#allocation2 + $0x68] sm:$0xff]  ;;  %vm8335_vm13 = vmmov %vm8334_vm10  ;;  %v8338_v41 = vld [vmem:[#allocation21_spill] sm:$0xff] }
 0x29c   : > { %v5043_v60 = vpop.f32.mrb[74].mxu0  ;;  %v8142_v3 = vrot.slane %v6998_v0, 7  ;;  %vm8336_vm15 = vmmov %vm8334_vm10  ;;  %v8339_v35 = vld [vmem:[#allocation18_spill] sm:$0xff] }
 0x29d   : > { %v2569_v7 = vrot.slane %v5043_v60, 7  ;;  %v2442_v59 = vpop.f32.mrb[75].mxu0  ;;  %vm8337_vm12 = vmmov %vm8330_vm1 }
 0x29e   : > { %v2567_v36 = vrot.slane %v2442_v59, 7  ;;  %v5046_v16 = vpop.f32.mrb[76].mxu0 }
 0x29f   : > { %v2626_v52 = vsel %vm8334_vm10, %v2568_v6, %v2569_v7  ;;  %v2455_v17 = vpop.f32.mrb[77].mxu0 }
 0x2a0   : > { %5133 = vmatmul.mubr.msk.bf16.gmra.mrb[44].mxu1 %vm8330_vm1, %v5556_v33  ;;  %v2627_v22 = vsel %vm8335_vm13, %v2567_v36, %v2568_v6  ;;  %v2628_v50 = vsel %vm8336_vm15, %v8142_v3, %v2567_v36  ;;  %v7015_v12 = vadd.f32 %v6552_v5, %v2626_v52  ;;  %v2570_v51 = vrot.slane %v2455_v17, 7  ;;  %v5047_v60 = vpop.f32.mrb[78].mxu0  ;;  %vm8340_vm1 = vmmov %vm8334_vm10 }
 0x2a1   : > { %5136 = vmatprep.mubr.msk.bf16.mxu1 %vm8337_vm12, %v5557_v31  ;;  %v2632_v37 = vsel %vm6396_vm2, 0.0, %v2627_v22  ;;  %v7020_v15 = vadd.f32 %v8338_v41, %v2628_v50  ;;  %v2572_v6 = vrot.slane %v5046_v16, 7  ;;  %v2573_v59 = vrot.slane %v5047_v60, 7  ;;  %v2458_v36 = vpop.f32.mrb[79].mxu0  ;;  %v5558_v22 = vld [vmem:[#allocation2 + $0x78] sm:$0xff]  ;;  %vm8341_vm13 = vmmov %vm8337_vm12 }
 0x2a2   : > { %v7023_v32 = vadd.f32 %v8339_v35, %v2632_v37  ;;  %v2625_v5 = vsel %vm8334_vm10, %v2569_v7, %v2570_v51  ;;  %v2571_v52 = vrot.slane %v2458_v36, 7  ;;  %vm8343_vm15 = vmmov %vm8340_vm1  ;;  %v8346_v7 = vld [vmem:[#allocation26_spill] sm:$0xff]  ;;  %v8348_v36 = vld [vmem:[#allocation28_spill] sm:$0xff] }
 0x2a3   : > { %v2622_v33 = vsel %vm8340_vm1, %v2572_v6, %v2573_v59  ;;  %v2634_v31 = vsel %vm6400_vm3, 0.0, %v2625_v5  ;;  %vm8344_vm12 = vmmov %vm8340_vm1 }
 0x2a4   : > { %v2623_v37 = vsel %vm8343_vm15, %v2571_v52, %v2572_v6  ;;  %v2624_v41 = vsel %vm8344_vm12, %v2570_v51, %v2571_v52  ;;  %vm8345_vm2 = vmmov %vm8341_vm13  ;;  %v7039_v16 = vadd.f32 %v8346_v7, %v2634_v31  ;;  %v7042_v35 = vadd.f32 %v6635_v2, %v2622_v33  ;;  %v8349_v6 = vld [vmem:[#allocation25_spill] sm:$0xff] }
 0x2a5   : > { %v2636_v60 = vsel %vm6418_vm6, 0.0, %v2623_v37  ;;  %v7047_v5 = vadd.f32 %v8348_v36, %v2624_v41  ;;  %vm8351_vm10 = vmmov %vm8340_vm1 }
 0x2a6   : > { %v7050_v3 = vadd.f32 %v8349_v6, %v2636_v60 }
 0x2a8   : > { %5137 = vmatmul.mubr.msk.bf16.gmra.mrb[48].mxu1 %vm8341_vm13, %v5558_v22  ;;  %v5050_v22 = vpop.f32.mrb[80].mxu0 }
 0x2a9   : > { %5140 = vmatprep.mubr.msk.bf16.mxu1 %vm8345_vm2, %v6247_v18  ;;  %v2471_v51 = vpop.f32.mrb[81].mxu0  ;;  %v2576_v18 = vrot.slane %v5050_v22, 7  ;;  %vm8350_vm2 = vmmov %vm8340_vm1 }
 0x2aa   : > { %v2574_v52 = vrot.slane %v2471_v51, 7  ;;  %v5051_v50 = vpop.f32.mrb[82].mxu0  ;;  %vm8352_vm1 = vmmov %vm8341_vm13  ;;  %v8356_v51 = vld [vmem:[#allocation32_spill] sm:$0xff] }
 0x2ab   : > { %v2577_v10 = vrot.slane %v5051_v50, 7  ;;  %v2474_v31 = vpop.f32.mrb[83].mxu0  ;;  %vm8354_vm13 = vmmov %vm8350_vm2 }
 0x2ac   : > { %v2621_v2 = vsel %vm8350_vm2, %v2573_v59, %v2574_v52  ;;  %v2575_v33 = vrot.slane %v2474_v31, 7  ;;  %vm8355_vm15 = vmmov %vm8350_vm2  ;;  %v5054_v6 = vpop.f32.mrb[84].mxu0 }
 0x2ad   : > { %v2618_v37 = vsel %vm8351_vm10, %v2576_v18, %v2577_v10  ;;  %v2638_v7 = vsel %vm6478_vm8, 0.0, %v2621_v2  ;;  %vm8357_vm12 = vmmov %vm8350_vm2 }
 0x2ae   : > { %v2619_v60 = vsel %vm8354_vm13, %v2575_v33, %v2576_v18  ;;  %v2620_v50 = vsel %vm8355_vm15, %v2574_v52, %v2575_v33  ;;  %v7065_v36 = vadd.f32 %v6639_v55, %v2638_v7  ;;  %v7068_v59 = vadd.f32 %v6714_v47, %v2618_v37  ;;  %v2487_v18 = vpop.f32.mrb[85].mxu0 }
 0x2af   : > { %v2640_v22 = vsel %vm6507_vm11, 0.0, %v2619_v60  ;;  %v2578_v2 = vrot.slane %v2487_v18, 7  ;;  %v5055_v41 = vpop.f32.mrb[86].mxu0  ;;  %v2580_v52 = vrot.slane %v5054_v6, 7  ;;  %v8358_v60 = vld [vmem:[#allocation27_spill] sm:$0xff]  ;;  %vm8362_vm15 = vnez %v8225_v53 }
 0x2b0   : > { %5141 = vmatmul.mubr.msk.bf16.gmra.mrb[52].mxu1 %vm8352_vm1, %v6313_v21  ;;  %v7073_v21 = vadd.f32 %v6650_v14, %v2620_v50  ;;  %v7076_v31 = vadd.f32 %v8356_v51, %v2640_v22  ;;  %v2581_v33 = vrot.slane %v5055_v41, 7  ;;  %v2490_v55 = vpop.f32.mrb[87].mxu0  ;;  %vm8359_vm10 = vnez %v8358_v60  ;;  %vm8360_vm1 = vmmov %vm8350_vm2  ;;  %v8363_v51 = vld [vmem:[#allocation40_spill] sm:$0xff] }
 0x2b1   : > { %v2617_v47 = vsel %vm8357_vm12, %v2577_v10, %v2578_v2  ;;  %v2579_v37 = vrot.slane %v2490_v55, 7  ;;  %vm8361_vm13 = vmmov %vm8360_vm1  ;;  %v5058_v55 = vpop.f32.mrb[88].mxu0 }
 0x2b2   : > { %v2614_v7 = vsel %vm8350_vm2, %v2580_v52, %v2581_v33  ;;  %v2642_v14 = vsel %vm8359_vm10, 0.0, %v2617_v47  ;;  %v8364_v47 = vld [vmem:[#allocation36_spill] sm:$0xff]  ;;  %vm8365_vm12 = vmmov %vm8360_vm1 }
 0x2b3   : > { %v2615_v50 = vsel %vm8360_vm1, %v2579_v37, %v2580_v52  ;;  %v2616_v22 = vsel %vm8361_vm13, %v2578_v2, %v2579_v37  ;;  %v7089_v6 = vadd.f32 %v6718_v8, %v2642_v14  ;;  %v7092_v41 = vadd.f32 %v6792_v49, %v2614_v7  ;;  %v2503_v52 = vpop.f32.mrb[89].mxu0  ;;  %v5555_v2 = vld [vmem:[%s8059_s6 + $0x8] sm:$0xff]   ;;  %vm8366_vm2 = vmmov %vm8360_vm1 }
 0x2b4   : > { %v2644_v10 = vsel %vm8362_vm15, 0.0, %v2615_v50  ;;  %v7097_v18 = vadd.f32 %v8363_v51, %v2616_v22  ;;  %v2582_v8 = vrot.slane %v2503_v52, 7  ;;  %v5059_v37 = vpop.f32.mrb[90].mxu0  ;;  %v2584_v14 = vrot.slane %v5058_v55, 7  ;;  %5218 = vmatprep.subr.bf16.mxu1 %v5555_v2  ;;  %vm8368_vm13 = vmmov %vm8366_vm2 }
 0x2b5   : > { %v7100_v60 = vadd.f32 %v8364_v47, %v2644_v10  ;;  %v2585_v49 = vrot.slane %v5059_v37, 7  ;;  %v2506_v7 = vpop.f32.mrb[91].mxu0  ;;  %5219 = vmatpush3.bf16.msra.mxu1 %v5555_v2  ;;  %vm8367_vm1 = vnez %v8230_v61  ;;  %vm8369_vm10 = vmmov %vm8366_vm2  ;;  %v8370_v2 = vld [vmem:[#allocation44_spill] sm:$0xff] }
 0x2b6   : > { %v2613_v50 = vsel %vm8365_vm12, %v2581_v33, %v2582_v8  ;;  %v2583_v22 = vrot.slane %v2506_v7, 7  ;;  %v5062_v61 = vpop.f32.mrb[92].mxu0  ;;  %vm8373_vm12 = vmmov %vm8366_vm2 }
 0x2b7   : > { %v2610_v10 = vsel %vm8366_vm2, %v2584_v14, %v2585_v49  ;;  %v2646_v51 = vsel %vm8367_vm1, 0.0, %v2613_v50  ;;  %v8371_v50 = vld [vmem:[#allocation42_spill] sm:$0xff] }
 0x2b8   : > { %v2611_v47 = vsel %vm8368_vm13, %v2583_v22, %v2584_v14  ;;  %v2612_v55 = vsel %vm8369_vm10, %v2582_v8, %v2583_v22  ;;  %v7116_v52 = vadd.f32 %v6796_v11, %v2646_v51  ;;  %v7119_v37 = vadd.f32 %v6866_v4, %v2610_v10  ;;  %v2519_v14 = vpop.f32.mrb[93].mxu0  ;;  %vm8372_vm10 = vmmov %vm8366_vm2 }
 0x2b9   : > { %v2648_v33 = vsel %vm6669_vm4, 0.0, %v2611_v47  ;;  %v7124_v7 = vadd.f32 %v8370_v2, %v2612_v55  ;;  %v2586_v63 = vrot.slane %v2519_v14, 7  ;;  %v5063_v17 = vpop.f32.mrb[94].mxu0  ;;  %v2588_v8 = vrot.slane %v5062_v61, 7  ;;  %vm8374_vm13 = vmmov %vm8366_vm2 }
 0x2ba   : > { %v7127_v53 = vadd.f32 %v8371_v50, %v2648_v33  ;;  %v2589_v22 = vrot.slane %v5063_v17, 7  ;;  %v2522_v11 = vpop.f32.mrb[95].mxu0 }
 0x2bb   : > { %v2609_v4 = vsel %vm8372_vm10, %v2585_v49, %v2586_v63  ;;  %v2587_v10 = vrot.slane %v2522_v11, 7  ;;  %v8375_v49 = vld [vmem:[#allocation37_spill] sm:$0xff] }
 0x2bc   : > { %v2606_v51 = vsel %vm8373_vm12, %v2588_v8, %v2589_v22  ;;  %v2650_v47 = vsel %vm6728_vm9, 0.0, %v2609_v4  ;;  %vm8376_vm10 = vnez %v8375_v49  ;;  %v5066_v14 = vpop.f32.mrb[96].mxu0  ;;  %vm8377_vm12 = vmmov %vm8366_vm2 }
 0x2bd   : > { %v2607_v55 = vsel %vm8366_vm2, %v2587_v10, %v2588_v8  ;;  %v2608_v33 = vsel %vm8374_vm13, %v2586_v63, %v2587_v10  ;;  %v7140_v61 = vadd.f32 %v6870_v57, %v2650_v47  ;;  %v7143_v17 = vadd.f32 %v6926_v40, %v2606_v51  ;;  %v2535_v8 = vpop.f32.mrb[97].mxu0  ;;  %vm8379_vm9 = vmmov %vm8366_vm2 }
 0x2be   : > { %v2652_v2 = vsel %vm8376_vm10, 0.0, %v2607_v55  ;;  %v7148_v50 = vadd.f32 %v6879_v1, %v2608_v33  ;;  %v2590_v4 = vrot.slane %v2535_v8, 7  ;;  %v5067_v46 = vpop.f32.mrb[98].mxu0  ;;  %v2592_v63 = vrot.slane %v5066_v14, 7  ;;  %vm8380_vm10 = vmmov %vm8366_vm2 }
 0x2bf   : > { %v7151_v11 = vadd.f32 %v6868_v48, %v2652_v2  ;;  %v2593_v10 = vrot.slane %v5067_v46, 7  ;;  %v2538_v57 = vpop.f32.mrb[99].mxu0  ;;  %vm8378_vm13 = vnez %v8300_v9 }
 0x2c0   : > { %v2605_v40 = vsel %vm8377_vm12, %v2589_v22, %v2590_v4  ;;  %v2591_v51 = vrot.slane %v2538_v57, 7  ;;  %vm8381_vm12 = vnez %v8296_v38 }
 0x2c1   : > { %v2602_v47 = vsel %vm8366_vm2, %v2592_v63, %v2593_v10  ;;  %v2654_v1 = vsel %vm8378_vm13, 0.0, %v2605_v40  ;;  %vm8385_vm13 = vmmov %vm8366_vm2 }
 0x2c2   : > { %v2603_v48 = vsel %vm8379_vm9, %v2591_v51, %v2592_v63  ;;  %v2604_v55 = vsel %vm8380_vm10, %v2590_v4, %v2591_v51  ;;  %v7164_v33 = vadd.f32 %v6930_v42, %v2654_v1  ;;  %v7167_v46 = vadd.f32 %v6982_v19, %v2602_v47  ;;  %vm8382_vm9 = vmmov %vm8366_vm2 }
 0x2c3   : > { %v2656_v22 = vsel %vm8381_vm12, 0.0, %v2603_v48  ;;  %v7172_v2 = vadd.f32 %v6935_v62, %v2604_v55  ;;  %vm8383_vm10 = vmmov %vm8366_vm2  ;;  %v8384_v62 = vrot.slane %v6998_v0, 7 }
 0x2c4   : > { %v5070_v14 = vpop.f32.mrb[100].mxu0  ;;  %v7175_v8 = vadd.f32 %v6928_v25, %v2656_v22  ;;  %vm8386_vm12 = vmmov %vm8366_vm2 }
 0x2c5   : > { %v2551_v63 = vpop.f32.mrb[101].mxu0  ;;  %v2596_v4 = vrot.slane %v5070_v14, 7 }
 0x2c6   : > { %v2594_v57 = vrot.slane %v2551_v63, 7  ;;  %v5071_v40 = vpop.f32.mrb[102].mxu0 }
 0x2c7   : > { %v2597_v51 = vrot.slane %v5071_v40, 7  ;;  %v2554_v42 = vpop.f32.mrb[103].mxu0 }
 0x2c8   : > { %v2601_v19 = vsel %vm8382_vm9, %v2593_v10, %v2594_v57  ;;  %v2595_v47 = vrot.slane %v2554_v42, 7  ;;  %vm8387_vm9 = vnez %v8278_v56 }
 0x2c9   : > { %v2598_v1 = vsel %vm8383_vm10, %v2596_v4, %v2597_v51  ;;  %v2629_v48 = vsel %vm8366_vm2, %v2597_v51, %v8384_v62  ;;  %v2658_v25 = vsel %vm6945_vm7, 0.0, %v2601_v19  ;;  %vm8388_vm10 = vnez %v8313_v29  ;;  %vm8397_vm7 = vmmov %vm8366_vm2 }
 0x2ca   : > { %v2599_v55 = vsel %vm8385_vm13, %v2595_v47, %v2596_v4  ;;  %v2600_v22 = vsel %vm8386_vm12, %v2594_v57, %v2595_v47  ;;  %v2630_v10 = vsel %vm8387_vm9, 0.0, %v2629_v48  ;;  %v7194_v14 = vadd.f32 %v6986_v27, %v2658_v25  ;;  %vm8389_vm13 = vmmov %vm8366_vm2 }
 0x2cb   : > { %v7197_v0 = vadd.f32 %v6873_v45, %v2630_v10  ;;  %v2660_v63 = vsel %vm8388_vm10, 0.0, %v2599_v55  ;;  %v7202_v40 = vadd.f32 %v6993_v30, %v2598_v1  ;;  %v7205_v4 = vadd.f32 %v6996_v43, %v2600_v22  ;;  %vm8391_vm12 = vmmov %vm8366_vm2 }
 0x2cc   : > { %v5150_v51 = vpop.f32.mrb[104].mxu0  ;;  %v7208_v57 = vadd.f32 %v6984_v58, %v2660_v63 }
 0x2cd   : > { %v7210_v42 = vpop.f32.mrb[105].mxu0  ;;  %v3454_v19 = vrot.slane %v5150_v51, 7 }
 0x2ce   : > { %v5151_v27 = vpop.f32.mrb[106].mxu0  ;;  %v8150_v62 = vrot.slane %v7210_v42, 7 }
 0x2cf   : > { %v3455_v47 = vrot.slane %v5151_v27, 7  ;;  %v3328_v45 = vpop.f32.mrb[107].mxu0 }
 0x2d0   : > { %v3453_v48 = vrot.slane %v3328_v45, 7 }
 0x2d1   : > { %v7215_v30 = vsel %vm8389_vm13, %v3454_v19, %v3455_v47  ;;  %vm8393_vm13 = vmmov %vm8366_vm2 }
 0x2d2   : > { %8390 = vst [vmem:[#allocation21_spill] sm:$0xff] %v7215_v30  ;;  %v7219_v43 = vsel %vm8391_vm12, %v3453_v48, %v3454_v19  ;;  %v7225_v58 = vsel %vm8366_vm2, %v8150_v62, %v3453_v48  ;;  %vm8395_vm12 = vmmov %vm8366_vm2 }
 0x2d3   : > { %8392 = vst [vmem:[#allocation18_spill] sm:$0xff] %v7225_v58 }
 0x2d4   : > { %v5154_v1 = vpop.f32.mrb[108].mxu0 }
 0x2d5   : > { %v3341_v25 = vpop.f32.mrb[109].mxu0  ;;  %v3458_v10 = vrot.slane %v5154_v1, 7 }
 0x2d6   : > { %v3456_v55 = vrot.slane %v3341_v25, 7  ;;  %v5155_v22 = vpop.f32.mrb[110].mxu0 }
 0x2d7   : > { %v3459_v63 = vrot.slane %v5155_v22, 7  ;;  %v3344_v51 = vpop.f32.mrb[111].mxu0 }
 0x2d8   : > { %v3457_v27 = vrot.slane %v3344_v51, 7  ;;  %v7229_v45 = vsel %vm8393_vm13, %v3455_v47, %v3456_v55  ;;  %vm8400_vm13 = vmmov %vm8366_vm2 }
 0x2d9   : > { %8394 = vst [vmem:[#allocation26_spill] sm:$0xff] %v7229_v45  ;;  %v7233_v19 = vsel %vm8395_vm12, %v3458_v10, %v3459_v63  ;;  %vm8402_vm12 = vmmov %vm8366_vm2 }
 0x2da   : > { %8396 = vst [vmem:[#allocation28_spill] sm:$0xff] %v7233_v19  ;;  %v7237_v48 = vsel %vm8397_vm7, %v3457_v27, %v3458_v10  ;;  %v7241_v25 = vsel %vm8366_vm2, %v3456_v55, %v3457_v27  ;;  %vm8404_vm7 = vmmov %vm8366_vm2 }
 0x2db   : > { %8398 = vst [vmem:[#allocation25_spill] sm:$0xff] %v7237_v48  ;;  %8399 = vst [vmem:[#allocation32_spill] sm:$0xff] %v7241_v25 }
 0x2dc   : > { %v5158_v1 = vpop.f32.mrb[112].mxu0 }
 0x2dd   : > { %v3357_v22 = vpop.f32.mrb[113].mxu0  ;;  %v3462_v34 = vrot.slane %v5158_v1, 7 }
 0x2de   : > { %v3460_v62 = vrot.slane %v3357_v22, 7  ;;  %v5159_v51 = vpop.f32.mrb[114].mxu0 }
 0x2df   : > { %v3463_v29 = vrot.slane %v5159_v51, 7  ;;  %v3360_v47 = vpop.f32.mrb[115].mxu0 }
 0x2e0   : > { %v3461_v9 = vrot.slane %v3360_v47, 7  ;;  %v7245_v38 = vsel %vm8400_vm13, %v3459_v63, %v3460_v62  ;;  %vm8407_vm13 = vmmov %vm8366_vm2 }
 0x2e1   : > { %8401 = vst [vmem:[#allocation40_spill] sm:$0xff] %v7245_v38  ;;  %v7249_v10 = vsel %vm8402_vm12, %v3462_v34, %v3463_v29  ;;  %vm8409_vm12 = vmmov %vm8366_vm2 }
 0x2e2   : > { %8403 = vst [vmem:[#allocation36_spill] sm:$0xff] %v7249_v10  ;;  %v7253_v55 = vsel %vm8404_vm7, %v3461_v9, %v3462_v34  ;;  %v7257_v27 = vsel %vm8366_vm2, %v3460_v62, %v3461_v9  ;;  %vm8411_vm7 = vmmov %vm8366_vm2 }
 0x2e3   : > { %8405 = vst [vmem:[#allocation44_spill] sm:$0xff] %v7253_v55  ;;  %8406 = vst [vmem:[#allocation42_spill] sm:$0xff] %v7257_v27 }
 0x2e4   : > { %v5162_v1 = vpop.f32.mrb[116].mxu0 }
 0x2e5   : > { %v3373_v22 = vpop.f32.mrb[117].mxu0  ;;  %v3466_v49 = vrot.slane %v5162_v1, 7 }
 0x2e6   : > { %v3464_v51 = vrot.slane %v3373_v22, 7  ;;  %v5163_v47 = vpop.f32.mrb[118].mxu0 }
 0x2e7   : > { %v3467_v13 = vrot.slane %v5163_v47, 7  ;;  %v3376_v63 = vpop.f32.mrb[119].mxu0 }
 0x2e8   : > { %v3465_v38 = vrot.slane %v3376_v63, 7  ;;  %v7261_v25 = vsel %vm8407_vm13, %v3463_v29, %v3464_v51  ;;  %vm8414_vm13 = vmmov %vm8366_vm2 }
 0x2e9   : > { %8408 = vst [vmem:[#allocation54_spill] sm:$0xff] %v7261_v25  ;;  %v7265_v34 = vsel %vm8409_vm12, %v3466_v49, %v3467_v13  ;;  %vm8416_vm12 = vmmov %vm8366_vm2 }
 0x2ea   : > { %8410 = vst [vmem:[#allocation55_spill] sm:$0xff] %v7265_v34  ;;  %v7269_v9 = vsel %vm8411_vm7, %v3465_v38, %v3466_v49  ;;  %v7273_v62 = vsel %vm8366_vm2, %v3464_v51, %v3465_v38  ;;  %vm8418_vm7 = vmmov %vm8366_vm2 }
 0x2eb   : > { %8412 = vst [vmem:[#allocation56_spill] sm:$0xff] %v7269_v9  ;;  %8413 = vst [vmem:[#allocation57_spill] sm:$0xff] %v7273_v62 }
 0x2ec   : > { %v5166_v1 = vpop.f32.mrb[120].mxu0 }
 0x2ed   : > { %v3389_v22 = vpop.f32.mrb[121].mxu0  ;;  %v3470_v27 = vrot.slane %v5166_v1, 7 }
 0x2ee   : > { %v3468_v47 = vrot.slane %v3389_v22, 7  ;;  %v5167_v63 = vpop.f32.mrb[122].mxu0 }
 0x2ef   : > { %v3471_v10 = vrot.slane %v5167_v63, 7  ;;  %v3392_v29 = vpop.f32.mrb[123].mxu0 }
 0x2f0   : > { %v3469_v25 = vrot.slane %v3392_v29, 7  ;;  %v7277_v55 = vsel %vm8414_vm13, %v3467_v13, %v3468_v47  ;;  %vm8421_vm13 = vmmov %vm8366_vm2 }
 0x2f1   : > { %8415 = vst [vmem:[#allocation58_spill] sm:$0xff] %v7277_v55  ;;  %v7281_v49 = vsel %vm8416_vm12, %v3470_v27, %v3471_v10  ;;  %vm8423_vm12 = vmmov %vm8366_vm2 }
 0x2f2   : > { %8417 = vst [vmem:[#allocation59_spill] sm:$0xff] %v7281_v49  ;;  %v7285_v38 = vsel %vm8418_vm7, %v3469_v25, %v3470_v27  ;;  %v7289_v51 = vsel %vm8366_vm2, %v3468_v47, %v3469_v25  ;;  %vm8425_vm7 = vmmov %vm8366_vm2 }
 0x2f3   : > { %8419 = vst [vmem:[#allocation60_spill] sm:$0xff] %v7285_v38  ;;  %8420 = vst [vmem:[#allocation61_spill] sm:$0xff] %v7289_v51 }
 0x2f4   : > { %v5170_v1 = vpop.f32.mrb[124].mxu0 }
 0x2f5   : > { %v3405_v22 = vpop.f32.mrb[125].mxu0  ;;  %v3474_v62 = vrot.slane %v5170_v1, 7 }
 0x2f6   : > { %v3472_v63 = vrot.slane %v3405_v22, 7  ;;  %v5171_v29 = vpop.f32.mrb[126].mxu0 }
 0x2f7   : > { %v3475_v34 = vrot.slane %v5171_v29, 7  ;;  %v3408_v13 = vpop.f32.mrb[127].mxu0 }
 0x2f8   : > { %v3473_v55 = vrot.slane %v3408_v13, 7  ;;  %v7293_v9 = vsel %vm8421_vm13, %v3471_v10, %v3472_v63  ;;  %vm8428_vm13 = vmmov %vm8366_vm2 }
 0x2f9   : > { %8422 = vst [vmem:[#allocation62_spill] sm:$0xff] %v7293_v9  ;;  %v7297_v27 = vsel %vm8423_vm12, %v3474_v62, %v3475_v34  ;;  %vm8430_vm12 = vcmp.lt.s32.totalorder %v6331_v24, 7 }
 0x2fa   : > { %8424 = vst [vmem:[#allocation63_spill] sm:$0xff] %v7297_v27  ;;  %v7301_v25 = vsel %vm8425_vm7, %v3473_v55, %v3474_v62  ;;  %v7305_v47 = vsel %vm8366_vm2, %v3472_v63, %v3473_v55  ;;  %vm8431_vm7 = vmmov %vm8366_vm2 }
 0x2fb   : > { %8426 = vst [vmem:[#allocation64_spill] sm:$0xff] %v7301_v25  ;;  %8427 = vst [vmem:[#allocation65_spill] sm:$0xff] %v7305_v47 }
 0x2fc   : > { %v5078_v1 = vpop.f32.mrb[56].mxu1  ;;  %v5174_v22 = vpop.f32.mrb[128].mxu0  ;;  %vm8433_vm2 = vmmov %vm8430_vm12 }
 0x2fd   : > { %v7307_v29 = vpop.f32.mrb[57].mxu1  ;;  %v3421_v13 = vpop.f32.mrb[129].mxu0  ;;  %v2874_v49 = vrot.slane %v5078_v1, 1  ;;  %v3478_v38 = vrot.slane %v5174_v22, 7  ;;  %vm8434_vm10 = vmmov %vm8433_vm2  ;;  %v8438_v22 = vld [vmem:[#allocation16_spill] sm:$0xff] }
 0x2fe   : > { %v3476_v51 = vrot.slane %v3421_v13, 7  ;;  %v5079_v10 = vpop.f32.mrb[58].mxu1  ;;  %v5175_v9 = vpop.f32.mrb[130].mxu0  ;;  %v8156_v62 = vrot.slane %v7307_v29, 1 }
 0x2ff   : > { %v2875_v19 = vrot.slane %v5079_v10, 1  ;;  %v3479_v27 = vrot.slane %v5175_v9, 7  ;;  %v2748_v48 = vpop.f32.mrb[59].mxu1  ;;  %v3424_v45 = vpop.f32.mrb[131].mxu0 }
 0x300   : > { %v2873_v25 = vrot.slane %v2748_v48, 1  ;;  %v3477_v58 = vrot.slane %v3424_v45, 7  ;;  %v7312_v55 = vsel %vm8428_vm13, %v3475_v34, %v3476_v51  ;;  %vm8435_vm13 = vmmov %vm8431_vm7 }
 0x301   : > { %8429 = vst [vmem:[#allocation66_spill] sm:$0xff] %v7312_v55  ;;  %v2932_v63 = vsel %vm8430_vm12, %v2874_v49, %v2875_v19  ;;  %v7318_v13 = vsel %vm8431_vm7, %v3478_v38, %v3479_v27  ;;  %vm8439_vm12 = vnez %v8438_v22 }
 0x302   : > { %8432 = vst [vmem:[#allocation67_spill] sm:$0xff] %v7318_v13  ;;  %v7321_v1 = vadd.f32 %v7023_v32, %v2932_v63  ;;  %v2934_v48 = vsel %vm8433_vm2, %v8156_v62, %v2873_v25  ;;  %v2933_v45 = vsel %vm8434_vm10, %v2873_v25, %v2874_v49  ;;  %v7331_v34 = vsel %vm8435_vm13, %v3477_v58, %v3478_v38  ;;  %vm8441_vm10 = vmmov %vm8433_vm2 }
 0x303   : > { %8436 = vst [vmem:[#allocation68_spill] sm:$0xff] %v7331_v34  ;;  %v7334_v9 = vadd.f32 %v7197_v0, %v2934_v48  ;;  %v2937_v10 = vsel %vm8439_vm12, 0.0, %v2933_v45  ;;  %v7340_v32 = vsel %vm8431_vm7, %v3476_v51, %v3477_v58  ;;  %vm8442_vm2 = vmmov %vm8431_vm7 }
 0x304   : > { %8440 = vst [vmem:[#allocation70_spill] sm:$0xff] %v7340_v32  ;;  %v5082_v63 = vpop.f32.mrb[60].mxu1  ;;  %v5178_v13 = vpop.f32.mrb[132].mxu0  ;;  %v7343_v62 = vadd.f32 %v7020_v15, %v2937_v10  ;;  %v8444_v10 = vrot.slane %v7210_v42, 7  ;;  %vm8445_vm13 = vmmov %vm8442_vm2 }
 0x305   : > { %8437 = vst [vmem:[#allocation69_spill] sm:$0xff] %v7334_v9  ;;  %v2761_v49 = vpop.f32.mrb[61].mxu1  ;;  %v3437_v25 = vpop.f32.mrb[133].mxu0  ;;  %v2878_v0 = vrot.slane %v5082_v63, 1  ;;  %v3482_v48 = vrot.slane %v5178_v13, 7  ;;  %v8446_v13 = vld [vmem:[#allocation19_spill] sm:$0xff]  ;;  %vm8448_vm1 = vmmov %vm8441_vm10 }
 0x306   : > { %v2876_v55 = vrot.slane %v2761_v49, 1  ;;  %v3480_v38 = vrot.slane %v3437_v25, 7  ;;  %v5083_v34 = vpop.f32.mrb[62].mxu1  ;;  %v5179_v47 = vpop.f32.mrb[134].mxu0  ;;  %vm8447_vm7 = vnez %v8446_v13 }
 0x307   : > { %v2879_v30 = vrot.slane %v5083_v34, 1  ;;  %v3483_v22 = vrot.slane %v5179_v47, 7  ;;  %v2764_v45 = vpop.f32.mrb[63].mxu1  ;;  %v3440_v56 = vpop.f32.mrb[135].mxu0 }
 0x308   : > { %v2877_v9 = vrot.slane %v2764_v45, 1  ;;  %v3481_v58 = vrot.slane %v3440_v56, 7  ;;  %v2931_v51 = vsel %vm8441_vm10, %v2875_v19, %v2876_v55  ;;  %v7349_v15 = vsel %vm8442_vm2, %v3479_v27, %v3480_v38  ;;  %vm8450_vm10 = vmmov %vm8448_vm1 }
 0x309   : > { %8443 = vst [vmem:[#allocation71_spill] sm:$0xff] %v7349_v15  ;;  %v7355_v49 = vsel %vm8445_vm13, %v3483_v22, %v8444_v10  ;;  %v2939_v47 = vsel %vm8447_vm7, 0.0, %v2931_v51  ;;  %v2928_v34 = vsel %vm8448_vm1, %v2878_v0, %v2879_v30  ;;  %vm8452_vm2 = vmmov %vm8448_vm1  ;;  %v8456_v51 = vld [vmem:[#allocation22_spill] sm:$0xff] }
 0x30a   : > { %v7362_v56 = vadd.f32 %v7015_v12, %v2939_v47  ;;  %v7365_v19 = vadd.f32 %v7050_v3, %v2928_v34  ;;  %v2930_v27 = vsel %vm8450_vm10, %v2876_v55, %v2877_v9  ;;  %v2929_v63 = vsel %vm8452_vm2, %v2877_v9, %v2878_v0  ;;  %vm8454_vm1 = vmmov %vm8445_vm13 }
 0x30b   : > { %v7370_v42 = vadd.f32 %v7039_v16, %v2930_v27  ;;  %v7376_v25 = vsel %vm8445_vm13, %v3481_v58, %v3482_v48  ;;  %v7380_v12 = vsel %vm8454_vm1, %v3482_v48, %v3483_v22  ;;  %vm8457_vm4 = vnez %v8456_v51  ;;  %vm8458_vm10 = vmmov %vm8454_vm1 }
 0x30c   : > { %8449 = vst [vmem:[#allocation19_spill] sm:$0xff] %v7365_v19  ;;  %8453 = vst [vmem:[#allocation73_spill] sm:$0xff] %v7376_v25  ;;  %v5086_v45 = vpop.f32.mrb[64].mxu1  ;;  %v5186_v3 = vpop.f32.mrb[136].mxu0  ;;  %v2941_v10 = vsel %vm8457_vm4, 0.0, %v2929_v63  ;;  %v7386_v16 = vsel %vm8458_vm10, %v3480_v38, %v3481_v58 }
 0x30d   : > { %8451 = vst [vmem:[#allocation72_spill] sm:$0xff] %v7370_v42  ;;  %8455 = vst [vmem:[#allocation74_spill] sm:$0xff] %v7380_v12  ;;  %v2777_v55 = vpop.f32.mrb[65].mxu1  ;;  %v7388_v47 = vpop.f32.mrb[137].mxu0  ;;  %v7391_v9 = vadd.f32 %v7047_v5, %v2941_v10  ;;  %v2882_v22 = vrot.slane %v5086_v45, 1  ;;  %v3760_v48 = vrot.slane %v5186_v3, 1 }
 0x30e   : > { %8459 = vst [vmem:[#allocation75_spill] sm:$0xff] %v7386_v16  ;;  %8460 = vst [vmem:[#allocation76_spill] sm:$0xff] %v7388_v47  ;;  %v2880_v0 = vrot.slane %v2777_v55, 1  ;;  %v5087_v34 = vpop.f32.mrb[66].mxu1  ;;  %v5187_v27 = vpop.f32.mrb[138].mxu0  ;;  %v8161_v63 = vrot.slane %v7388_v47, 1 }
 0x30f   : > { %8461 = vst [vmem:[#allocation77_spill] sm:$0xff] %v7391_v9  ;;  %v2883_v12 = vrot.slane %v5087_v34, 1  ;;  %v3761_v15 = vrot.slane %v5187_v27, 1  ;;  %v2780_v25 = vpop.f32.mrb[67].mxu1  ;;  %v3634_v32 = vpop.f32.mrb[139].mxu0  ;;  %vm8462_vm13 = vmmov %vm8452_vm2  ;;  %v8463_v10 = vld [vmem:[#allocation23_spill] sm:$0xff] }
 0x310   : > { %v2881_v51 = vrot.slane %v2780_v25, 1  ;;  %v3759_v38 = vrot.slane %v3634_v32, 1  ;;  %v2927_v58 = vsel %vm8452_vm2, %v2879_v30, %v2880_v0  ;;  %vm8464_vm1 = vnez %v8463_v10  ;;  %vm8465_vm10 = vmmov %vm8452_vm2  ;;  %v8472_v47 = vld [vmem:[#allocation29_spill] sm:$0xff] }
 0x311   : > { %v7398_v5 = vsel %vm8462_vm13, %v3760_v48, %v3761_v15  ;;  %v2943_v55 = vsel %vm8464_vm1, 0.0, %v2927_v58  ;;  %v2924_v45 = vsel %vm8465_vm10, %v2882_v22, %v2883_v12  ;;  %vm8466_vm15 = vmmov %vm8452_vm2 }
 0x312   : > { %v7406_v3 = vsel %vm8466_vm15, %v3759_v38, %v3760_v48  ;;  %vm8467_vm11 = vmmov %vm8452_vm2  ;;  %v7415_v30 = vadd.f32 %v7042_v35, %v2943_v55  ;;  %v7418_v25 = vadd.f32 %v7076_v31, %v2924_v45  ;;  %v2926_v34 = vsel %vm8452_vm2, %v2880_v0, %v2881_v51 }
 0x313   : > { %v7412_v32 = vsel %vm8467_vm11, %v8161_v63, %v3759_v38  ;;  %vm8470_vm13 = vmmov %vm8452_vm2  ;;  %v7425_v16 = vadd.f32 %v7065_v36, %v2926_v34  ;;  %vm8473_vm11 = vnez %v8472_v47  ;;  %v8486_v47 = vld [vmem:[#allocation34_spill] sm:$0xff] }
 0x314   : > { %8468 = vst [vmem:[#allocation23_spill] sm:$0xff] %v7415_v30  ;;  %8469 = vst [vmem:[#allocation78_spill] sm:$0xff] %v7418_v25  ;;  %v2925_v27 = vsel %vm8470_vm13, %v2881_v51, %v2882_v22  ;;  %v5090_v48 = vpop.f32.mrb[68].mxu1  ;;  %v5190_v58 = vpop.f32.mrb[140].mxu0 }
 0x315   : > { %8471 = vst [vmem:[#allocation79_spill] sm:$0xff] %v7425_v16  ;;  %v2945_v38 = vsel %vm8473_vm11, 0.0, %v2925_v27  ;;  %v2793_v63 = vpop.f32.mrb[69].mxu1  ;;  %v3647_v35 = vpop.f32.mrb[141].mxu0  ;;  %v2886_v9 = vrot.slane %v5090_v48, 1  ;;  %v3764_v30 = vrot.slane %v5190_v58, 1  ;;  %vm8475_vm15 = vmmov %vm8452_vm2 }
 0x316   : > { %v7430_v55 = vadd.f32 %v7073_v21, %v2945_v38  ;;  %v2884_v31 = vrot.slane %v2793_v63, 1  ;;  %v3762_v45 = vrot.slane %v3647_v35, 1  ;;  %v5091_v25 = vpop.f32.mrb[70].mxu1  ;;  %v5191_v0 = vpop.f32.mrb[142].mxu0  ;;  %vm8476_vm10 = vmmov %vm8452_vm2  ;;  %v8477_v38 = vld [vmem:[#allocation30_spill] sm:$0xff] }
 0x317   : > { %v2887_v51 = vrot.slane %v5091_v25, 1  ;;  %v3765_v22 = vrot.slane %v5191_v0, 1  ;;  %v2796_v42 = vpop.f32.mrb[71].mxu1  ;;  %v3650_v19 = vpop.f32.mrb[143].mxu0  ;;  %vm8478_vm13 = vnez %v8477_v38  ;;  %vm8479_vm11 = vmmov %vm8452_vm2 }
 0x318   : > { %8474 = vst [vmem:[#allocation80_spill] sm:$0xff] %v7430_v55  ;;  %v7434_v36 = vsel %vm8475_vm15, %v3761_v15, %v3762_v45  ;;  %v2885_v34 = vrot.slane %v2796_v42, 1  ;;  %v3763_v27 = vrot.slane %v3650_v19, 1  ;;  %v2923_v21 = vsel %vm8476_vm10, %v2883_v12, %v2884_v31  ;;  %vm8480_vm8 = vmmov %vm8452_vm2 }
 0x319   : > { %v7440_v63 = vsel %vm8452_vm2, %v3764_v30, %v3765_v22  ;;  %v2947_v48 = vsel %vm8478_vm13, 0.0, %v2923_v21  ;;  %v2920_v25 = vsel %vm8479_vm11, %v2886_v9, %v2887_v51  ;;  %vm8481_vm15 = vmmov %vm8452_vm2 }
 0x31a   : > { %v7448_v58 = vsel %vm8480_vm8, %v3763_v27, %v3764_v30  ;;  %v7452_v15 = vsel %vm8481_vm15, %v3762_v45, %v3763_v27  ;;  %v7455_v19 = vadd.f32 %v7068_v59, %v2947_v48  ;;  %v7458_v42 = vadd.f32 %v7100_v60, %v2920_v25  ;;  %vm8484_vm10 = vmmov %vm8452_vm2 }
 0x31b   : > { %v2922_v12 = vsel %vm8484_vm10, %v2884_v31, %v2885_v34  ;;  %v2921_v35 = vsel %vm8452_vm2, %v2885_v34, %v2886_v9  ;;  %vm8487_vm8 = vnez %v8486_v47  ;;  %vm8489_vm11 = vmmov %vm8452_vm2  ;;  %v8501_v47 = vld [vmem:[#allocation41_spill] sm:$0xff]  ;;  %v8552_v10 = vld [vmem:[#allocation23_spill] sm:$0xff] }
 0x31c   : > { %8482 = vst [vmem:[#allocation81_spill] sm:$0xff] %v7455_v19  ;;  %8483 = vst [vmem:[#allocation82_spill] sm:$0xff] %v7458_v42  ;;  %v5094_v0 = vpop.f32.mrb[72].mxu1  ;;  %v5194_v21 = vpop.f32.mrb[144].mxu0  ;;  %v7465_v30 = vadd.f32 %v7089_v6, %v2922_v12  ;;  %v2949_v45 = vsel %vm8487_vm8, 0.0, %v2921_v35 }
 0x31d   : > { %v2809_v27 = vpop.f32.mrb[73].mxu1  ;;  %v3663_v59 = vpop.f32.mrb[145].mxu0  ;;  %v7470_v48 = vadd.f32 %v7097_v18, %v2949_v45  ;;  %v2890_v38 = vrot.slane %v5094_v0, 1  ;;  %v3768_v55 = vrot.slane %v5194_v21, 1  ;;  %vm8490_vm15 = vmmov %vm8452_vm2 }
 0x31e   : > { %8485 = vst [vmem:[#allocation83_spill] sm:$0xff] %v7465_v30  ;;  %v2888_v60 = vrot.slane %v2809_v27, 1  ;;  %v3766_v25 = vrot.slane %v3663_v59, 1  ;;  %v5095_v42 = vpop.f32.mrb[74].mxu1  ;;  %v5195_v31 = vpop.f32.mrb[146].mxu0  ;;  %vm8491_vm10 = vmmov %vm8452_vm2  ;;  %v8492_v27 = vld [vmem:[#allocation39_spill] sm:$0xff] }
 0x31f   : > { %8488 = vst [vmem:[#allocation84_spill] sm:$0xff] %v7470_v48  ;;  %v2891_v9 = vrot.slane %v5095_v42, 1  ;;  %v3769_v34 = vrot.slane %v5195_v31, 1  ;;  %v2812_v19 = vpop.f32.mrb[75].mxu1  ;;  %v3666_v16 = vpop.f32.mrb[147].mxu0  ;;  %vm8493_vm2 = vnez %v8492_v27  ;;  %vm8494_vm8 = vmmov %vm8491_vm10 }
 0x320   : > { %v7474_v6 = vsel %vm8489_vm11, %v3765_v22, %v3766_v25  ;;  %v2889_v12 = vrot.slane %v2812_v19, 1  ;;  %v3767_v35 = vrot.slane %v3666_v16, 1  ;;  %v2919_v18 = vsel %vm8490_vm15, %v2887_v51, %v2888_v60  ;;  %vm8495_vm13 = vmmov %vm8494_vm8 }
 0x321   : > { %v7480_v45 = vsel %vm8491_vm10, %v3768_v55, %v3769_v34  ;;  %v2951_v0 = vsel %vm8493_vm2, 0.0, %v2919_v18  ;;  %v2916_v42 = vsel %vm8494_vm8, %v2890_v38, %v2891_v9  ;;  %vm8496_vm11 = vmmov %vm8494_vm8 }
 0x322   : > { %v7488_v21 = vsel %vm8495_vm13, %v3767_v35, %v3768_v55  ;;  %v7492_v16 = vsel %vm8496_vm11, %v3766_v25, %v3767_v35  ;;  %v7495_v51 = vadd.f32 %v7092_v41, %v2951_v0  ;;  %v7498_v22 = vadd.f32 %v7127_v53, %v2916_v42  ;;  %vm8499_vm15 = vmmov %vm8494_vm8 }
 0x323   : > { %v2918_v19 = vsel %vm8499_vm15, %v2888_v60, %v2889_v12  ;;  %vm8500_vm10 = vmmov %vm8494_vm8  ;;  %vm8502_vm13 = vnez %v8501_v47 }
 0x324   : > { %8497 = vst [vmem:[#allocation85_spill] sm:$0xff] %v7495_v51  ;;  %8498 = vst [vmem:[#allocation86_spill] sm:$0xff] %v7498_v22  ;;  %v2917_v59 = vsel %vm8500_vm10, %v2889_v12, %v2890_v38  ;;  %v5098_v31 = vpop.f32.mrb[76].mxu1  ;;  %v5198_v18 = vpop.f32.mrb[148].mxu0  ;;  %v7505_v55 = vadd.f32 %v7116_v52, %v2918_v19  ;;  %vm8506_vm10 = vnez %v8274_v54 }
 0x325   : > { %v2953_v25 = vsel %vm8502_vm13, 0.0, %v2917_v59  ;;  %v2825_v35 = vpop.f32.mrb[77].mxu1  ;;  %v3679_v41 = vpop.f32.mrb[149].mxu0  ;;  %v2894_v27 = vrot.slane %v5098_v31, 1  ;;  %v3772_v48 = vrot.slane %v5198_v18, 1  ;;  %vm8504_vm11 = vmmov %vm8494_vm8 }
 0x326   : > { %v7510_v0 = vadd.f32 %v7124_v7, %v2953_v25  ;;  %v2892_v53 = vrot.slane %v2825_v35, 1  ;;  %v3770_v42 = vrot.slane %v3679_v41, 1  ;;  %v5099_v22 = vpop.f32.mrb[78].mxu1  ;;  %v5199_v60 = vpop.f32.mrb[150].mxu0  ;;  %vm8505_vm15 = vmmov %vm8494_vm8 }
 0x327   : > { %v2895_v38 = vrot.slane %v5099_v22, 1  ;;  %v3773_v12 = vrot.slane %v5199_v60, 1  ;;  %v2828_v51 = vpop.f32.mrb[79].mxu1  ;;  %v3682_v30 = vpop.f32.mrb[151].mxu0  ;;  %vm8507_vm13 = vmmov %vm8494_vm8 }
 0x328   : > { %8503 = vst [vmem:[#allocation87_spill] sm:$0xff] %v7510_v0  ;;  %v7514_v52 = vsel %vm8494_vm8, %v3769_v34, %v3770_v42  ;;  %v2893_v19 = vrot.slane %v2828_v51, 1  ;;  %v3771_v59 = vrot.slane %v3682_v30, 1  ;;  %v2915_v7 = vsel %vm8504_vm11, %v2891_v9, %v2892_v53  ;;  %vm8508_vm2 = vmmov %vm8494_vm8 }
 0x329   : > { %v7520_v25 = vsel %vm8505_vm15, %v3772_v48, %v3773_v12  ;;  %v2955_v31 = vsel %vm8506_vm10, 0.0, %v2915_v7  ;;  %v2912_v22 = vsel %vm8507_vm13, %v2894_v27, %v2895_v38  ;;  %vm8509_vm8 = vmmov %vm8508_vm2 }
 0x32a   : > { %v7528_v18 = vsel %vm8508_vm2, %v3771_v59, %v3772_v48  ;;  %v7532_v30 = vsel %vm8509_vm8, %v3770_v42, %v3771_v59  ;;  %v7535_v9 = vadd.f32 %v7119_v37, %v2955_v31  ;;  %v7538_v34 = vadd.f32 %v7151_v11, %v2912_v22  ;;  %vm8511_vm11 = vmmov %vm8508_vm2 }
 0x32b   : > { %v2914_v51 = vsel %vm8511_vm11, %v2892_v53, %v2893_v19  ;;  %vm8512_vm15 = vmmov %vm8508_vm2  ;;  %vm8513_vm2 = vnez %v8281_v28 }
 0x32c   : > { %8510 = vst [vmem:[#allocation88_spill] sm:$0xff] %v7538_v34  ;;  %v2913_v35 = vsel %vm8512_vm15, %v2893_v19, %v2894_v27  ;;  %v5102_v41 = vpop.f32.mrb[80].mxu1  ;;  %v5202_v60 = vpop.f32.mrb[152].mxu0  ;;  %v7545_v48 = vadd.f32 %v7140_v61, %v2914_v51  ;;  %vm8515_vm13 = vmmov %vm8509_vm8  ;;  %vm8517_vm15 = vnez %v8303_v20 }
 0x32d   : > { %v2957_v42 = vsel %vm8513_vm2, 0.0, %v2913_v35  ;;  %v2841_v59 = vpop.f32.mrb[81].mxu1  ;;  %v3695_v37 = vpop.f32.mrb[153].mxu0  ;;  %v2898_v34 = vrot.slane %v5102_v41, 1  ;;  %v3776_v47 = vrot.slane %v5202_v60, 1  ;;  %vm8516_vm11 = vmmov %vm8509_vm8 }
 0x32e   : > { %v7550_v7 = vadd.f32 %v7148_v50, %v2957_v42  ;;  %v2896_v11 = vrot.slane %v2841_v59, 1  ;;  %v3774_v31 = vrot.slane %v3695_v37, 1  ;;  %v5103_v22 = vpop.f32.mrb[82].mxu1  ;;  %v5203_v53 = vpop.f32.mrb[154].mxu0  ;;  %vm8518_vm2 = vmmov %vm8509_vm8 }
 0x32f   : > { %v2899_v27 = vrot.slane %v5103_v22, 1  ;;  %v3777_v19 = vrot.slane %v5203_v53, 1  ;;  %v2844_v54 = vpop.f32.mrb[83].mxu1  ;;  %v3698_v0 = vpop.f32.mrb[155].mxu0  ;;  %vm8519_vm10 = vmmov %vm8518_vm2 }
 0x330   : > { %8514 = vst [vmem:[#allocation89_spill] sm:$0xff] %v7550_v7  ;;  %v7554_v61 = vsel %vm8515_vm13, %v3773_v12, %v3774_v31  ;;  %v2897_v51 = vrot.slane %v2844_v54, 1  ;;  %v3775_v35 = vrot.slane %v3698_v0, 1  ;;  %v2911_v50 = vsel %vm8509_vm8, %v2895_v38, %v2896_v11  ;;  %vm8520_vm13 = vmmov %vm8518_vm2 }
 0x331   : > { %v7560_v42 = vsel %vm8516_vm11, %v3776_v47, %v3777_v19  ;;  %v2959_v41 = vsel %vm8517_vm15, 0.0, %v2911_v50  ;;  %v2908_v60 = vsel %vm8518_vm2, %v2898_v34, %v2899_v27  ;;  %vm8522_vm8 = vmmov %vm8518_vm2 }
 0x332   : > { %v7568_v59 = vsel %vm8519_vm10, %v3775_v35, %v3776_v47  ;;  %v7572_v54 = vsel %vm8520_vm13, %v3774_v31, %v3775_v35  ;;  %v7575_v0 = vadd.f32 %v7143_v17, %v2959_v41  ;;  %v7578_v38 = vadd.f32 %v7175_v8, %v2908_v60  ;;  %vm8523_vm11 = vmmov %vm8518_vm2 }
 0x333   : > { %v2910_v12 = vsel %vm8522_vm8, %v2896_v11, %v2897_v51  ;;  %v2909_v37 = vsel %vm8523_vm11, %v2897_v51, %v2898_v34  ;;  %vm8524_vm10 = vnez %v8306_v26  ;;  %vm8525_vm13 = vmmov %vm8518_vm2 }
 0x334   : > { %8521 = vst [vmem:[#allocation90_spill] sm:$0xff] %v7578_v38  ;;  %v5106_v22 = vpop.f32.mrb[84].mxu1  ;;  %v5206_v53 = vpop.f32.mrb[156].mxu0  ;;  %v7585_v47 = vadd.f32 %v7164_v33, %v2910_v12  ;;  %v2961_v31 = vsel %vm8524_vm10, 0.0, %v2909_v37  ;;  %vm8526_vm8 = vmmov %vm8518_vm2 }
 0x335   : > { %v2857_v35 = vpop.f32.mrb[85].mxu1  ;;  %v3711_v17 = vpop.f32.mrb[157].mxu0  ;;  %v7590_v50 = vadd.f32 %v7172_v2, %v2961_v31  ;;  %v2902_v38 = vrot.slane %v5106_v22, 1  ;;  %v3780_v28 = vrot.slane %v5206_v53, 1  ;;  %vm8527_vm11 = vmmov %vm8518_vm2 }
 0x336   : > { %v2900_v8 = vrot.slane %v2857_v35, 1  ;;  %v3778_v41 = vrot.slane %v3711_v17, 1  ;;  %v5107_v60 = vpop.f32.mrb[86].mxu1  ;;  %v5207_v11 = vpop.f32.mrb[158].mxu0  ;;  %vm8528_vm10 = vmmov %vm8518_vm2  ;;  %v8530_v17 = vrot.slane %v7307_v29, 1 }
 0x337   : > { %v2903_v34 = vrot.slane %v5107_v60, 1  ;;  %v3781_v51 = vrot.slane %v5207_v11, 1  ;;  %v2860_v20 = vpop.f32.mrb[87].mxu1  ;;  %v3714_v7 = vpop.f32.mrb[159].mxu0 }
 0x338   : > { %v7594_v33 = vsel %vm8518_vm2, %v3777_v19, %v3778_v41  ;;  %v2901_v12 = vrot.slane %v2860_v20, 1  ;;  %v3779_v37 = vrot.slane %v3714_v7, 1  ;;  %v2907_v2 = vsel %vm8525_vm13, %v2899_v27, %v2900_v8  ;;  %vm8529_vm13 = vmmov %vm8518_vm2 }
 0x339   : > { %v7600_v31 = vsel %vm8526_vm8, %v3780_v28, %v3781_v51  ;;  %v2963_v22 = vsel %vm6941_vm0, 0.0, %v2907_v2  ;;  %v2904_v53 = vsel %vm8527_vm11, %v2902_v38, %v2903_v34  ;;  %vm8531_vm8 = vmmov %vm8518_vm2 }
 0x33a   : > { %v7608_v35 = vsel %vm8528_vm10, %v3779_v37, %v3780_v28  ;;  %v7612_v20 = vsel %vm8518_vm2, %v3778_v41, %v3779_v37  ;;  %v7615_v7 = vadd.f32 %v7167_v46, %v2963_v22  ;;  %v7618_v27 = vadd.f32 %v7208_v57, %v2904_v53  ;;  %vm8532_vm10 = vmmov %vm8518_vm2  ;;  %v8538_v22 = vld [vmem:[#allocation69_spill] sm:$0xff] }
 0x33b   : > { %v2906_v19 = vsel %vm8529_vm13, %v2900_v8, %v2901_v12  ;;  %v2935_v60 = vsel %vm8531_vm8, %v2903_v34, %v8530_v17  ;;  %v2905_v28 = vsel %vm8532_vm10, %v2901_v12, %v2902_v38  ;;  %v8536_v12 = vld [vmem:[#allocation14_spill] sm:$0xff]  ;;  %v3516_v17 = vsel %vm8387_vm9, 0.0, %v7355_v49  ;;  %vm8541_vm9 = vmmov %vm8518_vm2 }
 0x33c   : > { %v7629_v37 = vadd.f32 %v7194_v14, %v2906_v19  ;;  %v2967_v46 = vsel %vm6958_vm14, 0.0, %v2935_v60  ;;  %v2965_v57 = vsel %vm6949_vm5, 0.0, %v2905_v28  ;;  %vm8537_vm11 = vnez %v8536_v12  ;;  %v8542_v19 = vld [vmem:[#allocation18_spill] sm:$0xff]  ;;  %vm8543_vm13 = vmmov %vm8518_vm2 }
 0x33d   : > { %v7637_v34 = vadd.f32 %v7202_v40, %v2967_v46  ;;  %v7640_v38 = vadd.f32 %v7205_v4, %v2965_v57  ;;  %v3518_v14 = vsel %vm8537_vm11, 0.0, %v7219_v43  ;;  %v7653_v43 = vld [vmem:[%s8058_s5] ss:$0 sm:$0xff]  ;;  %vm8544_vm8 = vmmov %vm8518_vm2 }
 0x33e   : > { %8533 = vst [vmem:[#allocation91_spill] sm:$0xff] %v7629_v37 }
 0x33f   : > { %8534 = vst [vmem:[#allocation92_spill] sm:$0xff] %v7637_v34  ;;  %8535 = vst [vmem:[#allocation93_spill] sm:$0xff] %v7640_v38 }
 0x342   : > { %v5114_v11 = vpop.f32.mrb[24].mxu1 }
 0x343   : > { %v5259_v8 = vadd.f32 %v7321_v1, %v5114_v11  ;;  %v3115_v29 = vpop.f32.mrb[25].mxu1 }
 0x344   : > { %v5210_v41 = vpop.f32.mrb[160].mxu0  ;;  %v5263_v53 = vadd.f32 %v8538_v22, %v3115_v29  ;;  %v5115_v1 = vpop.f32.mrb[26].mxu1 }
 0x345   : > { %v3727_v2 = vpop.f32.mrb[161].mxu0  ;;  %v3550_v11 = vadd.f32 %v5259_v8, %v3518_v14  ;;  %v3784_v39 = vrot.slane %v5210_v41, 1  ;;  %v5267_v40 = vadd.f32 %v7362_v56, %v5115_v1  ;;  %v3118_v4 = vpop.f32.mrb[27].mxu1  ;;  %v8540_v8 = vld [vmem:[#allocation21_spill] sm:$0xff]  ;;  %v3825_v14 = vsel %vm8447_vm7, 0.0, %v7434_v36 }
 0x346   : > { %v3782_v60 = vrot.slane %v3727_v2, 1  ;;  %v5211_v28 = vpop.f32.mrb[162].mxu0  ;;  %v3548_v29 = vadd.f32 %v5263_v53, %v3516_v17  ;;  %v5271_v49 = vadd.f32 %v7343_v62, %v3118_v4  ;;  %v3823_v1 = vsel %vm8439_vm12, 0.0, %v7406_v3  ;;  %vm8559_vm12 = vmmov %vm8518_vm2 }
 0x347   : > { %v3785_v46 = vrot.slane %v5211_v28, 1  ;;  %v3730_v57 = vpop.f32.mrb[163].mxu0  ;;  %v3856_v41 = vadd.f32 %v7398_v5, %v3550_v11  ;;  %v3551_v56 = vadd.f32 %v5267_v40, %v8540_v8  ;;  %v8546_v28 = vld [vmem:[#allocation26_spill] sm:$0xff]  ;;  %v8550_v8 = vld [vmem:[#allocation19_spill] sm:$0xff]  ;;  %vm8562_vm7 = vcmask 261120  }
 0x348   : > { %v7657_v12 = vsel %vm8518_vm2, %v3781_v51, %v3782_v60  ;;  %v3783_v2 = vrot.slane %v3730_v57, 1  ;;  %v3854_v53 = vadd.f32 %v7412_v32, %v3548_v29  ;;  %v3549_v51 = vadd.f32 %v5271_v49, %v8542_v19  ;;  %v8548_v57 = vld [vmem:[#allocation25_spill] sm:$0xff]  ;;  %vm8567_vm10 = vmmov %vm8562_vm7 }
 0x349   : > { %v7667_v22 = vsel %vm8541_vm9, %v3784_v39, %v3785_v46  ;;  %v3895_v17 = vadd.f32 %v7653_v43, %v3856_v41  ;;  %v3857_v13 = vadd.f32 %v3825_v14, %v3551_v56  ;;  %v3520_v32 = vsel %vm6400_vm3, 0.0, %v8546_v28  ;;  %vm8553_vm3 = vmmov %vm8518_vm2 }
 0x34a   : > { %v7673_v62 = vsel %vm8543_vm13, %v3783_v2, %v3784_v39  ;;  %v7677_v5 = vsel %vm8544_vm8, %v3782_v60, %v3783_v2  ;;  %v3893_v40 = vadd.f32 %v7653_v43, %v3854_v53  ;;  %v3855_v4 = vadd.f32 %v3823_v1, %v3549_v51  ;;  %v8551_v1 = vld [vmem:[#allocation72_spill] sm:$0xff]  ;;  %vm8581_vm8 = vmmov %vm8562_vm7 }
 0x34b   : > { %v3522_v60 = vsel %vm6418_vm6, 0.0, %v8548_v57  ;;  %v3829_v2 = vsel %vm8464_vm1, 0.0, %v7474_v6  ;;  %v3927_v41 = vmax.f32 %v3895_v17, 0.0  ;;  %v3896_v3 = vadd.f32 %v7653_v43, %v3857_v13  ;;  %vm8556_vm6 = vmmov %vm8518_vm2 }
 0x34c   : > { %v3925_v53 = vmax.f32 %v3893_v40, 0.0  ;;  %v3894_v51 = vadd.f32 %v7653_v43, %v3855_v4  ;;  %v8554_v40 = vld [vmem:[#allocation77_spill] sm:$0xff] }
 0x34d   : > { %v3928_v44 = vmax.f32 %v3896_v3, 0.0 }
 0x34e   : > { %v5118_v39 = vpop.f32.mrb[28].mxu1  ;;  %v3926_v37 = vmax.f32 %v3894_v51, 0.0 }
 0x34f   : > { %v5214_v49 = vpop.f32.mrb[164].mxu0  ;;  %v5275_v56 = vadd.f32 %v8550_v8, %v5118_v39  ;;  %v3131_v19 = vpop.f32.mrb[29].mxu1  ;;  %v3958_v8 = vpack.c.bf16 %v3928_v44, %v3927_v41  ;;  %v3827_v41 = vsel %vm8457_vm4, 0.0, %v7448_v58  ;;  %vm8568_vm4 = vmmov %vm8518_vm2 }
 0x350   : > { %v3788_v14 = vrot.slane %v5214_v49, 1  ;;  %v3743_v36 = vpop.f32.mrb[165].mxu0  ;;  %v5279_v28 = vadd.f32 %v8551_v1, %v3131_v19  ;;  %v5119_v57 = vpop.f32.mrb[30].mxu1 }
 0x351   : > { %v3786_v11 = vrot.slane %v3743_v36, 1  ;;  %v5215_v29 = vpop.f32.mrb[166].mxu0  ;;  %v3554_v38 = vadd.f32 %v5275_v56, %v3522_v60  ;;  %v5283_v6 = vadd.f32 %v8552_v10, %v5119_v57  ;;  %v3134_v34 = vpop.f32.mrb[31].mxu1  ;;  %v8555_v36 = vld [vmem:[#allocation28_spill] sm:$0xff] }
 0x352   : > { %v3789_v17 = vrot.slane %v5215_v29, 1  ;;  %v3746_v13 = vpop.f32.mrb[167].mxu0  ;;  %v3552_v39 = vadd.f32 %v5279_v28, %v3520_v32  ;;  %v5287_v4 = vadd.f32 %v8554_v40, %v3134_v34  ;;  %v8557_v56 = vld [vmem:[#allocation76_spill] sm:$0xff]  ;;  %v3957_v34 = vpack.c.bf16 %v3926_v37, %v3925_v53 }
 0x353   : > { %v7700_v49 = vsel %vm8553_vm3, %v3785_v46, %v3786_v11  ;;  %v3860_v19 = vadd.f32 %v7440_v63, %v3554_v38  ;;  %v3555_v1 = vadd.f32 %v5283_v6, %v8555_v36  ;;  %v8558_v51 = vrot.slane %v8557_v56, 1  ;;  %v8560_v46 = vld [vmem:[#allocation32_spill] sm:$0xff]  ;;  %vm8583_vm3 = vmmov %vm8562_vm7 }
 0x354   : > { %v7707_v60 = vsel %vm8556_vm6, %v3788_v14, %v3789_v17  ;;  %v3858_v3 = vadd.f32 %v7452_v15, %v3552_v39  ;;  %v3553_v28 = vadd.f32 %v5287_v4, %v8560_v46  ;;  %v3787_v57 = vrot.slane %v3746_v13, 1  ;;  %5220 = vmatprep.mubr.msk.bf16.mxu1 %vm8562_vm7, %v3957_v34  ;;  %v8564_v37 = vld [vmem:[#allocation40_spill] sm:$0xff]  ;;  %v8573_v34 = vld [vmem:[#allocation81_spill] sm:$0xff] }
 0x355   : > { %v7714_v32 = vsel %vm8559_vm12, %v3789_v17, %v8558_v51  ;;  %v3899_v44 = vadd.f32 %v7653_v43, %v3860_v19  ;;  %v3861_v63 = vadd.f32 %v3829_v2, %v3555_v1  ;;  %v8563_v17 = vld [vmem:[#allocation78_spill] sm:$0xff]  ;;  %v8565_v53 = vld [vmem:[#allocation20_spill] sm:$0xff]  ;;  %5221 = vmatmul.mubr.msk.bf16.vlgmr.msra.gmra.mrb[88].mxu1 %vm8567_vm10, %v3958_v8  ;;  %v8572_v1 = vld [vmem:[#allocation79_spill] sm:$0xff] }
 0x356   : > { %v3897_v29 = vadd.f32 %v7653_v43, %v3858_v3  ;;  %v3859_v15 = vadd.f32 %v3827_v41, %v3553_v28  ;;  %vm8566_vm1 = vnez %v8565_v53  ;;  %v7731_v58 = vsel %vm8568_vm4, %v3787_v57, %v3788_v14  ;;  %v8569_v4 = vld [vmem:[#allocation44_spill] sm:$0xff]  ;;  %vm8599_vm10 = vmmov %vm8583_vm3 }
 0x357   : > { %v3900_v6 = vadd.f32 %v7653_v43, %v3861_v63  ;;  %v3524_v2 = vsel %vm8566_vm1, 0.0, %v8564_v37  ;;  %v8570_v19 = vld [vmem:[#allocation24_spill] sm:$0xff]  ;;  %v7740_v51 = vsel %vm8518_vm2, %v3786_v11, %v3787_v57  ;;  %v3931_v46 = vmax.f32 %v3899_v44, 0.0  ;;  %v8576_v11 = vld [vmem:[#allocation30_spill] sm:$0xff]  ;;  %vm8601_vm4 = vmmov %vm8583_vm3 }
 0x358   : > { %v3898_v13 = vadd.f32 %v7653_v43, %v3859_v15  ;;  %vm8571_vm11 = vnez %v8570_v19  ;;  %v3929_v38 = vmax.f32 %v3897_v29, 0.0  ;;  %v8575_v53 = vld [vmem:[#allocation36_spill] sm:$0xff]  ;;  %vm8577_vm9 = vnez %v8576_v11  ;;  %v8578_v57 = vld [vmem:[#allocation42_spill] sm:$0xff] }
 0x359   : > { %v5122_v10 = vpop.f32.mrb[32].mxu1  ;;  %v3526_v36 = vsel %vm8571_vm11, 0.0, %v8569_v4  ;;  %v3932_v28 = vmax.f32 %v3900_v6, 0.0  ;;  %v3833_v44 = vsel %vm8577_vm9, 0.0, %v7514_v52 }
 0x35a   : > { %v5291_v39 = vadd.f32 %v8563_v17, %v5122_v10  ;;  %v3147_v40 = vpop.f32.mrb[33].mxu1  ;;  %v3930_v41 = vmax.f32 %v3898_v13, 0.0  ;;  %v8574_v10 = vld [vmem:[#allocation80_spill] sm:$0xff] }
 0x35b   : > { %v5295_v3 = vadd.f32 %v8572_v1, %v3147_v40  ;;  %v5123_v56 = vpop.f32.mrb[34].mxu1  ;;  %v3960_v4 = vpack.c.bf16 %v3932_v28, %v3931_v46  ;;  %v8584_v28 = vld [vmem:[#allocation56_spill] sm:$0xff] }
 0x35c   : > { %v3558_v8 = vadd.f32 %v5291_v39, %v3526_v36  ;;  %v5299_v63 = vadd.f32 %v8573_v34, %v5123_v56  ;;  %v3150_v14 = vpop.f32.mrb[35].mxu1  ;;  %v3959_v39 = vpack.c.bf16 %v3930_v41, %v3929_v38  ;;  %v8589_v38 = vld [vmem:[#allocation27_spill] sm:$0xff] }
 0x35d   : > { %v3556_v15 = vadd.f32 %v5295_v3, %v3524_v2  ;;  %v5303_v17 = vadd.f32 %v8574_v10, %v3150_v14  ;;  %v8579_v2 = vld [vmem:[#allocation29_spill] sm:$0xff]  ;;  %v8582_v3 = vld [vmem:[#allocation82_spill] sm:$0xff]  ;;  %vm8590_vm12 = vnez %v8589_v38  ;;  %v8602_v38 = vld [vmem:[#allocation60_spill] sm:$0xff] }
 0x35e   : > { %v3864_v37 = vadd.f32 %v7480_v45, %v3558_v8  ;;  %v3559_v40 = vadd.f32 %v5299_v63, %v8575_v53  ;;  %vm8580_vm13 = vnez %v8579_v2  ;;  %5224 = vmatprep.mubr.msk.bf16.mxu1 %vm8581_vm8, %v3959_v39  ;;  %v8585_v8 = vld [vmem:[#allocation31_spill] sm:$0xff]  ;;  %v8588_v14 = vld [vmem:[#allocation54_spill] sm:$0xff]  ;;  %v8591_v53 = vld [vmem:[#allocation85_spill] sm:$0xff] }
 0x35f   : > { %v3862_v24 = vadd.f32 %v7492_v16, %v3556_v15  ;;  %v3557_v6 = vadd.f32 %v5303_v17, %v8578_v57  ;;  %v3831_v19 = vsel %vm8580_vm13, 0.0, %v7488_v21  ;;  %5225 = vmatmul.mubr.msk.bf16.gmra.mrb[92].mxu1 %vm8583_vm3, %v3960_v4  ;;  %vm8586_vm6 = vnez %v8585_v8  ;;  %v8587_v21 = vld [vmem:[#allocation83_spill] sm:$0xff]  ;;  %v8592_v57 = vld [vmem:[#allocation84_spill] sm:$0xff]  ;;  %vm8615_vm8 = vmmov %vm8583_vm3 }
 0x360   : > { %v3903_v29 = vadd.f32 %v7653_v43, %v3864_v37  ;;  %v3865_v13 = vadd.f32 %v3833_v44, %v3559_v40  ;;  %v3530_v34 = vsel %vm8586_vm6, 0.0, %v8584_v28  ;;  %v3528_v41 = vsel %vm8590_vm12, 0.0, %v8588_v14 }
 0x361   : > { %v3901_v45 = vadd.f32 %v7653_v43, %v3862_v24  ;;  %v3863_v36 = vadd.f32 %v3831_v19, %v3557_v6 }
 0x362   : > { %v3904_v16 = vadd.f32 %v7653_v43, %v3865_v13  ;;  %v3935_v10 = vmax.f32 %v3903_v29, 0.0  ;;  %v8593_v13 = vld [vmem:[#allocation55_spill] sm:$0xff] }
 0x363   : > { %v5126_v1 = vpop.f32.mrb[36].mxu1  ;;  %v3902_v46 = vadd.f32 %v7653_v43, %v3863_v36  ;;  %v3933_v4 = vmax.f32 %v3901_v45, 0.0 }
 0x364   : > { %v5307_v52 = vadd.f32 %v8582_v3, %v5126_v1  ;;  %v3163_v56 = vpop.f32.mrb[37].mxu1  ;;  %v3936_v17 = vmax.f32 %v3904_v16, 0.0  ;;  %v8594_v1 = vld [vmem:[#allocation39_spill] sm:$0xff]  ;;  %v8596_v16 = vld [vmem:[#allocation57_spill] sm:$0xff] }
 0x365   : > { %v5311_v63 = vadd.f32 %v8587_v21, %v3163_v56  ;;  %v5127_v15 = vpop.f32.mrb[38].mxu1  ;;  %v3934_v11 = vmax.f32 %v3902_v46, 0.0  ;;  %vm8595_vm7 = vnez %v8594_v1  ;;  %v8597_v46 = vld [vmem:[#allocation34_spill] sm:$0xff] }
 0x366   : > { %v3562_v37 = vadd.f32 %v5307_v52, %v3530_v34  ;;  %v5315_v40 = vadd.f32 %v8591_v53, %v5127_v15  ;;  %v3166_v24 = vpop.f32.mrb[39].mxu1  ;;  %v3962_v19 = vpack.c.bf16 %v3936_v17, %v3935_v10  ;;  %v3837_v29 = vsel %vm8595_vm7, 0.0, %v7554_v61  ;;  %v8600_v21 = vld [vmem:[#allocation86_spill] sm:$0xff]  ;;  %v8606_v17 = vld [vmem:[#allocation33_spill] sm:$0xff] }
 0x367   : > { %v3560_v44 = vadd.f32 %v5311_v63, %v3528_v41  ;;  %v5319_v6 = vadd.f32 %v8592_v57, %v3166_v24  ;;  %v3961_v52 = vpack.c.bf16 %v3934_v11, %v3933_v4  ;;  %vm8598_vm1 = vnez %v8597_v46  ;;  %v8603_v41 = vld [vmem:[#allocation35_spill] sm:$0xff]  ;;  %v8605_v10 = vld [vmem:[#allocation58_spill] sm:$0xff] }
 0x368   : > { %v3868_v39 = vadd.f32 %v7520_v25, %v3562_v37  ;;  %v3563_v2 = vadd.f32 %v5315_v40, %v8593_v13  ;;  %v3835_v28 = vsel %vm8598_vm1, 0.0, %v7528_v18  ;;  %vm8604_vm11 = vnez %v8603_v41  ;;  %v8608_v13 = vld [vmem:[#allocation87_spill] sm:$0xff]  ;;  %v8620_v41 = vld [vmem:[#allocation62_spill] sm:$0xff]  ;;  %vm8629_vm1 = vmmov %vm8583_vm3 }
 0x369   : > { %v3866_v36 = vadd.f32 %v7532_v30, %v3560_v44  ;;  %v3561_v3 = vadd.f32 %v5319_v6, %v8596_v16  ;;  %5228 = vmatprep.mubr.msk.bf16.mxu1 %vm8599_vm10, %v3961_v52  ;;  %v3534_v15 = vsel %vm8604_vm11, 0.0, %v8602_v38  ;;  %vm8607_vm2 = vnez %v8606_v17  ;;  %v8610_v16 = vld [vmem:[#allocation43_spill] sm:$0xff]  ;;  %v8612_v52 = vld [vmem:[#allocation61_spill] sm:$0xff] }
 0x36a   : > { %v3907_v45 = vadd.f32 %v7653_v43, %v3868_v39  ;;  %v3869_v56 = vadd.f32 %v3837_v29, %v3563_v2  ;;  %5229 = vmatmul.mubr.msk.bf16.gmra.mrb[96].mxu1 %vm8601_vm4, %v3962_v19  ;;  %v3532_v37 = vsel %vm8607_vm2, 0.0, %v8605_v10  ;;  %vm8611_vm9 = vnez %v8610_v16  ;;  %vm8641_vm2 = vmmov %vm8629_vm1 }
 0x36b   : > { %v3905_v25 = vadd.f32 %v7653_v43, %v3866_v36  ;;  %v3867_v8 = vadd.f32 %v3835_v28, %v3561_v3  ;;  %v5130_v34 = vpop.f32.mrb[40].mxu1  ;;  %v8609_v36 = vld [vmem:[#allocation59_spill] sm:$0xff]  ;;  %v3841_v3 = vsel %vm8611_vm9, 0.0, %v7594_v33  ;;  %v8613_v28 = vld [vmem:[#allocation41_spill] sm:$0xff]  ;;  %vm8640_vm11 = vnez %v8306_v26 }
 0x36c   : > { %v3908_v30 = vadd.f32 %v7653_v43, %v3869_v56  ;;  %v5323_v61 = vadd.f32 %v8600_v21, %v5130_v34  ;;  %v3179_v63 = vpop.f32.mrb[41].mxu1  ;;  %v3939_v40 = vmax.f32 %v3907_v45, 0.0  ;;  %vm8614_vm13 = vnez %v8613_v28 }
 0x36d   : > { %v3906_v14 = vadd.f32 %v7653_v43, %v3867_v8  ;;  %v5327_v18 = vadd.f32 %v7505_v55, %v3179_v63  ;;  %v5131_v53 = vpop.f32.mrb[42].mxu1  ;;  %v3937_v57 = vmax.f32 %v3905_v25, 0.0  ;;  %v3839_v25 = vsel %vm8614_vm13, 0.0, %v7568_v59  ;;  %v8617_v63 = vld [vmem:[#allocation64_spill] sm:$0xff] }
 0x36e   : > { %v3940_v24 = vmax.f32 %v3908_v30, 0.0  ;;  %v3566_v4 = vadd.f32 %v5323_v61, %v3534_v15  ;;  %v5331_v11 = vadd.f32 %v7535_v9, %v5131_v53  ;;  %v3182_v44 = vpop.f32.mrb[43].mxu1  ;;  %v8616_v30 = vld [vmem:[#allocation88_spill] sm:$0xff]  ;;  %v8621_v15 = vld [vmem:[#allocation38_spill] sm:$0xff] }
 0x36f   : > { %v3938_v6 = vmax.f32 %v3906_v14, 0.0  ;;  %v3564_v39 = vadd.f32 %v5327_v18, %v3532_v37  ;;  %v5335_v2 = vadd.f32 %v8608_v13, %v3182_v44  ;;  %v8618_v14 = vld [vmem:[#allocation37_spill] sm:$0xff]  ;;  %vm8622_vm12 = vnez %v8621_v15  ;;  %v8624_v13 = vld [vmem:[#allocation63_spill] sm:$0xff] }
 0x370   : > { %v3872_v19 = vadd.f32 %v7560_v42, %v3566_v4  ;;  %v3567_v55 = vadd.f32 %v5331_v11, %v8609_v36  ;;  %v3964_v1 = vpack.c.bf16 %v3940_v24, %v3939_v40  ;;  %vm8619_vm6 = vnez %v8618_v14  ;;  %v8647_v36 = vld [vmem:[#allocation71_spill] sm:$0xff] }
 0x371   : > { %v3870_v29 = vadd.f32 %v7572_v54, %v3564_v39  ;;  %v3565_v45 = vadd.f32 %v5335_v2, %v8612_v52  ;;  %v3963_v9 = vpack.c.bf16 %v3938_v6, %v3937_v57  ;;  %v3538_v38 = vsel %vm8619_vm6, 0.0, %v8617_v63  ;;  %v8623_v57 = vld [vmem:[#allocation89_spill] sm:$0xff]  ;;  %v8627_v52 = vld [vmem:[#allocation46_spill] sm:$0xff] }
 0x372   : > { %v3911_v56 = vadd.f32 %v7653_v43, %v3872_v19  ;;  %v3873_v46 = vadd.f32 %v3841_v3, %v3567_v55  ;;  %v3536_v18 = vsel %vm8622_vm12, 0.0, %v8620_v41  ;;  %v3845_v55 = vsel %vm8517_vm15, 0.0, %v7657_v12  ;;  %vm8631_vm15 = vmmov %vm8629_vm1 }
 0x373   : > { %v3909_v42 = vadd.f32 %v7653_v43, %v3870_v29  ;;  %v3871_v8 = vadd.f32 %v3839_v25, %v3565_v45  ;;  %v5134_v34 = vpop.f32.mrb[44].mxu1  ;;  %5232 = vmatprep.mubr.msk.bf16.mxu1 %vm8615_vm8, %v3963_v9  ;;  %vm8628_vm7 = vnez %v8627_v52 }
 0x374   : > { %v3912_v54 = vadd.f32 %v7653_v43, %v3873_v46  ;;  %v5339_v33 = vadd.f32 %v8616_v30, %v5134_v34  ;;  %v3195_v21 = vpop.f32.mrb[45].mxu1  ;;  %5233 = vmatmul.mubr.msk.bf16.gmra.mrb[100].mxu1 %vm8583_vm3, %v3964_v1  ;;  %v3943_v17 = vmax.f32 %v3911_v56, 0.0  ;;  %v8626_v1 = vld [vmem:[#allocation65_spill] sm:$0xff]  ;;  %v3843_v45 = vsel %vm8628_vm7, 0.0, %v7608_v35  ;;  %v8630_v46 = vld [vmem:[#allocation90_spill] sm:$0xff]  ;;  %v8636_v30 = vld [vmem:[#allocation48_spill] sm:$0xff] }
 0x375   : > { %v3910_v61 = vadd.f32 %v7653_v43, %v3871_v8  ;;  %v5343_v59 = vadd.f32 %v7545_v48, %v3195_v21  ;;  %v5135_v10 = vpop.f32.mrb[46].mxu1  ;;  %v3941_v4 = vmax.f32 %v3909_v42, 0.0  ;;  %v8632_v42 = vld [vmem:[#allocation68_spill] sm:$0xff]  ;;  %v8633_v8 = vld [vmem:[#allocation47_spill] sm:$0xff]  ;;  %vm8637_vm4 = vnez %v8636_v30 }
 0x376   : > { %v3944_v37 = vmax.f32 %v3912_v54, 0.0  ;;  %v3570_v53 = vadd.f32 %v5339_v33, %v3538_v38  ;;  %v5347_v40 = vadd.f32 %v7575_v0, %v5135_v10  ;;  %v3198_v24 = vpop.f32.mrb[47].mxu1  ;;  %vm8634_vm10 = vnez %v8633_v8  ;;  %v8635_v54 = vld [vmem:[#allocation66_spill] sm:$0xff] }
 0x377   : > { %v3942_v11 = vmax.f32 %v3910_v61, 0.0  ;;  %v3568_v44 = vadd.f32 %v5343_v59, %v3536_v18  ;;  %v5351_v6 = vadd.f32 %v8623_v57, %v3198_v24  ;;  %v3542_v34 = vsel %vm8634_vm10, 0.0, %v8632_v42 }
 0x378   : > { %v3876_v39 = vadd.f32 %v7600_v31, %v3570_v53  ;;  %v3571_v48 = vadd.f32 %v5347_v40, %v8624_v13  ;;  %v3966_v2 = vpack.c.bf16 %v3944_v37, %v3943_v17  ;;  %v3540_v33 = vsel %vm8637_vm4, 0.0, %v8635_v54  ;;  %v8638_v37 = vld [vmem:[#allocation67_spill] sm:$0xff] }
 0x379   : > { %v3874_v19 = vadd.f32 %v7612_v20, %v3568_v44  ;;  %v3569_v29 = vadd.f32 %v5351_v6, %v8626_v1  ;;  %v3965_v0 = vpack.c.bf16 %v3942_v11, %v3941_v4  ;;  %v3849_v24 = vsel %vm6941_vm0, 0.0, %v7700_v49  ;;  %v8639_v4 = vld [vmem:[#allocation70_spill] sm:$0xff]  ;;  %vm8642_vm0 = vmmov %vm8629_vm1  ;;  %v8654_v54 = vld [vmem:[#allocation75_spill] sm:$0xff] }
 0x37a   : > { %v3915_v16 = vadd.f32 %v7653_v43, %v3876_v39  ;;  %v3877_v3 = vadd.f32 %v3845_v55, %v3571_v48  ;;  %v8643_v48 = vld [vmem:[#allocation73_spill] sm:$0xff]  ;;  %v8648_v55 = vld [vmem:[#allocation51_spill] sm:$0xff]  ;;  %vm8656_vm8 = vmmov %vm8642_vm0 }
 0x37b   : > { %v3913_v31 = vadd.f32 %v7653_v43, %v3874_v19  ;;  %v3875_v9 = vadd.f32 %v3843_v45, %v3569_v29  ;;  %v5138_v56 = vpop.f32.mrb[48].mxu1  ;;  %5236 = vmatprep.mubr.msk.bf16.mxu1 %vm8629_vm1, %v3965_v0  ;;  %vm8649_vm13 = vnez %v8648_v55  ;;  %vm8657_vm3 = vmmov %vm8642_vm0  ;;  %v5563_v55 = vld [vmem:[%s5950_s17 + $0x30] sm:$0xff] }
 0x37c   : > { %v3916_v20 = vadd.f32 %v7653_v43, %v3877_v3  ;;  %v5355_v12 = vadd.f32 %v8630_v46, %v5138_v56  ;;  %v3211_v28 = vpop.f32.mrb[49].mxu1  ;;  %5237 = vmatmul.mubr.msk.bf16.gmra.mrb[104].mxu1 %vm8631_vm15, %v3966_v2  ;;  %v3947_v61 = vmax.f32 %v3915_v16, 0.0  ;;  %v8644_v2 = vld [vmem:[#allocation50_spill] sm:$0xff]  ;;  %v3544_v1 = vsel %vm8649_vm13, 0.0, %v8647_v36 }
 0x37d   : > { %v3914_v25 = vadd.f32 %v7653_v43, %v3875_v9  ;;  %v5359_v35 = vadd.f32 %v7585_v47, %v3211_v28  ;;  %v5139_v21 = vpop.f32.mrb[50].mxu1  ;;  %v3945_v41 = vmax.f32 %v3913_v31, 0.0  ;;  %vm8645_vm9 = vnez %v8644_v2  ;;  %v8652_v28 = vld [vmem:[#allocation74_spill] sm:$0xff] }
 0x37e   : > { %v3948_v63 = vmax.f32 %v3916_v20, 0.0  ;;  %v3574_v14 = vadd.f32 %v5355_v12, %v3542_v34  ;;  %v5363_v38 = vadd.f32 %v7615_v7, %v5139_v21  ;;  %v3214_v59 = vpop.f32.mrb[51].mxu1  ;;  %v3546_v26 = vsel %vm8645_vm9, 0.0, %v8643_v48  ;;  %v8651_v20 = vld [vmem:[#allocation93_spill] sm:$0xff]  ;;  %v5568_v21 = vld [vmem:[%s5950_s17 + $0x40] sm:$0xff] }
 0x37f   : > { %v3946_v15 = vmax.f32 %v3914_v25, 0.0  ;;  %v3572_v18 = vadd.f32 %v5359_v35, %v3540_v33  ;;  %v5367_v10 = vadd.f32 %v7590_v50, %v3214_v59  ;;  %v3847_v50 = vsel %vm8640_vm11, 0.0, %v7673_v62  ;;  %v8646_v62 = vld [vmem:[#allocation91_spill] sm:$0xff] }
 0x380   : > { %v3880_v17 = vadd.f32 %v7667_v22, %v3574_v14  ;;  %v3575_v47 = vadd.f32 %v5363_v38, %v8638_v37  ;;  %v3968_v53 = vpack.c.bf16 %v3948_v63, %v3947_v61  ;;  %v3853_v35 = vsel %vm6958_vm14, 0.0, %v7714_v32  ;;  %vm8658_vm14 = vmmov %vm8642_vm0 }
 0x381   : > { %v3878_v40 = vadd.f32 %v7677_v5, %v3572_v18  ;;  %v3573_v11 = vadd.f32 %v5367_v10, %v8639_v4  ;;  %v3967_v7 = vpack.c.bf16 %v3946_v15, %v3945_v41  ;;  %v3851_v61 = vsel %vm6949_vm5, 0.0, %v7731_v58  ;;  %vm8659_vm5 = vmmov %vm8642_vm0 }
 0x382   : > { %v3919_v44 = vadd.f32 %v7653_v43, %v3880_v17  ;;  %v3881_v57 = vadd.f32 %v3849_v24, %v3575_v47  ;;  %v7895_v17 = vld [vmem:[%s8060_s7] ss:$0 sm:$0xff] }
 0x383   : > { %v3917_v22 = vadd.f32 %v7653_v43, %v3878_v40  ;;  %v3879_v6 = vadd.f32 %v3847_v50, %v3573_v11  ;;  %v5142_v39 = vpop.f32.mrb[52].mxu1  ;;  %5240 = vmatprep.mubr.msk.bf16.mxu1 %vm8641_vm2, %v3967_v7  ;;  %v5559_v24 = vld [vmem:[%s5950_s17 + $0x10] sm:$0xff] }
 0x384   : > { %v3920_v5 = vadd.f32 %v7653_v43, %v3881_v57  ;;  %v5371_v23 = vadd.f32 %v7618_v27, %v5142_v39  ;;  %v3227_v49 = vpop.f32.mrb[53].mxu1  ;;  %5241 = vmatmul.mubr.msk.bf16.gmra.mrb[108].mxu1 %vm8642_vm0, %v3968_v53  ;;  %v3951_v0 = vmax.f32 %v3919_v44, 0.0  ;;  %v8650_v27 = vld [vmem:[#allocation92_spill] sm:$0xff] }
 0x385   : > { %v3918_v13 = vadd.f32 %v7653_v43, %v3879_v6  ;;  %v5375_v19 = vadd.f32 %v8646_v62, %v3227_v49  ;;  %v5143_v29 = vpop.f32.mrb[54].mxu1  ;;  %v3949_v31 = vmax.f32 %v3917_v22, 0.0  ;;  %v5560_v44 = vld [vmem:[%s5950_s17] sm:$0xff]  ;;  %v5561_v6 = vld [vmem:[%s5950_s17 + $0x18] sm:$0xff] }
 0x386   : > { %v3952_v16 = vmax.f32 %v3920_v5, 0.0  ;;  %v3578_v3 = vadd.f32 %v5371_v23, %v3546_v26  ;;  %v5379_v52 = vadd.f32 %v8650_v27, %v5143_v29  ;;  %v3230_v45 = vpop.f32.mrb[55].mxu1  ;;  %v5562_v23 = vld [vmem:[%s5950_s17 + $0x8] sm:$0xff] }
 0x387   : > { %v3950_v9 = vmax.f32 %v3918_v13, 0.0  ;;  %v3576_v56 = vadd.f32 %v5375_v19, %v3544_v1  ;;  %v5383_v46 = vadd.f32 %v8651_v20, %v3230_v45  ;;  %v5565_v45 = vld [vmem:[%s5950_s17 + $0x38] sm:$0xff] }
 0x388   : > { %v3884_v12 = vadd.f32 %v7707_v60, %v3578_v3  ;;  %v3579_v25 = vadd.f32 %v5379_v52, %v8652_v28  ;;  %v3970_v42 = vpack.c.bf16 %v3952_v16, %v3951_v0  ;;  %v5564_v16 = vld [vmem:[%s5950_s17 + $0x20] sm:$0xff] }
 0x389   : > { %v3882_v8 = vadd.f32 %v7740_v51, %v3576_v56  ;;  %v3577_v30 = vadd.f32 %v5383_v46, %v8654_v54  ;;  %v3969_v33 = vpack.c.bf16 %v3950_v9, %v3949_v31  ;;  %v5566_v56 = vld [vmem:[%s5950_s17 + $0x28] sm:$0xff] }
 0x38a   : > { %v3923_v63 = vadd.f32 %v7653_v43, %v3884_v12  ;;  %v3885_v14 = vadd.f32 %v3853_v35, %v3579_v25  ;;  %v5567_v35 = vld [vmem:[%s5950_s17 + $0x50] sm:$0xff] }
 0x38b   : > { %v3921_v60 = vadd.f32 %v7653_v43, %v3882_v8  ;;  %v3883_v38 = vadd.f32 %v3851_v61, %v3577_v30  ;;  %5244 = vmatprep.mubr.msk.bf16.mxu1 %vm8656_vm8, %v3969_v33 }
 0x38c   : > { %v3924_v51 = vadd.f32 %v7653_v43, %v3885_v14  ;;  %5245 = vmatmul.mubr.msk.bf16.gmra.mrb[112].mxu1 %vm8657_vm3, %v3970_v42  ;;  %v3955_v59 = vmax.f32 %v3923_v63, 0.0 }
 0x38d   : > { %v3922_v32 = vadd.f32 %v7653_v43, %v3883_v38  ;;  %v3953_v15 = vmax.f32 %v3921_v60, 0.0  ;;  %v5569_v60 = vld [vmem:[%s5950_s17 + $0x58] sm:$0xff] }
 0x38e   : > { %v3956_v41 = vmax.f32 %v3924_v51, 0.0 }
 0x38f   : > { %v3954_v58 = vmax.f32 %v3922_v32, 0.0  ;;  %v5570_v32 = vld [vmem:[%s5950_s17 + $0x48] sm:$0xff] }
 0x390   : > { %v3972_v18 = vpack.c.bf16 %v3956_v41, %v3955_v59 }
 0x391   : > { %v3971_v10 = vpack.c.bf16 %v3954_v58, %v3953_v15 }
 0x393   : > { %5248 = vmatprep.mubr.msk.bf16.mxu1 %vm8658_vm14, %v3971_v10 }
 0x394   : > { %5249 = vmatmul.mubr.msk.bf16.gmra.mrb[116].mxu1 %vm8659_vm5, %v3972_v18 }
 0x428   : > { %v5222_v37 = vpop.f32.mrb[88].mxu1 }
 0x429   : > { %v4087_v43 = vadd.f32 %v5222_v37, %v7895_v17  ;;  %v4078_v47 = vpop.f32.mrb[89].mxu1 }
 0x42a   : > { %v4079_v53 = vadd.f32 %v7895_v17, %v4078_v47  ;;  %v5223_v40 = vpop.f32.mrb[90].mxu1  ;;  %v5571_v47 = vld [vmem:[%s5950_s17 + $0x70] sm:$0xff] }
 0x42b   : > { %v4207_v4 = vadd.f32 %v5559_v24, %v4087_v43  ;;  %v4090_v11 = vadd.f32 %v5223_v40, %v7895_v17  ;;  %v4081_v7 = vpop.f32.mrb[91].mxu1 }
 0x42c   : > { %v4205_v57 = vadd.f32 %v5560_v44, %v4079_v53  ;;  %v4082_v50 = vadd.f32 %v7895_v17, %v4081_v7 }
 0x42d   : > { %v4239_v22 = vmax.f32 %v4207_v4, 0.0  ;;  %v4208_v39 = vadd.f32 %v5561_v6, %v4090_v11  ;;  %v5572_v4 = vld [vmem:[%s5950_s17 + $0x60] sm:$0xff]  ;;  %v5574_v6 = vld [vmem:[%s5950_s17 + $0x68] sm:$0xff] }
 0x42e   : > { %v4237_v5 = vmax.f32 %v4205_v57, 0.0  ;;  %v4206_v49 = vadd.f32 %v5562_v23, %v4082_v50  ;;  %v5573_v57 = vld [vmem:[%s5950_s17 + $0x78] sm:$0xff] }
 0x42f   : > { %4271 = vst [vmem:[%s7907_s14 + $0x10] sm:$0xff] %v4239_v22  ;;  %v4240_v13 = vmax.f32 %v4208_v39, 0.0 }
 0x430   : > { %4269 = vst [vmem:[%s7907_s14] sm:$0xff] %v4237_v5  ;;  %v4238_v48 = vmax.f32 %v4206_v49, 0.0 }
 0x431   : > { %4272 = vst [vmem:[%s7907_s14 + $0x18] sm:$0xff] %v4240_v13 }
 0x432   : > { %v5226_v2 = vpop.f32.mrb[92].mxu1  ;;  %4270 = vst [vmem:[%s7907_s14 + $0x8] sm:$0xff] %v4238_v48 }
 0x433   : > { %v4103_v26 = vadd.f32 %v5226_v2, %v7895_v17  ;;  %v4094_v62 = vpop.f32.mrb[93].mxu1 }
 0x434   : > { %v4095_v19 = vadd.f32 %v7895_v17, %v4094_v62  ;;  %v5227_v36 = vpop.f32.mrb[94].mxu1  ;;  %v5575_v62 = vld [vmem:[%s5950_s17 + $0x90] sm:$0xff] }
 0x435   : > { %v4211_v1 = vadd.f32 %v5563_v55, %v4103_v26  ;;  %v4106_v29 = vadd.f32 %v5227_v36, %v7895_v17  ;;  %v4097_v0 = vpop.f32.mrb[95].mxu1 }
 0x436   : > { %v4209_v3 = vadd.f32 %v5564_v16, %v4095_v19  ;;  %v4098_v27 = vadd.f32 %v7895_v17, %v4097_v0 }
 0x437   : > { %v4243_v52 = vmax.f32 %v4211_v1, 0.0  ;;  %v4212_v31 = vadd.f32 %v5565_v45, %v4106_v29  ;;  %v5576_v1 = vld [vmem:[%s5950_s17 + $0x80] sm:$0xff]  ;;  %v5578_v45 = vld [vmem:[%s5950_s17 + $0x88] sm:$0xff] }
 0x438   : > { %v4241_v9 = vmax.f32 %v4209_v3, 0.0  ;;  %v4210_v20 = vadd.f32 %v5566_v56, %v4098_v27  ;;  %v5577_v3 = vld [vmem:[%s5950_s17 + $0x98] sm:$0xff] }
 0x439   : > { %4275 = vst [vmem:[%s7907_s14 + $0x30] sm:$0xff] %v4243_v52  ;;  %v4244_v46 = vmax.f32 %v4212_v31, 0.0 }
 0x43a   : > { %4273 = vst [vmem:[%s7907_s14 + $0x20] sm:$0xff] %v4241_v9  ;;  %v4242_v12 = vmax.f32 %v4210_v20, 0.0 }
 0x43b   : > { %4276 = vst [vmem:[%s7907_s14 + $0x38] sm:$0xff] %v4244_v46 }
 0x43c   : > { %4274 = vst [vmem:[%s7907_s14 + $0x28] sm:$0xff] %v4242_v12 }
 0x43d   : > { %v5230_v28 = vpop.f32.mrb[96].mxu1 }
 0x43e   : > { %v4119_v25 = vadd.f32 %v5230_v28, %v7895_v17  ;;  %v4110_v42 = vpop.f32.mrb[97].mxu1 }
 0x43f   : > { %v4111_v8 = vadd.f32 %v7895_v17, %v4110_v42  ;;  %v5231_v34 = vpop.f32.mrb[98].mxu1  ;;  %v5579_v42 = vld [vmem:[%s5950_s17 + $0xb0] sm:$0xff] }
 0x440   : > { %v4215_v54 = vadd.f32 %v5567_v35, %v4119_v25  ;;  %v4122_v30 = vadd.f32 %v5231_v34, %v7895_v17  ;;  %v4113_v33 = vpop.f32.mrb[99].mxu1 }
 0x441   : > { %v4213_v61 = vadd.f32 %v5568_v21, %v4111_v8  ;;  %v4114_v63 = vadd.f32 %v7895_v17, %v4113_v33 }
 0x442   : > { %v4247_v14 = vmax.f32 %v4215_v54, 0.0  ;;  %v4216_v38 = vadd.f32 %v5569_v60, %v4122_v30  ;;  %v5580_v54 = vld [vmem:[%s5950_s17 + $0xa0] sm:$0xff]  ;;  %v5582_v60 = vld [vmem:[%s5950_s17 + $0xa8] sm:$0xff] }
 0x443   : > { %v4245_v51 = vmax.f32 %v4213_v61, 0.0  ;;  %v4214_v59 = vadd.f32 %v5570_v32, %v4114_v63  ;;  %v5581_v61 = vld [vmem:[%s5950_s17 + $0xb8] sm:$0xff] }
 0x444   : > { %4279 = vst [vmem:[%s7907_s14 + $0x50] sm:$0xff] %v4247_v14  ;;  %v4248_v41 = vmax.f32 %v4216_v38, 0.0 }
 0x445   : > { %4277 = vst [vmem:[%s7907_s14 + $0x40] sm:$0xff] %v4245_v51  ;;  %v4246_v15 = vmax.f32 %v4214_v59, 0.0 }
 0x446   : > { %4280 = vst [vmem:[%s7907_s14 + $0x58] sm:$0xff] %v4248_v41 }
 0x447   : > { %v5234_v58 = vpop.f32.mrb[100].mxu1  ;;  %4278 = vst [vmem:[%s7907_s14 + $0x48] sm:$0xff] %v4246_v15 }
 0x448   : > { %v4135_v18 = vadd.f32 %v5234_v58, %v7895_v17  ;;  %v4126_v10 = vpop.f32.mrb[101].mxu1 }
 0x449   : > { %v4127_v37 = vadd.f32 %v7895_v17, %v4126_v10  ;;  %v5235_v43 = vpop.f32.mrb[102].mxu1  ;;  %v5583_v10 = vld [vmem:[%s5950_s17 + $0xd0] sm:$0xff] }
 0x44a   : > { %v4219_v53 = vadd.f32 %v5571_v47, %v4135_v18  ;;  %v4138_v40 = vadd.f32 %v5235_v43, %v7895_v17  ;;  %v4129_v24 = vpop.f32.mrb[103].mxu1 }
 0x44b   : > { %v4217_v11 = vadd.f32 %v5572_v4, %v4127_v37  ;;  %v4130_v7 = vadd.f32 %v7895_v17, %v4129_v24 }
 0x44c   : > { %v4251_v44 = vmax.f32 %v4219_v53, 0.0  ;;  %v4220_v50 = vadd.f32 %v5573_v57, %v4138_v40  ;;  %v5584_v53 = vld [vmem:[%s5950_s17 + $0xc0] sm:$0xff]  ;;  %v5586_v57 = vld [vmem:[%s5950_s17 + $0xc8] sm:$0xff] }
 0x44d   : > { %v4249_v22 = vmax.f32 %v4217_v11, 0.0  ;;  %v4218_v39 = vadd.f32 %v5574_v6, %v4130_v7  ;;  %v5585_v11 = vld [vmem:[%s5950_s17 + $0xd8] sm:$0xff] }
 0x44e   : > { %4283 = vst [vmem:[%s7907_s14 + $0x70] sm:$0xff] %v4251_v44  ;;  %v4252_v5 = vmax.f32 %v4220_v50, 0.0 }
 0x44f   : > { %4281 = vst [vmem:[%s7907_s14 + $0x60] sm:$0xff] %v4249_v22  ;;  %v4250_v23 = vmax.f32 %v4218_v39, 0.0  ;;  %v5238_v49 = vpop.f32.mrb[104].mxu1 }
 0x450   : > { %4284 = vst [vmem:[%s7907_s14 + $0x78] sm:$0xff] %v4252_v5  ;;  %v4151_v13 = vadd.f32 %v5238_v49, %v7895_v17  ;;  %v4142_v48 = vpop.f32.mrb[105].mxu1 }
 0x451   : > { %4282 = vst [vmem:[%s7907_s14 + $0x68] sm:$0xff] %v4250_v23  ;;  %v4143_v2 = vadd.f32 %v7895_v17, %v4142_v48  ;;  %v5239_v26 = vpop.f32.mrb[106].mxu1  ;;  %v5587_v48 = vld [vmem:[%s5950_s17 + $0xf0] sm:$0xff] }
 0x452   : > { %v4223_v19 = vadd.f32 %v5575_v62, %v4151_v13  ;;  %v4154_v36 = vadd.f32 %v5239_v26, %v7895_v17  ;;  %v4145_v55 = vpop.f32.mrb[107].mxu1 }
 0x453   : > { %v4221_v29 = vadd.f32 %v5576_v1, %v4143_v2  ;;  %v4146_v0 = vadd.f32 %v7895_v17, %v4145_v55 }
 0x454   : > { %v4255_v16 = vmax.f32 %v4223_v19, 0.0  ;;  %v4224_v27 = vadd.f32 %v5577_v3, %v4154_v36  ;;  %v5588_v19 = vld [vmem:[%s5950_s17 + $0xe0] sm:$0xff]  ;;  %v5590_v3 = vld [vmem:[%s5950_s17 + $0xe8] sm:$0xff] }
 0x455   : > { %v4253_v52 = vmax.f32 %v4221_v29, 0.0  ;;  %v4222_v31 = vadd.f32 %v5578_v45, %v4146_v0  ;;  %v5589_v29 = vld [vmem:[%s5950_s17 + $0xf8] sm:$0xff]  ;;  %s5744_s17 = smov [#allocation10]  }
 0x456   : > { %4287 = vst [vmem:[%s7907_s14 + $0x90] sm:$0xff] %v4255_v16  ;;  %v4256_v9 = vmax.f32 %v4224_v27, 0.0  ;;  %s5653_s10 = sshll.u32 %s5744_s17, 4  ;;  %s5654_s10 = int_to_ptr.vmem [resolvable:$false] %s5653_s10 }
 0x457   : > { %4285 = vst [vmem:[%s7907_s14 + $0x80] sm:$0xff] %v4253_v52  ;;  %v4254_v56 = vmax.f32 %v4222_v31, 0.0  ;;  %v5242_v20 = vpop.f32.mrb[108].mxu1  ;;  %s5655_s4 = scalar_lea.vmem %s5654_s10, 8192  ;;  %p5656_p12 = scmp.lt.s32.totalorder %s8001_s24, %s5654_s10 }
 0x458   : > { %4288 = vst [vmem:[%s7907_s14 + $0x98] sm:$0xff] %v4256_v9  ;;  %v4167_v46 = vadd.f32 %v5242_v20, %v7895_v17  ;;  %v4158_v12 = vpop.f32.mrb[109].mxu1  ;;  %p5657_p11 = scmp.lt.s32.totalorder %s5655_s4, %s5649_s25 }
 0x459   : > { %4286 = vst [vmem:[%s7907_s14 + $0x88] sm:$0xff] %v4254_v56  ;;  %v4159_v28 = vadd.f32 %v7895_v17, %v4158_v12  ;;  %v5243_v25 = vpop.f32.mrb[110].mxu1 }
 0x45a   : > { %v4227_v8 = vadd.f32 %v5579_v42, %v4167_v46  ;;  %v4170_v34 = vadd.f32 %v5243_v25, %v7895_v17  ;;  %v4161_v35 = vpop.f32.mrb[111].mxu1  ;;  %p5658_p0 = por %p5657_p11, %p5656_p12 }
 0x45b   : > { %v4225_v30 = vadd.f32 %v5580_v54, %v4159_v28  ;;  %v4162_v33 = vadd.f32 %v7895_v17, %v4161_v35 }
 0x45c   : > { %v4259_v21 = vmax.f32 %v4227_v8, 0.0  ;;  %v4228_v63 = vadd.f32 %v5581_v61, %v4170_v34  ;;  %p5659_p5 = pnand %p5658_p0, %p5652_p8 }
 0x45d   : > { %v4257_v14 = vmax.f32 %v4225_v30, 0.0  ;;  %v4226_v38 = vadd.f32 %v5582_v60, %v4162_v33 }
 0x45e   : > { %4291 = vst [vmem:[%s7907_s14 + $0xb0] sm:$0xff] %v4259_v21  ;;  %v4260_v51 = vmax.f32 %v4228_v63, 0.0 }
 0x45f   : > { %4289 = vst [vmem:[%s7907_s14 + $0xa0] sm:$0xff] %v4257_v14  ;;  %v4258_v32 = vmax.f32 %v4226_v38, 0.0  ;;  %v5246_v59 = vpop.f32.mrb[112].mxu1 }
 0x460   : > { %4292 = vst [vmem:[%s7907_s14 + $0xb8] sm:$0xff] %v4260_v51  ;;  %v4183_v41 = vadd.f32 %v5246_v59, %v7895_v17  ;;  %v4174_v15 = vpop.f32.mrb[113].mxu1 }
 0x461   : > { %4290 = vst [vmem:[%s7907_s14 + $0xa8] sm:$0xff] %v4258_v32  ;;  %v4175_v58 = vadd.f32 %v7895_v17, %v4174_v15  ;;  %v5247_v18 = vpop.f32.mrb[114].mxu1 }
 0x462   : > { %v4231_v37 = vadd.f32 %v5583_v10, %v4183_v41  ;;  %v4186_v43 = vadd.f32 %v5247_v18, %v7895_v17  ;;  %v4177_v47 = vpop.f32.mrb[115].mxu1 }
 0x463   : > { %v4229_v40 = vadd.f32 %v5584_v53, %v4175_v58  ;;  %v4178_v24 = vadd.f32 %v7895_v17, %v4177_v47 }
 0x464   : > { %v4263_v4 = vmax.f32 %v4231_v37, 0.0  ;;  %v4232_v7 = vadd.f32 %v5585_v11, %v4186_v43 }
 0x465   : > { %v4261_v44 = vmax.f32 %v4229_v40, 0.0  ;;  %v4230_v50 = vadd.f32 %v5586_v57, %v4178_v24 }
 0x466   : > { %4295 = vst [vmem:[%s7907_s14 + $0xd0] sm:$0xff] %v4263_v4  ;;  %v4264_v22 = vmax.f32 %v4232_v7, 0.0 }
 0x467   : > { %4293 = vst [vmem:[%s7907_s14 + $0xc0] sm:$0xff] %v4261_v44  ;;  %v4262_v6 = vmax.f32 %v4230_v50, 0.0  ;;  %v5250_v39 = vpop.f32.mrb[116].mxu1 }
 0x468   : > { %4296 = vst [vmem:[%s7907_s14 + $0xd8] sm:$0xff] %v4264_v22  ;;  %v4199_v5 = vadd.f32 %v5250_v39, %v7895_v17  ;;  %v4190_v23 = vpop.f32.mrb[117].mxu1 }
 0x469   : > { %4294 = vst [vmem:[%s7907_s14 + $0xc8] sm:$0xff] %v4262_v6  ;;  %v4191_v49 = vadd.f32 %v7895_v17, %v4190_v23  ;;  %v5251_v13 = vpop.f32.mrb[118].mxu1 }
 0x46a   : > { %v4235_v2 = vadd.f32 %v5587_v48, %v4199_v5  ;;  %v4202_v26 = vadd.f32 %v5251_v13, %v7895_v17  ;;  %v4193_v62 = vpop.f32.mrb[119].mxu1 }
 0x46b   : > { %v4233_v36 = vadd.f32 %v5588_v19, %v4191_v49  ;;  %v4194_v55 = vadd.f32 %v7895_v17, %v4193_v62 }
 0x46c   : > { %v4267_v1 = vmax.f32 %v4235_v2, 0.0  ;;  %v4236_v0 = vadd.f32 %v5589_v29, %v4202_v26 }
 0x46d   : > { %v4265_v16 = vmax.f32 %v4233_v36, 0.0  ;;  %v4234_v27 = vadd.f32 %v5590_v3, %v4194_v55 }
 0x46e   : > { %4299 = vst [vmem:[%s7907_s14 + $0xf0] sm:$0xff] %v4267_v1  ;;  %v4268_v52 = vmax.f32 %v4236_v0, 0.0 }
 0x46f   : > { %4297 = vst [vmem:[%s7907_s14 + $0xe0] sm:$0xff] %v4265_v16  ;;  %v4266_v17 = vmax.f32 %v4234_v27, 0.0 }
 0x470   : > { %4300 = vst [vmem:[%s7907_s14 + $0xf8] sm:$0xff] %v4268_v52 }
 0x471   : > { %4298 = vst [vmem:[%s7907_s14 + $0xe8] sm:$0xff] %v4266_v17 }
 0x472   : > { %5662 = shalt.err (!%p5659_p5)
}
 0x473   : > { %s5663_s16 = scalar_lea.hbm %s7999_s21, 4096  ;;  %s5667_s14 = scalar_lea.hbm %s8061_s8, 8192 }
 0x474   : > { %p5664_p9 = scmp.ne.s32.totalorder %s7999_s21, %s5663_s16  ;;  %p5668_p3 = scmp.lt.u32.totalorder %s7999_s21, %s8061_s8 }
 0x475   : > { %p5669_p7 = scmp.lt.u32.totalorder %s5667_s14, %s5663_s16  ;;  %p5671_p4 = scmp.lt.u32.totalorder %s5663_s16, %s7999_s21 }
 0x476   : > { %p5665_p1 = pnand %p5664_p9, %p5888_p10 }
 0x477   : > { %p5670_p13 = por %p5669_p7, %p5668_p3 }
 0x478   : > { %p5666_p2 = pneg %p5665_p1 }
 0x479   : > { %p5672_p6 = por %p5671_p4, %p5670_p13 }
 0x47b   : > { %p5673_p8 = pnand %p5672_p6, %p5666_p2 }
 0x47d   : > { %5676 = shalt.err (!%p5673_p8)
}
 0x47e   : > { %s5745_s22 = smov 128   ;;  %s5746_s25 = smov 8  }
 0x47f   : > { %5454 = dma.vmem_to_hbm [thread:$0]  (%p5888_p10), %s8001_s24, 4096, %s7999_s21, %s4302_s29, %s5745_s22, %s5745_s22, %s5746_s25  }
 0x480 PF: > { %s4333_s17 = sand.u32 1, %s5715_s26   ;;  %p8660_p12 = scmp.ne.s32.totalorder %s8172_s15, 0 }
 0x481   : > { %p8661_p11 = scmp.ge.s32.totalorder %s5735_s9, 2  ;;  %s4334_s10 = scalar_lea.sflag [#allocation7], %s4333_s17 }
 0x483   : > { %p5465_p0 = pnand %p8661_p11, %p8660_p12 }
 0x485   : > { %5710 = dma.done.wait (!%p5465_p0), %s4334_s10, 4096  }
 0x486   : > { %5712 = vsyncadd (!%p5465_p0), %s4334_s10, 4294963200  ;;  %s25_s9 = sadd.s32 1, %s5735_s9   ;;  %s8662_s26 = smov %s5719_s27 }
 0x487   : > { %p22_p5 = scmp.ge.s32.totalorder %s25_s9, 4   ;;  %s8663_s27 = smov %s5723_s28 }
 0x488   : > { %s8664_s28 = smov %s5897_s11  ;;  %s8665_s29 = smov %s5731_s30 }
 0x489   : > { %s8666_s30 = smov %s8668_s20  ;;  %24 = sbr.rel (!%p22_p5) target bundleno = 9 (0x9), region = 106 }
 0x490   :  { %4339 = vsyncpa [#allocation6], 1 }
 0x491   :  { %4341 = vsyncpa [#allocation6 + $0x1], 1 }
 0x492   :  { %4342 = vsyncpa [#allocation9], 1 }
 0x493   :  { %4343 = vsyncpa [#allocation7], 1 }
 0x494   :  { %4345 = vsyncpa [#allocation7 + $0x1], 1 }
 0x495   :  { %4346 = vsyncmov [#allocation4] }
 0x498   :  { %s4347_s15 = vpop.sfrf %4346 }
 0x499   :  { %p4636_p10 = scmp.ne.s32.totalorder %s4347_s15, 0 }
 0x49b   :  { %4351 = shalt.err (%p4636_p10)  }
 0x49c   :  { %4353 = vsyncmov [#allocation4 + $0x1] }
 0x49f   :  { %s4354_s1 = vpop.sfrf %4353 }
 0x4a0   :  { %p4637_p9 = scmp.ne.s32.totalorder %s4354_s1, 0 }
 0x4a2   :  { %4358 = shalt.err (%p4637_p9)  }

</bundles_post_ra>
